<compile_context>
chip_gen: v6e
topology: v6e:2x2x1
jax: 0.10.0
libtpu: 0.0.40
codegen_flags: <defaults>
</compile_context>

<pallas_src>
import functools

import jax
import jax.numpy as jnp
from jax.experimental import pallas as pl
from jax.experimental.pallas import tpu as pltpu

DPAD = 8  # coords channel axis padded to one sublane tile (holds D + bias + bias_p rows)


def _magnet_g_kernel(coords_ref, fw_ref, lw_ref, lb_ref, ow_ref, ob_ref,
                     out_ref, *, num_layers, data_dim):
    """Whole MAGNet_G forward for one coordinate grid (channel-major).

    coords_ref : [DPAD, P]     rows: [x_0..x_{D-1} ; ones ; bias_p ; zeros]
    fw_ref     : [L+1, H, DPAD] gabor weights, column D = gabor bias, rest 0
    lw_ref     : [L, H, H]     hidden linear weights (torch [out, in] layout)
    lb_ref     : [L, H, 1]     hidden linear biases
    ow_ref     : [C, H]        output linear weight
    ob_ref     : [C, 1]        output linear bias
    out_ref    : [C, P]
    """
    coords = coords_ref[...]                              # [DPAD, P]
    # bias_p row (broadcasts over the H sublanes of the activations).
    biasp = coords[data_dim + 1:data_dim + 2, :]          # [1, P]

    def gabor(i):
        # fw[i] = [W_i | b_i | 0...], coords = [x ; 1 ; bias_p ; 0...]
        # => one MXU matmul computes W_i @ x + b_i (bias folded in).
        return jnp.sin(jnp.dot(fw_ref[i], coords,
                               preferred_element_type=jnp.float32))   # [H, P]

    out = gabor(0)
    # num_layers is static -> unrolled at trace time.
    for i in range(1, num_layers + 1):
        lin = (jnp.dot(lw_ref[i - 1], out, preferred_element_type=jnp.float32)
               + lb_ref[i - 1])                           # [H, P] + [H, 1]
        out = gabor(i) * lin + biasp                      # bias_p over channels

    out_ref[...] = (jnp.dot(ow_ref[...], out, preferred_element_type=jnp.float32)
                    + ob_ref[...])                        # [C, P] + [C, 1]


def init_params(key, *, data_dim, kernel_size, hidden_channels, out_channels,
                num_layers, omega_0, alpha=6.0, beta=1.0):
    """Synthetic parameters matching MAGNet_G.__init__ shapes / init values.

    Weights are stored directly in torch's [out, in] layout (kernel applies
    W @ act).  Gabor biases live in column `data_dim` of fw.
    """
    H, D, C, L = hidden_channels, data_dim, out_channels, num_layers
    assert DPAD >= D + 2, "DPAD must hold coords + bias row + bias_p row"
    keys = jax.random.split(key, 2 * (L + 1) + L + 1)
    k_iter = iter(keys)

    # Gabor filter layers (L+1): conv kaiming_uniform(a=sqrt(5)) -> 1/sqrt(fan_in),
    # scaled by 2*pi*omega_0*gamma, gamma ~ Gamma(alpha/(layer+1), beta).
    fw = jnp.zeros((L + 1, H, DPAD), jnp.float32)
    for layer in range(L + 1):
        bound = 1.0 / (D ** 0.5)
        w = jax.random.uniform(next(k_iter), (H, D), minval=-bound, maxval=bound)
        gamma = jax.random.gamma(next(k_iter), alpha / (layer + 1), (H, D)) / beta
        fw = fw.at[layer, :, :D].set(w * (2.0 * jnp.pi * omega_0 * gamma))
        # column D is the gabor bias (torch init: 0.0) -> already zero.

    # Hidden linears (L): kaiming_uniform(nonlinearity='linear'), bias = 1.
    if L > 0:
        bound = (3.0 / H) ** 0.5
        lw = jnp.stack([
            jax.random.uniform(next(k_iter), (H, H), minval=-bound, maxval=bound)
            for _ in range(L)])
        lb = jnp.ones((L, H, 1), jnp.float32)
    else:
        lw = jnp.zeros((1, H, H), jnp.float32)   # dummies, never read
        lb = jnp.zeros((1, H, 1), jnp.float32)

    # Output linear: kaiming_uniform(nonlinearity='linear'), bias = 0.
    bound = (3.0 / H) ** 0.5
    ow = jax.random.uniform(next(k_iter), (C, H), minval=-bound, maxval=bound)
    ob = jnp.zeros((C, 1), jnp.float32)

    # bias_p parameter: torch.zeros(1, 1, K, K)
    bias_p = jnp.zeros((1, 1, kernel_size, kernel_size), jnp.float32)

    return dict(fw=fw, lw=lw, lb=lb, ow=ow, ob=ob, bias_p=bias_p)


def magnet_g_forward(coords, x, params, *, num_layers):
    """coords: [B, data_dim, K, K] (NCHW).  x is unused (matches torch forward)."""
    del x  # MAGNet_G.forward never touches x
    B, D, K, K2 = coords.shape
    assert K == K2
    P = B * K * K
    H = params["fw"].shape[1]
    C = params["ow"].shape[0]

    # Channel-major coords [D, P] + ones row (gabor-bias fold) + bias_p row + pad.
    coords_cm = jnp.transpose(coords, (1, 0, 2, 3)).reshape(D, P).astype(jnp.float32)
    ones_row = jnp.ones((1, P), jnp.float32)
    biasp_row = jnp.tile(params["bias_p"].reshape(1, K * K).astype(jnp.float32), (1, B))
    zpad = jnp.zeros((DPAD - D - 2, P), jnp.float32)
    coords_aug = jnp.concatenate([coords_cm, ones_row, biasp_row, zpad], axis=0)

    kernel = functools.partial(_magnet_g_kernel, num_layers=num_layers, data_dim=D)
    vmem = pl.BlockSpec(memory_space=pltpu.MemorySpace.VMEM)

    out_cm = pl.pallas_call(
        kernel,
        out_shape=jax.ShapeDtypeStruct((C, P), jnp.float32),
        in_specs=[vmem] * 6,
        out_specs=vmem,
    )(coords_aug, params["fw"], params["lw"], params["lb"],
      params["ow"], params["ob"])

    # [C, P] -> NCHW [B, C, K, K]
    return jnp.transpose(out_cm.reshape(C, B, K, K), (1, 0, 2, 3))


def magnet_g_reference(coords, params, *, num_layers, data_dim):
    """Pure-JAX NCHW reference mirroring the torch forward (for correctness)."""
    hi = jax.lax.Precision.HIGHEST
    D = data_dim
    W = params["fw"][:, :, :D]       # [L+1, H, D]
    fb = params["fw"][:, :, D]       # [L+1, H]

    def conv1x1(w, b, xin):          # w [O, I], b [O], xin [B, I, K, K]
        y = jnp.einsum("oi,bikl->bokl", w, xin, precision=hi)
        return y + b[None, :, None, None]

    out = jnp.sin(conv1x1(W[0], fb[0], coords))
    for i in range(1, num_layers + 1):
        lin = conv1x1(params["lw"][i - 1], params["lb"][i - 1][:, 0], out)
        out = jnp.sin(conv1x1(W[i], fb[i], coords)) * lin + params["bias_p"]
    return conv1x1(params["ow"], params["ob"][:, 0], out)


if __name__ == "__main__":
    data_dim = 2
    kernel_size = 16
    hidden_channels = 32
    out_channels = 4
    num_layers = 2
    omega_0 = 10.0

    key = jax.random.PRNGKey(0)
    k_param, k_bias, k_x = jax.random.split(key, 3)

    params = init_params(
        k_param, data_dim=data_dim, kernel_size=kernel_size,
        hidden_channels=hidden_channels, out_channels=out_channels,
        num_layers=num_layers, omega_0=omega_0)

    # Torch inits these biases to 0; give them nonzero values so the reference
    # check actually exercises the bias-folding and bias_p paths.
    kb = jax.random.split(k_bias, 3)
    params["fw"] = params["fw"].at[:, :, data_dim].set(
        0.1 * jax.random.normal(kb[0], (num_layers + 1, hidden_channels)))
    params["ob"] = 0.1 * jax.random.normal(kb[1], (out_channels, 1))
    params["bias_p"] = 0.1 * jax.random.normal(
        kb[2], (1, 1, kernel_size, kernel_size))

    # coordinate grid in [-1, 1], NCHW: [1, data_dim, K, K]
    lin = jnp.linspace(-1.0, 1.0, kernel_size)
    yy, xx = jnp.meshgrid(lin, lin, indexing="ij")
    coords = jnp.stack([xx, yy])[None].astype(jnp.float32)

    # x is part of the torch forward signature but unused by MAGNet_G.forward
    x = jax.random.normal(k_x, (2, 4, kernel_size, kernel_size), jnp.float32)

    out = magnet_g_forward(coords, x, params, num_layers=num_layers)
    out = jax.block_until_ready(out)

    ref = magnet_g_reference(coords, params, num_layers=num_layers,
                             data_dim=data_dim)
    assert out.shape == (1, out_channels, kernel_size, kernel_size)
    assert jnp.allclose(out, ref, atol=2e-3, rtol=2e-3), "mismatch vs JAX reference"

    print("KERNEL_OK")
</pallas_src>

<mosaic_0001>
module attributes {stable_mosaic.version = 11 : i64} {
  func.func @_magnet_g_kernel(%arg0: memref<8x256xf32, #tpu.memory_space<vmem>>, %arg1: memref<3x32x8xf32, #tpu.memory_space<vmem>>, %arg2: memref<2x32x32xf32, #tpu.memory_space<vmem>>, %arg3: memref<2x32x1xf32, #tpu.memory_space<vmem>>, %arg4: memref<4x32xf32, #tpu.memory_space<vmem>>, %arg5: memref<4x1xf32, #tpu.memory_space<vmem>>, %arg6: memref<4x256xf32, #tpu.memory_space<vmem>>) attributes {dimension_semantics = [], scalar_prefetch = 0 : i64, scratch_operands = 0 : i64, tpu.core_type = #tpu.core_type<tc>} {
    %c0 = arith.constant 0 : index
    %c0_0 = arith.constant 0 : index
    %0 = vector.load %arg0[%c0, %c0_0] : memref<8x256xf32, #tpu.memory_space<vmem>>, vector<8x256xf32>
    %1 = vector.extract_strided_slice %0 {offsets = [3, 0], sizes = [1, 256], strides = [1, 1]} : vector<8x256xf32> to vector<1x256xf32>
    %c0_1 = arith.constant 0 : index
    %c0_2 = arith.constant 0 : index
    %c0_3 = arith.constant 0 : index
    %2 = vector.load %arg1[%c0_1, %c0_2, %c0_3] : memref<3x32x8xf32, #tpu.memory_space<vmem>>, vector<1x32x8xf32>
    %3 = vector.shape_cast %2 : vector<1x32x8xf32> to vector<32x8xf32>
    %cst = arith.constant dense<0.000000e+00> : vector<32x256xf32>
    %4 = tpu.matmul %3, %0, %cst {dimension_numbers = #tpu.dot_dimension_numbers<[1], [0], [0], [1], [0, 0, 1, 1], [], []>} : vector<32x8xf32>, vector<8x256xf32>, vector<32x256xf32> -> vector<32x256xf32>
    %5 = math.sin %4 : vector<32x256xf32>
    %c0_4 = arith.constant 0 : index
    %c0_5 = arith.constant 0 : index
    %c0_6 = arith.constant 0 : index
    %6 = vector.load %arg2[%c0_4, %c0_5, %c0_6] : memref<2x32x32xf32, #tpu.memory_space<vmem>>, vector<1x32x32xf32>
    %7 = vector.shape_cast %6 : vector<1x32x32xf32> to vector<32x32xf32>
    %cst_7 = arith.constant dense<0.000000e+00> : vector<32x256xf32>
    %8 = tpu.matmul %7, %5, %cst_7 {dimension_numbers = #tpu.dot_dimension_numbers<[1], [0], [0], [1], [0, 0, 1, 1], [], []>} : vector<32x32xf32>, vector<32x256xf32>, vector<32x256xf32> -> vector<32x256xf32>
    %c0_8 = arith.constant 0 : index
    %c0_9 = arith.constant 0 : index
    %c0_10 = arith.constant 0 : index
    %9 = vector.load %arg3[%c0_8, %c0_9, %c0_10] : memref<2x32x1xf32, #tpu.memory_space<vmem>>, vector<1x32x1xf32>
    %10 = vector.shape_cast %9 : vector<1x32x1xf32> to vector<32x1xf32>
    %11 = vector.broadcast %10 : vector<32x1xf32> to vector<32x256xf32>
    %12 = arith.addf %8, %11 : vector<32x256xf32>
    %c1 = arith.constant 1 : index
    %c0_11 = arith.constant 0 : index
    %c0_12 = arith.constant 0 : index
    %13 = vector.load %arg1[%c1, %c0_11, %c0_12] : memref<3x32x8xf32, #tpu.memory_space<vmem>>, vector<1x32x8xf32>
    %14 = vector.shape_cast %13 : vector<1x32x8xf32> to vector<32x8xf32>
    %cst_13 = arith.constant dense<0.000000e+00> : vector<32x256xf32>
    %15 = tpu.matmul %14, %0, %cst_13 {dimension_numbers = #tpu.dot_dimension_numbers<[1], [0], [0], [1], [0, 0, 1, 1], [], []>} : vector<32x8xf32>, vector<8x256xf32>, vector<32x256xf32> -> vector<32x256xf32>
    %16 = math.sin %15 : vector<32x256xf32>
    %17 = arith.mulf %16, %12 : vector<32x256xf32>
    %18 = vector.broadcast %1 : vector<1x256xf32> to vector<32x256xf32>
    %19 = arith.addf %17, %18 : vector<32x256xf32>
    %c1_14 = arith.constant 1 : index
    %c0_15 = arith.constant 0 : index
    %c0_16 = arith.constant 0 : index
    %20 = vector.load %arg2[%c1_14, %c0_15, %c0_16] : memref<2x32x32xf32, #tpu.memory_space<vmem>>, vector<1x32x32xf32>
    %21 = vector.shape_cast %20 : vector<1x32x32xf32> to vector<32x32xf32>
    %cst_17 = arith.constant dense<0.000000e+00> : vector<32x256xf32>
    %22 = tpu.matmul %21, %19, %cst_17 {dimension_numbers = #tpu.dot_dimension_numbers<[1], [0], [0], [1], [0, 0, 1, 1], [], []>} : vector<32x32xf32>, vector<32x256xf32>, vector<32x256xf32> -> vector<32x256xf32>
    %c1_18 = arith.constant 1 : index
    %c0_19 = arith.constant 0 : index
    %c0_20 = arith.constant 0 : index
    %23 = vector.load %arg3[%c1_18, %c0_19, %c0_20] : memref<2x32x1xf32, #tpu.memory_space<vmem>>, vector<1x32x1xf32>
    %24 = vector.shape_cast %23 : vector<1x32x1xf32> to vector<32x1xf32>
    %25 = vector.broadcast %24 : vector<32x1xf32> to vector<32x256xf32>
    %26 = arith.addf %22, %25 : vector<32x256xf32>
    %c2 = arith.constant 2 : index
    %c0_21 = arith.constant 0 : index
    %c0_22 = arith.constant 0 : index
    %27 = vector.load %arg1[%c2, %c0_21, %c0_22] : memref<3x32x8xf32, #tpu.memory_space<vmem>>, vector<1x32x8xf32>
    %28 = vector.shape_cast %27 : vector<1x32x8xf32> to vector<32x8xf32>
    %cst_23 = arith.constant dense<0.000000e+00> : vector<32x256xf32>
    %29 = tpu.matmul %28, %0, %cst_23 {dimension_numbers = #tpu.dot_dimension_numbers<[1], [0], [0], [1], [0, 0, 1, 1], [], []>} : vector<32x8xf32>, vector<8x256xf32>, vector<32x256xf32> -> vector<32x256xf32>
    %30 = math.sin %29 : vector<32x256xf32>
    %31 = arith.mulf %30, %26 : vector<32x256xf32>
    %32 = vector.broadcast %1 : vector<1x256xf32> to vector<32x256xf32>
    %33 = arith.addf %31, %32 : vector<32x256xf32>
    %c0_24 = arith.constant 0 : index
    %c0_25 = arith.constant 0 : index
    %34 = vector.load %arg4[%c0_24, %c0_25] : memref<4x32xf32, #tpu.memory_space<vmem>>, vector<4x32xf32>
    %cst_26 = arith.constant dense<0.000000e+00> : vector<4x256xf32>
    %35 = tpu.matmul %34, %33, %cst_26 {dimension_numbers = #tpu.dot_dimension_numbers<[1], [0], [0], [1], [0, 0, 1, 1], [], []>} : vector<4x32xf32>, vector<32x256xf32>, vector<4x256xf32> -> vector<4x256xf32>
    %c0_27 = arith.constant 0 : index
    %c0_28 = arith.constant 0 : index
    %36 = vector.load %arg5[%c0_27, %c0_28] : memref<4x1xf32, #tpu.memory_space<vmem>>, vector<4x1xf32>
    %37 = vector.broadcast %36 : vector<4x1xf32> to vector<4x256xf32>
    %38 = arith.addf %35, %37 : vector<4x256xf32>
    %c0_29 = arith.constant 0 : index
    %c0_30 = arith.constant 0 : index
    %39 = vector.load %arg6[%c0_29, %c0_30] : memref<4x256xf32, #tpu.memory_space<vmem>>, vector<4x256xf32>
    tpu.vector_store %arg6[%c0_29, %c0_30], %38 {strides = array<i32>} : memref<4x256xf32, #tpu.memory_space<vmem>>, vector<4x256xf32>,
    return
  }
}

</mosaic_0001>

<bundles_post_ra>
// kernel: tpu_custom_call.1
= control target key start
LH: loop header
LB: loop body
LE: loop exit
PB: predicated region body
PF: predicated region fallthrough
CT: control target
= control target key end

     0   :  { %vm30_vm0 = vcmask 64512   ;;  %v6346_v3 = vmov 0.0   ;;  %s6339_s0 = inlined_call_operand.vmem [shape: f32[8,256], index: 0, kind: input, shape index: {}]   ;;  %s6340_s1 = inlined_call_operand.vmem [shape: f32[3,32,8], index: 1, kind: input, shape index: {}]   ;;  %s6341_s2 = inlined_call_operand.vmem [shape: f32[2,32,32], index: 2, kind: input, shape index: {}]   ;;  %s6342_s3 = inlined_call_operand.vmem [shape: f32[2,32,1], index: 3, kind: input, shape index: {}]   ;;  %s6343_s4 = inlined_call_operand.vmem [shape: f32[4,32], index: 4, kind: input, shape index: {}]   ;;  %s6344_s5 = inlined_call_operand.vmem [shape: f32[4,1], index: 5, kind: input, shape index: {}]   ;;  %s6345_s6 = inlined_call_operand.hbm [shape: f32[4,256], index: 6, kind: output, shape index: {}]  }
   0x1   :  { %v25_v0 = vld [vmem:[%s6339_s0 + $0x8] sm:$0xff]  ;;  %v24_v1 = vld [vmem:[%s6339_s0] sm:$0xff]  ;;  %107 = vmatprep.mubr.f32.mxu0 %v6346_v3  ;;  %1069 = vmatprep.mubr.f32.mxu1 %v6346_v3 }
   0x2   :  { %v26_v2 = vld [vmem:[%s6340_s1] sm:$0xff]  ;;  %73 = vmatprep.subr.mxu0 %v25_v0 }
   0x3   :  { %74 = vmatpush1.msra.mxu0 %v24_v1 }
   0x4   :  { %3241 = vmatmul.mubr.msk.f32.vlgmr.msra.gmra.mxu0 %vm30_vm0, %v26_v2  ;;  %1141 = vmatprep.subr.mxu0 %v25_v0 }
   0x5   :  { %11 = vsyncpa [#allocation3], 0  ;;  %113 = vmatprep.mubr.f32.mxu0 %v6346_v3  ;;  %v27_v4 = vld [vmem:[%s6340_s1 + $0x8] sm:$0xff]  ;;  %1142 = vmatpush1.msra.mxu0 %v24_v1  ;;  %v28_v5 = vld [vmem:[%s6340_s1 + $0x10] sm:$0xff]  ;;  %v6359_v28 = vmov 2102212464  }
   0x6   :  { %2234 = vmatprep.subr.mxu0 %v25_v0  ;;  %v29_v6 = vld [vmem:[%s6340_s1 + $0x18] sm:$0xff]  ;;  %v3281_v7 = vld [vmem:[%s6340_s1 + $0x20] sm:$0xff]  ;;  %v3282_v8 = vld [vmem:[%s6340_s1 + $0x28] sm:$0xff]  ;;  %v6357_v30 = vmov 920167782   ;;  %s3609_s11 = smov [#allocation2]  }
   0x7   :  { %v3283_v9 = vld [vmem:[%s6340_s1 + $0x30] sm:$0xff]  ;;  %v3284_v10 = vld [vmem:[%s6340_s1 + $0x38] sm:$0xff]  ;;  %v6361_v32 = vmov 2131351028   ;;  %v6355_v36 = vmov 1326507024  }
   0x8   :  { %3242 = vmatmul.mubr.msk.f32.gmra.mxu0 %vm30_vm0, %v27_v4  ;;  %v6364_v38 = vmov 2475754826   ;;  %v6366_v46 = vmov 683565275   ;;  %s3233_s12 = sshll.u32 %s3609_s11, 4  ;;  %s3234_s12 = int_to_ptr.vmem [resolvable:$true] %s3233_s12 }
   0x9   :  { %119 = vmatprep.mubr.f32.mxu0 %v6346_v3  ;;  %s3579_s13 = scalar_lea.vmem %s3234_s12, 128  ;;  %p3584_p1 = scmp.lt.s32.totalorder %s3234_s12, %s3234_s12 }
   0xa   :  { %p3580_p0 = scmp.ne.s32.totalorder %s3234_s12, %s3579_s13  ;;  %p3585_p2 = scmp.lt.s32.totalorder %s3579_s13, %s3579_s13 }
   0xc   :  { %3243 = vmatmul.mubr.msk.f32.gmra.mxu0 %vm30_vm0, %v28_v5  ;;  %p3586_p3 = por %p3585_p2, %p3584_p1 }
   0xd   :  { %125 = vmatprep.mubr.f32.mxu0 %v6346_v3 }
   0xe   :  { %p3587_p4 = pnand %p3586_p3, %p3580_p0 }
  0x10   :  { %3244 = vmatmul.mubr.msk.f32.gmra.mxu0 %vm30_vm0, %v29_v6 }
  0x11   :  { %1175 = vmatprep.mubr.f32.mxu0 %v6346_v3 }
  0x14   :  { %3285 = vmatmul.mubr.msk.f32.vlgmr.msra.gmra.mxu0 %vm30_vm0, %v3281_v7 }
  0x15   :  { %1181 = vmatprep.mubr.f32.mxu0 %v6346_v3  ;;  %2235 = vmatpush1.msra.mxu0 %v24_v1 }
  0x18   :  { %3286 = vmatmul.mubr.msk.f32.gmra.mxu0 %vm30_vm0, %v3282_v8 }
  0x19   :  { %1187 = vmatprep.mubr.f32.mxu0 %v6346_v3 }
  0x1c   :  { %3287 = vmatmul.mubr.msk.f32.gmra.mxu0 %vm30_vm0, %v3283_v9 }
  0x1d   :  { %1193 = vmatprep.mubr.f32.mxu0 %v6346_v3 }
  0x20   :  { %3288 = vmatmul.mubr.msk.f32.gmra.mxu0 %vm30_vm0, %v3284_v10 }
  0x21   :  { %2268 = vmatprep.mubr.f32.mxu0 %v6346_v3 }
  0xc4   :  { %v3693_v11 = vpop.f32.mrf.mxu0 }
  0xc5   :  { %v135_v12 = vand.u32 2139095040, %v3693_v11  ;;  %v6354_v25 = vand.u32 2147483647, %v3693_v11 }
  0xc6   :  { %v3696_v13 = vpop.f32.mrf.mxu0 }
  0xc7   :  { %v136_v14 = vshrl.u32 %v135_v12, 23  ;;  %v239_v15 = vand.u32 2139095040, %v3696_v13  ;;  %v139_v45 = vand.u32 8388607, %v6354_v25  ;;  %v6351_v2 = vand.u32 2147483647, %v3696_v13 }
  0xc8   :  { %v3699_v23 = vpop.f32.mrf.mxu0 }
  0xc9   :  { %v3245_v16 = vadd.s32 4294967169, %v136_v14  ;;  %v240_v17 = vshrl.u32 %v239_v15, 23  ;;  %v343_v26 = vand.u32 2139095040, %v3699_v23  ;;  %v140_v55 = vor.u32 8388608, %v139_v45 }
  0xcb   :  { %v142_v18 = vadd.s32 1, %v3245_v16  ;;  %v3249_v19 = vadd.s32 4294967169, %v240_v17  ;;  %v344_v50 = vshrl.u32 %v343_v26, 23  ;;  %v180_v0 = vshll.u32 %v140_v55, 8 }
  0xcd   :  { %vm143_vm1 = vcmp.gt.s32.totalorder %v142_v18, 0  ;;  %v246_v22 = vadd.s32 1, %v3249_v19  ;;  %v3253_v58 = vadd.s32 4294967169, %v344_v50 }
  0xce   :  { %v144_v20 = vsel %vm143_vm1, %v142_v18, 0 }
  0xcf   :  { %v146_v21 = vand.u32 31, %v144_v20  ;;  %v3705_v27 = vshrl.u32 %v144_v20, 5  ;;  %vm247_vm2 = vcmp.gt.s32.totalorder %v246_v22, 0  ;;  %v350_v1 = vadd.s32 1, %v3253_v58 }
  0xd0   :  { %v248_v44 = vsel %vm247_vm2, %v246_v22, 0 }
  0xd1   :  { %v3701_v24 = vsub.s32 32, %v146_v21  ;;  %v158_v29 = vshll.u32 %v6359_v28, %v146_v21  ;;  %v161_v31 = vshll.u32 %v6357_v30, %v146_v21  ;;  %v152_v40 = vshll.u32 %v6364_v38, %v146_v21 }
  0xd2   :  { %v155_v41 = vshll.u32 %v6361_v32, %v146_v21  ;;  %v149_v47 = vshll.u32 %v6366_v46, %v146_v21  ;;  %vm167_vm3 = vcmp.lt.s32.totalorder %v3705_v27, 4  ;;  %v250_v53 = vand.u32 31, %v248_v44 }
  0xd3   :  { %v153_v33 = vshrl.u32 %v6361_v32, %v3701_v24  ;;  %v156_v34 = vshrl.u32 %v6359_v28, %v3701_v24  ;;  %v159_v35 = vshrl.u32 %v6357_v30, %v3701_v24  ;;  %v162_v37 = vshrl.u32 %v6355_v36, %v3701_v24 }
  0xd4   :  { %v150_v39 = vshrl.u32 %v6364_v38, %v3701_v24  ;;  %vm164_vm4 = vcmp.lt.s32.totalorder %v3705_v27, 1  ;;  %vm166_vm5 = vcmp.lt.s32.totalorder %v3705_v27, 3  ;;  %v3739_v61 = vsub.s32 32, %v250_v53 }
  0xd5   :  { %v160_v42 = vor.u32 %v159_v35, %v158_v29  ;;  %v163_v43 = vor.u32 %v162_v37, %v161_v31  ;;  %v154_v48 = vor.u32 %v153_v33, %v152_v40  ;;  %v157_v49 = vor.u32 %v156_v34, %v155_v41 }
  0xd6   :  { %v151_v51 = vor.u32 %v150_v39, %v149_v47  ;;  %vm165_vm6 = vcmp.lt.s32.totalorder %v3705_v27, 2  ;;  %v263_v4 = vshrl.u32 %v6357_v30, %v3739_v61  ;;  %v3752_v7 = vshrl.u32 %v248_v44, 5  ;;  %v3782_v39 = vpop.f32.mrf.mxu0 }
  0xd7   :  { %v177_v52 = vsel %vm167_vm3, %v163_v43, 1326507024  ;;  %v173_v54 = vsel %vm167_vm3, %v160_v42, 920167782  ;;  %v176_v56 = vsel %vm164_vm4, %v154_v48, %v157_v49  ;;  %v266_v8 = vshrl.u32 %v6355_v36, %v3739_v61 }
  0xd8   :  { %v178_v57 = vsel %vm166_vm5, %v160_v42, %v177_v52  ;;  %v172_v59 = vsel %vm164_vm4, %v151_v51, %v154_v48  ;;  %v174_v60 = vsel %vm166_vm5, %v157_v49, %v173_v54  ;;  %v254_v12 = vshrl.u32 %v6364_v38, %v3739_v61 }
  0xd9   :  { %v179_v62 = vsel %vm165_vm6, %v176_v56, %v178_v57  ;;  %v175_v63 = vsel %vm165_vm6, %v172_v59, %v174_v60  ;;  %v262_v14 = vshll.u32 %v6359_v28, %v250_v53  ;;  %v257_v15 = vshrl.u32 %v6361_v32, %v3739_v61 }
  0xda   :  { %v3749_v5 = vmul.u32.u64.low %v180_v0, %v179_v62  ;;  %v3750_v6 = vmul.u32.u64.high %v180_v0, %v179_v62, %v3749_v5  ;;  %v3756_v9 = vmul.u32.u64.low %v180_v0, %v175_v63  ;;  %v3757_v10 = vmul.u32.u64.high %v180_v0, %v175_v63, %v3756_v9 }
  0xdb   :  { %v260_v16 = vshrl.u32 %v6359_v28, %v3739_v61  ;;  %v265_v17 = vshll.u32 %v6357_v30, %v250_v53  ;;  %vm351_vm7 = vcmp.gt.s32.totalorder %v350_v1, 0  ;;  %v264_v18 = vor.u32 %v263_v4, %v262_v14 }
  0xdc   :  { %v253_v19 = vshll.u32 %v6366_v46, %v250_v53  ;;  %v256_v20 = vshll.u32 %v6364_v38, %v250_v53  ;;  %v259_v21 = vshll.u32 %v6361_v32, %v250_v53  ;;  %v148_v26 = vshrl.u32 %v6366_v46, %v3701_v24 }
  0xdd   :  { %v267_v22 = vor.u32 %v266_v8, %v265_v17  ;;  %v169_v29 = vsel %vm167_vm3, %v157_v49, 2102212464  ;;  %v243_v31 = vand.u32 8388607, %v6351_v2  ;;  %v352_v33 = vsel %vm351_vm7, %v350_v1, 0 }
  0xde   :  { %v3777_v34 = vor.u32 %v254_v12, %v253_v19  ;;  %v3779_v35 = vor.u32 %v257_v15, %v256_v20  ;;  %v261_v37 = vor.u32 %v260_v16, %v259_v21  ;;  %vm271_vm8 = vcmp.lt.s32.totalorder %v3752_v7, 4 }
  0xdf   :  { %v277_v40 = vsel %vm271_vm8, %v264_v18, 920167782  ;;  %v168_v24 = vsel %vm164_vm4, %v148_v26, %v151_v51  ;;  %v170_v41 = vsel %vm166_vm5, %v154_v48, %v169_v29  ;;  %v281_v42 = vsel %vm271_vm8, %v267_v22, 1326507024 }
  0xe0   :  { %v354_v43 = vand.u32 31, %v352_v33  ;;  %v190_v44 = vadd.s32 1, %v3757_v10  ;;  %vm268_vm9 = vcmp.lt.s32.totalorder %v3752_v7, 1  ;;  %vm270_vm10 = vcmp.lt.s32.totalorder %v3752_v7, 3 }
  0xe1   :  { %v447_v45 = vand.u32 2139095040, %v3782_v39  ;;  %vm189_vm11 = vc.u32 %v3750_v6, %v3756_v9  ;;  %v244_v47 = vor.u32 8388608, %v243_v31  ;;  %v276_v48 = vsel %vm268_vm9, %v3777_v34, %v3779_v35 }
  0xe2   :  { %v278_v49 = vsel %vm270_vm10, %v261_v37, %v277_v40  ;;  %v171_v50 = vsel %vm165_vm6, %v168_v24, %v170_v41  ;;  %v280_v51 = vsel %vm268_vm9, %v3779_v35, %v261_v37  ;;  %v282_v52 = vsel %vm270_vm10, %v264_v18, %v281_v42 }
  0xe3   :  { %vm269_vm12 = vcmp.lt.s32.totalorder %v3752_v7, 2  ;;  %v3812_v53 = vsub.s32 32, %v354_v43  ;;  %v191_v54 = vsel %vm189_vm11, %v190_v44, %v3757_v10  ;;  %v448_v56 = vshrl.u32 %v447_v45, 23 }
  0xe4   :  { %v279_v55 = vsel %vm269_vm12, %v276_v48, %v278_v49  ;;  %v187_v57 = vmul.u32 %v180_v0, %v171_v50  ;;  %v283_v27 = vsel %vm269_vm12, %v280_v51, %v282_v52  ;;  %v3819_v58 = vshll.u32 %v244_v47, 8 }
  0xe5   :  { %v367_v63 = vshrl.u32 %v6357_v30, %v3812_v53  ;;  %v6348_v0 = vand.u32 2147483647, %v3699_v23  ;;  %v3257_v5 = vadd.s32 4294967169, %v448_v56  ;;  %v358_v8 = vshrl.u32 %v6364_v38, %v3812_v53 }
  0xe6   :  { %v192_v59 = vadd.s32 %v191_v54, %v187_v57  ;;  %v3822_v60 = vmul.u32.u64.low %v3819_v58, %v279_v55  ;;  %v3823_v62 = vmul.u32.u64.high %v3819_v58, %v279_v55, %v3822_v60  ;;  %v366_v10 = vshll.u32 %v6359_v28, %v354_v43 }
  0xe7   :  { %v3829_v1 = vmul.u32.u64.low %v3819_v58, %v283_v27  ;;  %v3830_v4 = vmul.u32.u64.high %v3819_v58, %v283_v27, %v3829_v1  ;;  %v370_v12 = vshrl.u32 %v6355_v36, %v3812_v53  ;;  %v3838_v14 = vshrl.u32 %v352_v33, 5 }
  0xe8   :  { %v361_v15 = vshrl.u32 %v6361_v32, %v3812_v53  ;;  %v364_v16 = vshrl.u32 %v6359_v28, %v3812_v53  ;;  %v193_v17 = vadd.s32 536870912, %v192_v59  ;;  %v357_v18 = vshll.u32 %v6366_v46, %v354_v43 }
  0xe9   :  { %v368_v19 = vor.u32 %v367_v63, %v366_v10  ;;  %v369_v20 = vshll.u32 %v6357_v30, %v354_v43  ;;  %v347_v21 = vand.u32 8388607, %v6348_v0  ;;  %v360_v22 = vshll.u32 %v6364_v38, %v354_v43 }
  0xea   :  { %v363_v26 = vshll.u32 %v6361_v32, %v354_v43  ;;  %v454_v29 = vadd.s32 1, %v3257_v5  ;;  %v252_v31 = vshrl.u32 %v6366_v46, %v3739_v61  ;;  %v273_v33 = vsel %vm271_vm8, %v261_v37, 2102212464 }
  0xeb   :  { %v3854_v40 = vor.u32 %v358_v8, %v357_v18  ;;  %v371_v24 = vor.u32 %v370_v12, %v369_v20  ;;  %v3856_v41 = vor.u32 %v361_v15, %v360_v22  ;;  %vm375_vm13 = vcmp.lt.s32.totalorder %v3838_v14, 4 }
  0xec   :  { %v365_v42 = vor.u32 %v364_v16, %v363_v26  ;;  %vm455_vm14 = vcmp.gt.s32.totalorder %v454_v29, 0  ;;  %v3859_v44 = vshrl.u32 %v193_v17, 30  ;;  %v381_v43 = vsel %vm375_vm13, %v368_v19, 920167782 }
  0xed   :  { %v456_v45 = vsel %vm455_vm14, %v454_v29, 0  ;;  %v272_v61 = vsel %vm268_vm9, %v252_v31, %v3777_v34  ;;  %v274_v37 = vsel %vm270_vm10, %v3779_v35, %v273_v33  ;;  %vm372_vm15 = vcmp.lt.s32.totalorder %v3838_v14, 1 }
  0xee   :  { %v458_v47 = vand.u32 31, %v456_v45  ;;  %vm374_vm1 = vcmp.lt.s32.totalorder %v3838_v14, 3  ;;  %v385_v48 = vsel %vm375_vm13, %v371_v24, 1326507024  ;;  %v6350_v49 = vand.u32 2147483647, %v3782_v39 }
  0xef   :  { %v294_v50 = vadd.s32 1, %v3823_v62  ;;  %v348_v51 = vor.u32 8388608, %v347_v21  ;;  %v380_v34 = vsel %vm372_vm15, %v3854_v40, %v3856_v41  ;;  %v382_v35 = vsel %vm374_vm1, %v365_v42, %v381_v43 }
  0xf0   :  { %v195_v52 = vshll.u32 %v3859_v44, 30  ;;  %v275_v54 = vsel %vm269_vm12, %v272_v61, %v274_v37  ;;  %vm293_vm2 = vc.u32 %v3830_v4, %v3822_v60  ;;  %v3886_v55 = vsub.s32 32, %v458_v47 }
  0xf1   :  { %vm373_vm3 = vcmp.lt.s32.totalorder %v3838_v14, 2  ;;  %v384_v56 = vsel %vm372_vm15, %v3856_v41, %v365_v42  ;;  %v386_v57 = vsel %vm374_vm1, %v368_v19, %v385_v48  ;;  %v291_v7 = vmul.u32 %v3819_v58, %v275_v54 }
  0xf2   :  { %v383_v27 = vsel %vm373_vm3, %v380_v34, %v382_v35  ;;  %v295_v63 = vsel %vm293_vm2, %v294_v50, %v3823_v62  ;;  %v3898_v1 = vshll.u32 %v348_v51, 8  ;;  %v451_v5 = vand.u32 8388607, %v6350_v49  ;;  %v3930_v50 = vpop.f32.mrf.mxu0 }
  0xf3   :  { %v3902_v8 = vsub.s32 %v192_v59, %v195_v52  ;;  %v387_v10 = vsel %vm373_vm3, %v384_v56, %v386_v57  ;;  %v462_v12 = vshrl.u32 %v6364_v38, %v3886_v55  ;;  %v465_v15 = vshrl.u32 %v6361_v32, %v3886_v55 }
  0xf4   :  { %v3911_v58 = vmul.u32.u64.low %v3898_v1, %v383_v27  ;;  %v3912_v16 = vmul.u32.u64.high %v3898_v1, %v383_v27, %v3911_v58  ;;  %v468_v62 = vshrl.u32 %v6359_v28, %v3886_v55  ;;  %v471_v59 = vshrl.u32 %v6357_v30, %v3886_v55 }
  0xf5   :  { %v296_v17 = vadd.s32 %v295_v63, %v291_v7  ;;  %v461_v18 = vshll.u32 %v6366_v46, %v458_v47  ;;  %v464_v19 = vshll.u32 %v6364_v38, %v458_v47  ;;  %v470_v20 = vshll.u32 %v6359_v28, %v458_v47 }
  0xf6   :  { %v3923_v21 = vmul.u32.u64.low %v3898_v1, %v387_v10  ;;  %v3924_v22 = vmul.u32.u64.high %v3898_v1, %v387_v10, %v3923_v21  ;;  %v457_v26 = vshrl.u32 %v456_v45, 5  ;;  %v467_v29 = vshll.u32 %v6361_v32, %v458_v47 }
  0xf7   :  { %v463_v31 = vor.u32 %v462_v12, %v461_v18  ;;  %v466_v33 = vor.u32 %v465_v15, %v464_v19  ;;  %v472_v24 = vor.u32 %v471_v59, %v470_v20  ;;  %v452_v43 = vor.u32 8388608, %v451_v5 }
  0xf8   :  { %v469_v61 = vor.u32 %v468_v62, %v467_v29  ;;  %v473_v37 = vshll.u32 %v6357_v30, %v458_v47  ;;  %v474_v48 = vshrl.u32 %v6355_v36, %v3886_v55  ;;  %v198_v51 = vsub.s32 0, %v3902_v8 }
  0xf9   :  { %v297_v34 = vadd.s32 536870912, %v296_v17  ;;  %v356_v45 = vshrl.u32 %v6366_v46, %v3812_v53  ;;  %v377_v35 = vsel %vm375_vm13, %v365_v42, 2102212464  ;;  %vm476_vm4 = vcmp.lt.s32.totalorder %v457_v26, 1 }
  0xfa   :  { %v475_v52 = vor.u32 %v474_v48, %v473_v37  ;;  %vm479_vm5 = vcmp.lt.s32.totalorder %v457_v26, 4  ;;  %vm478_vm6 = vcmp.lt.s32.totalorder %v457_v26, 3  ;;  %v484_v47 = vsel %vm476_vm4, %v463_v31, %v466_v33 }
  0xfb   :  { %v485_v54 = vsel %vm479_vm5, %v472_v24, 920167782  ;;  %v551_v56 = vand.u32 2139095040, %v3930_v50  ;;  %vm477_vm7 = vcmp.lt.s32.totalorder %v457_v26, 2  ;;  %v488_v27 = vsel %vm476_vm4, %v466_v33, %v469_v61 }
  0xfc   :  { %v486_v57 = vsel %vm478_vm6, %v469_v61, %v485_v54  ;;  %v492_v7 = vshll.u32 %v452_v43, 8  ;;  %v3942_v53 = vshrl.u32 %v297_v34, 30  ;;  %v376_v42 = vsel %vm372_vm15, %v356_v45, %v3854_v40 }
  0xfd   :  { %v487_v63 = vsel %vm477_vm7, %v484_v47, %v486_v57  ;;  %v489_v5 = vsel %vm479_vm5, %v475_v52, 1326507024  ;;  %v378_v10 = vsel %vm374_vm1, %v3856_v41, %v377_v35  ;;  %v398_v59 = vadd.s32 1, %v3912_v16 }
  0xfe   :  { %6411 = vst [vmem:[#allocation5_spill] sm:$0xff] %v3942_v53  ;;  %v490_v12 = vsel %vm478_vm6, %v472_v24, %v489_v5  ;;  %v3953_v15 = vmul.u32.u64.low %v492_v7, %v487_v63  ;;  %v3954_v62 = vmul.u32.u64.high %v492_v7, %v487_v63, %v3953_v15  ;;  %v552_v19 = vshrl.u32 %v551_v56, 23  ;;  %v3989_v63 = vpop.f32.mrf.mxu0 }
  0xff   :  { %v491_v18 = vsel %vm477_vm7, %v488_v27, %v490_v12  ;;  %v3246_v40 = vmin.u32 %v198_v51, %v3902_v8  ;;  %vm397_vm8 = vc.u32 %v3924_v22, %v3911_v58  ;;  %v299_v41 = vshll.u32 %v3942_v53, 30 }
 0x100   :  { %v3962_v20 = vmul.u32.u64.low %v492_v7, %v491_v18  ;;  %v3963_v21 = vmul.u32.u64.high %v492_v7, %v491_v18, %v3962_v20  ;;  %v379_v29 = vsel %vm373_vm3, %v376_v42, %v378_v10  ;;  %v481_v24 = vsel %vm479_vm5, %v469_v61, 2102212464 }
 0x101   :  { %v3261_v43 = vadd.s32 4294967169, %v552_v19  ;;  %v460_v37 = vshrl.u32 %v6366_v46, %v3886_v55  ;;  %v399_v48 = vsel %vm397_vm8, %v398_v59, %v3912_v16  ;;  %v395_v34 = vmul.u32 %v3898_v1, %v379_v29 }
 0x102   :  { %v482_v35 = vsel %vm478_vm6, %v466_v33, %v481_v24  ;;  %v200_v52 = vclz %v3246_v40  ;;  %v3975_v47 = vsub.s32 %v296_v17, %v299_v41  ;;  %v502_v61 = vadd.s32 1, %v3954_v62 }
 0x103   :  { %v558_v51 = vadd.s32 1, %v3261_v43  ;;  %v480_v45 = vsel %vm476_vm4, %v460_v37, %v463_v31  ;;  %v3977_v14 = vadd.s32 %v399_v48, %v395_v34  ;;  %v6352_v54 = vand.u32 2147483647, %v3930_v50 }
 0x104   :  { %v483_v16 = vsel %vm477_vm7, %v480_v45, %v482_v35  ;;  %vm501_vm10 = vc.u32 %v3963_v21, %v3953_v15  ;;  %v3247_v31 = vadd.s32 4294967294, %v200_v52  ;;  %v302_v33 = vsub.s32 0, %v3975_v47 }
 0x105   :  { %vm559_vm9 = vcmp.gt.s32.totalorder %v558_v51, 0  ;;  %v401_v17 = vadd.s32 536870912, %v3977_v14  ;;  %v499_v57 = vmul.u32 %v492_v7, %v483_v16  ;;  %v503_v27 = vsel %vm501_vm10, %v502_v61, %v3954_v62 }
 0x106   :  { %v560_v55 = vsel %vm559_vm9, %v558_v51, 0  ;;  %v555_v42 = vand.u32 8388607, %v6352_v54  ;;  %v655_v41 = vand.u32 2139095040, %v3989_v63  ;;  %vm3248_vm11 = vcmp.lt.s32.totalorder %v3247_v31, 0 }
 0x107   :  { %v562_v1 = vand.u32 31, %v560_v55  ;;  %v561_v59 = vshrl.u32 %v560_v55, 5  ;;  %v504_v29 = vadd.s32 %v503_v27, %v499_v57  ;;  %v3250_v51 = vmin.u32 %v302_v33, %v3975_v47 }
 0x108   :  { %v556_v34 = vor.u32 8388608, %v555_v42  ;;  %v4003_v35 = vshrl.u32 %v401_v17, 30  ;;  %v656_v61 = vshrl.u32 %v655_v41, 23 }
 0x109   :  { %v563_v56 = vsub.s32 32, %v562_v1  ;;  %v565_v26 = vshll.u32 %v6366_v46, %v562_v1  ;;  %v568_v10 = vshll.u32 %v6364_v38, %v562_v1  ;;  %v574_v7 = vshll.u32 %v6359_v28, %v562_v1 }
 0x10a   :  { %v571_v20 = vshll.u32 %v6361_v32, %v562_v1  ;;  %v577_v43 = vshll.u32 %v6357_v30, %v562_v1  ;;  %vm580_vm12 = vcmp.lt.s32.totalorder %v561_v59, 1  ;;  %vm583_vm13 = vcmp.lt.s32.totalorder %v561_v59, 4 }
 0x10b   :  { %v566_v5 = vshrl.u32 %v6364_v38, %v563_v56  ;;  %v569_v12 = vshrl.u32 %v6361_v32, %v563_v56  ;;  %v572_v18 = vshrl.u32 %v6359_v28, %v563_v56  ;;  %v575_v62 = vshrl.u32 %v6357_v30, %v563_v56 }
 0x10c   :  { %v578_v37 = vshrl.u32 %v6355_v36, %v563_v56  ;;  %v505_v55 = vadd.s32 536870912, %v504_v29  ;;  %v564_v16 = vshrl.u32 %v6366_v46, %v563_v56  ;;  %vm582_vm14 = vcmp.lt.s32.totalorder %v561_v59, 3 }
 0x10d   :  { %v567_v19 = vor.u32 %v566_v5, %v565_v26  ;;  %v570_v40 = vor.u32 %v569_v12, %v568_v10  ;;  %v576_v24 = vor.u32 %v575_v62, %v574_v7  ;;  %v573_v48 = vor.u32 %v572_v18, %v571_v20 }
 0x10e   :  { %v579_v45 = vor.u32 %v578_v37, %v577_v43  ;;  %vm581_vm15 = vcmp.lt.s32.totalorder %v561_v59, 2  ;;  %v304_v33 = vclz %v3250_v51  ;;  %v596_v17 = vshll.u32 %v556_v34, 8  ;;  %v4021_v34 = vpop.f32.mrf.mxu0 }
 0x10f   :  { %v588_v52 = vsel %vm580_vm12, %v567_v19, %v570_v40  ;;  %v589_v1 = vsel %vm583_vm13, %v576_v24, 920167782  ;;  %v585_v57 = vsel %vm583_vm13, %v573_v48, 2102212464  ;;  %v592_v26 = vsel %vm580_vm12, %v570_v40, %v573_v48 }
 0x110   :  { %v590_v27 = vsel %vm582_vm14, %v573_v48, %v589_v1  ;;  %v593_v5 = vsel %vm583_vm13, %v579_v45, 1326507024  ;;  %v403_v10 = vshll.u32 %v4003_v35, 30  ;;  %v584_v12 = vsel %vm580_vm12, %v564_v16, %v567_v19 }
 0x111   :  { %v591_v42 = vsel %vm581_vm15, %v588_v52, %v590_v27  ;;  %v594_v18 = vsel %vm582_vm14, %v576_v24, %v593_v5  ;;  %v3265_v7 = vadd.s32 4294967169, %v656_v61  ;;  %v586_v62 = vsel %vm582_vm14, %v570_v40, %v585_v57 }
 0x112   :  { %v595_v56 = vsel %vm581_vm15, %v592_v26, %v594_v18  ;;  %v4012_v20 = vmul.u32.u64.low %v596_v17, %v591_v42  ;;  %v4013_v41 = vmul.u32.u64.high %v596_v17, %v591_v42, %v4012_v20  ;;  %v4016_v43 = vshrl.u32 %v505_v55, 30 }
 0x113   :  { %v4018_v37 = vmul.u32.u64.low %v596_v17, %v595_v56  ;;  %v4019_v48 = vmul.u32.u64.high %v596_v17, %v595_v56, %v4018_v37  ;;  %v662_v51 = vadd.s32 1, %v3265_v7  ;;  %v4024_v45 = vsel %vm3248_vm11, 0, %v3247_v31 }
 0x114   :  { %v587_v19 = vsel %vm581_vm15, %v584_v12, %v586_v62  ;;  %v3251_v40 = vadd.s32 4294967294, %v304_v33  ;;  %v4028_v24 = vsub.s32 %v3977_v14, %v403_v10  ;;  %v606_v52 = vadd.s32 1, %v4013_v41 }
 0x115   :  { %vm663_vm1 = vcmp.gt.s32.totalorder %v662_v51, 0  ;;  %v507_v55 = vshll.u32 %v4016_v43, 30  ;;  %v6349_v16 = vand.u32 2147483647, %v3989_v63  ;;  %v759_v1 = vand.u32 2139095040, %v4021_v34 }
 0x116   :  { %v664_v61 = vsel %vm663_vm1, %v662_v51, 0  ;;  %v188_v31 = vadd.s32 %v3756_v9, %v3750_v6  ;;  %v603_v57 = vmul.u32 %v596_v17, %v587_v19  ;;  %vm605_vm2 = vc.u32 %v4019_v48, %v4012_v20 }
 0x117   :  { %v666_v59 = vand.u32 31, %v664_v61  ;;  %v204_v14 = vsub.s32 32, %v4024_v45  ;;  %v205_v27 = vshll.u32 %v3902_v8, %v4024_v45  ;;  %v208_v26 = vsub.s32 4294967266, %v4024_v45 }
 0x118   :  { %v607_v33 = vsel %vm605_vm2, %v606_v52, %v4013_v41  ;;  %vm3252_vm3 = vcmp.lt.s32.totalorder %v3251_v40, 0  ;;  %v406_v42 = vsub.s32 0, %v4028_v24  ;;  %v4044_v6 = vsub.s32 %v504_v29, %v507_v55 }
 0x119   :  { %v608_v5 = vadd.s32 %v607_v33, %v603_v57  ;;  %v667_v10 = vsub.s32 32, %v666_v59  ;;  %v659_v9 = vand.u32 8388607, %v6349_v16  ;;  %v669_v17 = vshll.u32 %v6366_v46, %v666_v59 }
 0x11a   :  { %v760_v12 = vshrl.u32 %v759_v1, 23  ;;  %v672_v7 = vshll.u32 %v6364_v38, %v666_v59  ;;  %v675_v56 = vshll.u32 %v6361_v32, %v666_v59  ;;  %v678_v29 = vshll.u32 %v6359_v28, %v666_v59 }
 0x11b   :  { %v609_v18 = vadd.s32 536870912, %v608_v5  ;;  %v670_v8 = vshrl.u32 %v6364_v38, %v667_v10  ;;  %v673_v62 = vshrl.u32 %v6361_v32, %v667_v10  ;;  %v676_v41 = vshrl.u32 %v6359_v28, %v667_v10 }
 0x11c   :  { %v679_v37 = vshrl.u32 %v6357_v30, %v667_v10  ;;  %v665_v45 = vshrl.u32 %v664_v61, 5  ;;  %v681_v57 = vshll.u32 %v6357_v30, %v666_v59  ;;  %v682_v33 = vshrl.u32 %v6355_v36, %v667_v10 }
 0x11d   :  { %v4056_v51 = vshrl.u32 %v609_v18, 30  ;;  %v671_v19 = vor.u32 %v670_v8, %v669_v17  ;;  %v674_v52 = vor.u32 %v673_v62, %v672_v7  ;;  %v677_v55 = vor.u32 %v676_v41, %v675_v56 }
 0x11e   :  { %v680_v1 = vor.u32 %v679_v37, %v678_v29  ;;  %v206_v3 = vshrl.u32 %v188_v31, %v204_v14  ;;  %v209_v0 = vadd.s32 127, %v208_v26  ;;  %v4061_v16 = vsel %vm3252_vm3, 0, %v3251_v40 }
 0x11f   :  { %v611_v49 = vshll.u32 %v4056_v51, 30  ;;  %v3254_v2 = vmin.u32 %v406_v42, %v4028_v24  ;;  %v510_v18 = vsub.s32 0, %v4044_v6  ;;  %v660_v61 = vor.u32 8388608, %v659_v9 }
 0x120   :  { %v683_v17 = vor.u32 %v682_v33, %v681_v57  ;;  %v668_v8 = vshrl.u32 %v6366_v46, %v667_v10  ;;  %vm684_vm4 = vcmp.lt.s32.totalorder %v665_v45, 1  ;;  %vm687_vm5 = vcmp.lt.s32.totalorder %v665_v45, 4 }
 0x121   :  { %v3269_v59 = vadd.s32 4294967169, %v760_v12  ;;  %vm686_vm6 = vcmp.lt.s32.totalorder %v665_v45, 3  ;;  %v689_v7 = vsel %vm687_vm5, %v677_v55, 2102212464  ;;  %v692_v31 = vsel %vm684_vm4, %v671_v19, %v674_v52 }
 0x122   :  { %v693_v14 = vsel %vm687_vm5, %v680_v1, 920167782  ;;  %v4067_v26 = vsub.s32 %v608_v5, %v611_v49  ;;  %vm685_vm7 = vcmp.lt.s32.totalorder %v665_v45, 2  ;;  %v696_v62 = vsel %vm684_vm4, %v674_v52, %v677_v55 }
 0x123   :  { %v694_v40 = vsel %vm686_vm6, %v677_v55, %v693_v14  ;;  %v697_v56 = vsel %vm687_vm5, %v683_v17, 1326507024  ;;  %v700_v41 = vshll.u32 %v660_v61, 8  ;;  %v6353_v9 = vand.u32 2147483647, %v4021_v34 }
 0x124   :  { %v695_v42 = vsel %vm685_vm7, %v692_v31, %v694_v40  ;;  %v688_v29 = vsel %vm684_vm4, %v668_v8, %v671_v19  ;;  %v690_v10 = vsel %vm686_vm6, %v674_v52, %v689_v7  ;;  %v698_v37 = vsel %vm686_vm6, %v680_v1, %v697_v56 }
 0x125   :  { %v766_v57 = vadd.s32 1, %v3269_v59  ;;  %v3258_v12 = vmin.u32 %v510_v18, %v4044_v6  ;;  %v699_v33 = vsel %vm685_vm7, %v696_v62, %v698_v37  ;;  %v210_v5 = vshll.u32 %v209_v0, 23  ;;  %v4106_v37 = vpop.f32.mrf.mxu0 }
 0x126   :  { %v4073_v54 = vmul.u32.u64.low %v700_v41, %v695_v42  ;;  %v4074_v49 = vmul.u32.u64.high %v700_v41, %v695_v42, %v4073_v54  ;;  %v614_v55 = vsub.s32 0, %v4067_v26  ;;  %v4081_v61 = vor.u32 %v206_v3, %v205_v27 }
 0x127   :  { %v4078_v31 = vmul.u32.u64.low %v700_v41, %v699_v33  ;;  %v4079_v17 = vmul.u32.u64.high %v700_v41, %v699_v33, %v4078_v31  ;;  %v292_v19 = vadd.s32 %v3822_v60, %v3830_v4  ;;  %v691_v52 = vsel %vm685_vm7, %v688_v29, %v690_v10 }
 0x128   :  { %vm767_vm8 = vcmp.gt.s32.totalorder %v766_v57, 0  ;;  %v308_v1 = vsub.s32 32, %v4061_v16  ;;  %v312_v18 = vsub.s32 4294967266, %v4061_v16  ;;  %v408_v8 = vclz %v3254_v2 }
 0x129   :  { %v768_v59 = vsel %vm767_vm8, %v766_v57, 0  ;;  %v512_v0 = vclz %v3258_v12  ;;  %v710_v7 = vadd.s32 1, %v4074_v49  ;;  %v763_v14 = vand.u32 8388607, %v6353_v9 }
 0x12a   :  { %v770_v3 = vand.u32 31, %v768_v59  ;;  %v4091_v27 = vor.u32 4788187, %v210_v5  ;;  %v3262_v60 = vmin.u32 %v614_v55, %v4067_v26  ;;  %v707_v4 = vmul.u32 %v700_v41, %v691_v52 }
 0x12b   :  { %vm709_vm9 = vc.u32 %v4079_v17, %v4073_v54  ;;  %v309_v2 = vshll.u32 %v3975_v47, %v4061_v16  ;;  %v4100_v42 = vshrl.u32 %v292_v19, %v308_v1  ;;  %v4102_v56 = vadd.s32 127, %v312_v18 }
 0x12c   :  { %v711_v40 = vsel %vm709_vm9, %v710_v7, %v4074_v49  ;;  %v771_v62 = vsub.s32 32, %v770_v3  ;;  %v4104_v29 = vadd.s32 4294967294, %v408_v8  ;;  %v4108_v41 = vadd.s32 4294967294, %v512_v0 }
 0x12d   :  { %v712_v10 = vadd.s32 %v711_v40, %v707_v4  ;;  %v764_v57 = vor.u32 8388608, %v763_v14  ;;  %v616_v5 = vclz %v3262_v60  ;;  %v773_v49 = vshll.u32 %v6366_v46, %v770_v3 }
 0x12e   :  { %v774_v12 = vshrl.u32 %v6364_v38, %v771_v62  ;;  %v777_v33 = vshrl.u32 %v6361_v32, %v771_v62  ;;  %v776_v31 = vshll.u32 %v6364_v38, %v770_v3  ;;  %v769_v19 = vshrl.u32 %v768_v59, 5 }
 0x12f   :  { %v713_v55 = vadd.s32 536870912, %v712_v10  ;;  %v779_v52 = vshll.u32 %v6361_v32, %v770_v3  ;;  %v780_v1 = vshrl.u32 %v6359_v28, %v771_v62  ;;  %v863_v18 = vand.u32 2139095040, %v4106_v37 }
 0x130   :  { %v775_v0 = vor.u32 %v774_v12, %v773_v49  ;;  %v778_v7 = vor.u32 %v777_v33, %v776_v31  ;;  %v783_v14 = vshrl.u32 %v6357_v30, %v771_v62  ;;  %v782_v60 = vshll.u32 %v6359_v28, %v770_v3 }
 0x131   :  { %v4117_v8 = vshrl.u32 %v713_v55, 30  ;;  %v781_v4 = vor.u32 %v780_v1, %v779_v52  ;;  %v785_v40 = vshll.u32 %v6357_v30, %v770_v3  ;;  %v786_v9 = vshrl.u32 %v6355_v36, %v771_v62 }
 0x132   :  { %v314_v59 = vshll.u32 %v4102_v56, 23  ;;  %vm3256_vm10 = vcmp.lt.s32.totalorder %v4104_v29, 0  ;;  %vm3260_vm11 = vcmp.lt.s32.totalorder %v4108_v41, 0  ;;  %v3263_v25 = vadd.s32 4294967294, %v616_v5 }
 0x133   :  { %v715_v55 = vshll.u32 %v4117_v8, 30  ;;  %v784_v12 = vor.u32 %v783_v14, %v782_v60  ;;  %v787_v33 = vor.u32 %v786_v9, %v785_v40  ;;  %v804_v49 = vshll.u32 %v764_v57, 8 }
 0x134   :  { %vm788_vm12 = vcmp.lt.s32.totalorder %v769_v19, 1  ;;  %vm791_vm13 = vcmp.lt.s32.totalorder %v769_v19, 4  ;;  %v864_v52 = vshrl.u32 %v863_v18, 23  ;;  %vm790_vm14 = vcmp.lt.s32.totalorder %v769_v19, 3 }
 0x135   :  { %v4127_v31 = vsub.s32 %v712_v10, %v715_v55  ;;  %v793_v3 = vsel %vm791_vm13, %v781_v4, 2102212464  ;;  %v796_v1 = vsel %vm788_vm12, %v775_v0, %v778_v7  ;;  %v797_v56 = vsel %vm791_vm13, %v784_v12, 920167782 }
 0x136   :  { %v772_v36 = vshrl.u32 %v6366_v46, %v771_v62  ;;  %vm789_vm15 = vcmp.lt.s32.totalorder %v769_v19, 2  ;;  %v798_v30 = vsel %vm790_vm14, %v781_v4, %v797_v56  ;;  %vm3264_vm1 = vcmp.lt.s32.totalorder %v3263_v25, 0 }
 0x137   :  { %v718_v45 = vsub.s32 0, %v4127_v31  ;;  %v799_v9 = vsel %vm789_vm15, %v796_v1, %v798_v30  ;;  %v800_v10 = vsel %vm788_vm12, %v778_v7, %v781_v4  ;;  %v801_v57 = vsel %vm791_vm13, %v787_v33, 1326507024 }
 0x138   :  { %v792_v18 = vsel %vm788_vm12, %v772_v36, %v775_v0  ;;  %v794_v14 = vsel %vm790_vm14, %v778_v7, %v793_v3  ;;  %v802_v60 = vsel %vm790_vm14, %v784_v12, %v801_v57  ;;  %v3273_v62 = vadd.s32 4294967169, %v864_v52 }
 0x139   :  { %v3266_v5 = vmin.u32 %v718_v45, %v4127_v31  ;;  %v803_v40 = vsel %vm789_vm15, %v800_v10, %v802_v60  ;;  %v4137_v55 = vmul.u32.u64.low %v804_v49, %v799_v9  ;;  %v4138_v28 = vmul.u32.u64.high %v804_v49, %v799_v9, %v4137_v55 }
 0x13a   :  { %v4141_v56 = vsel %vm3264_vm1, 0, %v3263_v25  ;;  %v4143_v30 = vmul.u32.u64.low %v804_v49, %v803_v40  ;;  %v4144_v1 = vmul.u32.u64.high %v804_v49, %v803_v40, %v4143_v30  ;;  %v4149_v36 = vadd.s32 %v3911_v58, %v3924_v22 }
 0x13b   :  { %v720_v32 = vclz %v3266_v5  ;;  %v795_v45 = vsel %vm789_vm15, %v792_v18, %v794_v14  ;;  %v870_v0 = vadd.s32 1, %v3273_v62  ;;  %v4156_v7 = vor.u32 %v4100_v42, %v309_v2 }
 0x13c   :  { %v4161_v25 = vsel %vm3256_vm10, 0, %v4104_v29  ;;  %v6363_v33 = vand.u32 2147483647, %v4106_v37  ;;  %v4167_v58 = vsel %vm3260_vm11, 0, %v4108_v41  ;;  %v624_v22 = vsub.s32 4294967266, %v4141_v56 }
 0x13d   :  { %v3267_v12 = vadd.s32 4294967294, %v720_v32  ;;  %v814_v47 = vadd.s32 1, %v4138_v28  ;;  %vm871_vm2 = vcmp.gt.s32.totalorder %v870_v0, 0  ;;  %v4171_v16 = vor.u32 4788187, %v314_v59 }
 0x13e   :  { %v811_v2 = vmul.u32 %v804_v49, %v795_v45  ;;  %vm813_vm3 = vc.u32 %v4144_v1, %v4137_v55  ;;  %v872_v42 = vsel %vm871_vm2, %v870_v0, 0  ;;  %v416_v32 = vsub.s32 4294967266, %v4161_v25 }
 0x13f   :  { %vm3268_vm4 = vcmp.lt.s32.totalorder %v3267_v12, 0  ;;  %v815_v29 = vsel %vm813_vm3, %v814_v47, %v4138_v28  ;;  %v874_v19 = vand.u32 31, %v872_v42  ;;  %v4179_v41 = vadd.s32 %v3953_v15, %v3963_v21 }
 0x140   :  { %v520_v59 = vsub.s32 4294967266, %v4167_v58  ;;  %v816_v3 = vadd.s32 %v815_v29, %v811_v2  ;;  %v604_v49 = vadd.s32 %v4012_v20, %v4019_v48  ;;  %v625_v9 = vadd.s32 127, %v624_v22 }
 0x141   :  { %v867_v10 = vand.u32 8388607, %v6363_v33  ;;  %v875_v57 = vsub.s32 32, %v874_v19  ;;  %v4187_v5 = vsel %vm3268_vm4, 0, %v3267_v12  ;;  %v877_v18 = vshll.u32 %v6366_v46, %v874_v19 }
 0x142   :  { %v817_v28 = vadd.s32 536870912, %v816_v3  ;;  %v880_v15 = vshll.u32 %v6364_v38, %v874_v19  ;;  %v6412_v14 = vmov 2131351028   ;;  %v6413_v62 = vmov 2102212464  }
 0x143   :  { %v878_v21 = vshrl.u32 %v6364_v38, %v875_v57  ;;  %v881_v60 = vshrl.u32 %v6412_v14, %v875_v57  ;;  %v883_v40 = vshll.u32 %v6412_v14, %v874_v19  ;;  %v884_v20 = vshrl.u32 %v6413_v62, %v875_v57 }
 0x144   :  { %v4195_v48 = vshrl.u32 %v817_v28, 30  ;;  %v873_v30 = vshrl.u32 %v872_v42, 5  ;;  %v886_v45 = vshll.u32 %v6413_v62, %v874_v19  ;;  %v6414_v0 = vmov 920167782  }
 0x145   :  { %v887_v12 = vshrl.u32 %v6414_v0, %v875_v57  ;;  %v521_v22 = vadd.s32 127, %v520_v59  ;;  %v879_v47 = vor.u32 %v878_v21, %v877_v18  ;;  %v882_v2 = vor.u32 %v881_v60, %v880_v15 }
 0x146   :  { %v885_v29 = vor.u32 %v884_v20, %v883_v40  ;;  %v620_v33 = vsub.s32 32, %v4141_v56  ;;  %v819_v38 = vshll.u32 %v4195_v48, 30  ;;  %v868_v4 = vor.u32 8388608, %v867_v10 }
 0x147   :  { %v888_v52 = vor.u32 %v887_v12, %v886_v45  ;;  %v626_v46 = vshll.u32 %v625_v9, 23  ;;  %v728_v14 = vsub.s32 4294967266, %v4187_v5  ;;  %v889_v28 = vshll.u32 %v6414_v0, %v874_v19 }
 0x148   :  { %v6415_v42 = vmov 1326507024   ;;  %v4204_v62 = vsub.s32 %v816_v3, %v819_v38  ;;  %vm892_vm5 = vcmp.lt.s32.totalorder %v873_v30, 1  ;;  %vm894_vm6 = vcmp.lt.s32.totalorder %v873_v30, 3 }
 0x149   :  { %v890_v53 = vshrl.u32 %v6415_v42, %v875_v57  ;;  %vm895_vm7 = vcmp.lt.s32.totalorder %v873_v30, 4  ;;  %v900_v15 = vsel %vm892_vm5, %v879_v47, %v882_v2  ;;  %v6416_v60 = vmov 683565275  }
 0x14a   :  { %v897_v18 = vsel %vm895_vm7, %v885_v29, 2102212464  ;;  %v901_v21 = vsel %vm895_vm7, %v888_v52, 920167782  ;;  %v822_v10 = vsub.s32 0, %v4204_v62  ;;  %v876_v9 = vshrl.u32 %v6416_v60, %v875_v57 }
 0x14b   :  { %v891_v59 = vor.u32 %v890_v53, %v889_v28  ;;  %vm893_vm8 = vcmp.lt.s32.totalorder %v873_v30, 2  ;;  %v902_v40 = vsel %vm894_vm6, %v885_v29, %v901_v21  ;;  %v904_v38 = vsel %vm892_vm5, %v882_v2, %v885_v29 }
 0x14c   :  { %v903_v19 = vsel %vm893_vm8, %v900_v15, %v902_v40  ;;  %v908_v20 = vshll.u32 %v868_v4, 8  ;;  %v3270_v45 = vmin.u32 %v822_v10, %v4204_v62  ;;  %v896_v53 = vsel %vm892_vm5, %v876_v9, %v879_v47 }
 0x14d   :  { %v905_v3 = vsel %vm895_vm7, %v891_v59, 1326507024  ;;  %v898_v12 = vsel %vm894_vm6, %v882_v2, %v897_v18  ;;  %v729_v42 = vadd.s32 127, %v728_v14  ;;  %v622_v15 = vshrl.u32 %v604_v49, %v620_v33 }
 0x14e   :  { %v906_v28 = vsel %vm894_vm6, %v888_v52, %v905_v3  ;;  %v4217_v60 = vmul.u32.u64.low %v908_v20, %v903_v19  ;;  %v4218_v0 = vmul.u32.u64.high %v908_v20, %v903_v19, %v4217_v60  ;;  %v824_v21 = vclz %v3270_v45 }
 0x14f   :  { %v907_v57 = vsel %vm893_vm8, %v904_v38, %v906_v28  ;;  %v417_v4 = vadd.s32 127, %v416_v32  ;;  %v522_v10 = vshll.u32 %v521_v22, 23  ;;  %v724_v47 = vsub.s32 32, %v4187_v5 }
 0x150   :  { %v4221_v29 = vmul.u32.u64.low %v908_v20, %v907_v57  ;;  %v4222_v59 = vmul.u32.u64.high %v908_v20, %v907_v57, %v4221_v29  ;;  %v899_v2 = vsel %vm893_vm8, %v896_v53, %v898_v12  ;;  %v517_v52 = vshll.u32 %v4044_v6, %v4167_v58 }
 0x151   :  { %v621_v14 = vshll.u32 %v4067_v26, %v4141_v56  ;;  %v627_v18 = vor.u32 4788187, %v626_v46  ;;  %v3271_v9 = vadd.s32 4294967294, %v824_v21  ;;  %v6417_v33 = vsub.s32 32, %v4167_v58 }
 0x152   :  { %v708_v32 = vadd.s32 %v4073_v54, %v4079_v17  ;;  %v730_v22 = vshll.u32 %v729_v42, 23  ;;  %v918_v40 = vadd.s32 1, %v4218_v0  ;;  %v915_v19 = vmul.u32 %v908_v20, %v899_v2 }
 0x153   :  { %v518_v49 = vshrl.u32 %v4179_v41, %v6417_v33  ;;  %v623_v30 = vor.u32 %v622_v15, %v621_v14  ;;  %vm3272_vm9 = vcmp.lt.s32.totalorder %v3271_v9, 0  ;;  %vm917_vm10 = vc.u32 %v4222_v59, %v4217_v60 }
 0x154   :  { %v523_v6 = vor.u32 4788187, %v522_v10  ;;  %v726_v26 = vshrl.u32 %v708_v32, %v724_v47  ;;  %v827_v46 = vsel %vm3272_vm9, 0, %v3271_v9  ;;  %v919_v56 = vsel %vm917_vm10, %v918_v40, %v4218_v0 }
 0x155   :  { %v412_v58 = vsub.s32 32, %v4161_v25  ;;  %v628_v41 = vand.u32 2147483647, %v627_v18  ;;  %v832_v38 = vsub.s32 4294967266, %v827_v46  ;;  %v920_v3 = vadd.s32 %v919_v56, %v915_v19 }
 0x156   :  { %v519_v54 = vor.u32 %v518_v49, %v517_v52  ;;  %v725_v17 = vshll.u32 %v4127_v31, %v4187_v5  ;;  %v731_v42 = vor.u32 4788187, %v730_v22  ;;  %v828_v45 = vsub.s32 32, %v827_v46 }
 0x157   :  { %v418_v20 = vshll.u32 %v417_v4, 23  ;;  %v630_v53 = vcvt.s32.f32 %v623_v30  ;;  %v833_v12 = vadd.s32 127, %v832_v38  ;;  %v921_v28 = vadd.s32 536870912, %v920_v3 }
 0x158   :  { %v6418_v57 = vand.u32 2147483647, %v4091_v27  ;;  %v6419_v15 = vcvt.s32.f32 %v4081_v61  ;;  %v524_v21 = vand.u32 2147483647, %v523_v6  ;;  %v727_v29 = vor.u32 %v726_v26, %v725_v17 }
 0x159   :  { %v812_v10 = vadd.s32 %v4137_v55, %v4144_v1  ;;  %v414_v47 = vshrl.u32 %v4149_v36, %v412_v58  ;;  %v631_v2 = vmul.f32 %v630_v53, %v628_v41  ;;  %v834_v31 = vshll.u32 %v833_v12, 23 }
 0x15a   :  { %v215_v0 = vmul.f32 %v6419_v15, %v6418_v57  ;;  %v4249_v5 = vshrl.u32 %v921_v28, 30  ;;  %v316_v4 = vand.u32 2147483647, %v4171_v16  ;;  %v526_v52 = vcvt.s32.f32 %v519_v54 }
 0x15b   :  { %v732_v14 = vand.u32 2147483647, %v731_v42  ;;  %v830_v18 = vshrl.u32 %v812_v10, %v828_v45  ;;  %v318_v27 = vcvt.s32.f32 %v4156_v7  ;;  %v413_v61 = vshll.u32 %v4028_v24, %v4161_v25 }
 0x15c   :  { %v419_v9 = vor.u32 4788187, %v418_v20  ;;  %v923_v33 = vshll.u32 %v4249_v5, 30  ;;  %v527_v55 = vmul.f32 %v526_v52, %v524_v21  ;;  %v734_v1 = vcvt.s32.f32 %v727_v29 }
 0x15d   :  { %v829_v36 = vshll.u32 %v4204_v62, %v827_v46  ;;  %v835_v49 = vor.u32 4788187, %v834_v31  ;;  %v415_v32 = vor.u32 %v414_v47, %v413_v61  ;;  %v632_v22 = vxor.u32 2147483648, %v631_v2 }
 0x15e   :  { %v4257_v40 = vsub.s32 %v920_v3, %v923_v33  ;;  %v319_v16 = vmul.f32 %v318_v27, %v316_v4  ;;  %v735_v30 = vmul.f32 %v734_v1, %v732_v14  ;;  %vm134_vm11 = vcmp.lt.s32.totalorder %v3693_v11, 0 }
 0x15f   :  { %v831_v19 = vor.u32 %v830_v18, %v829_v36  ;;  %v216_v7 = vxor.u32 2147483648, %v215_v0  ;;  %v420_v6 = vand.u32 2147483647, %v419_v9  ;;  %v6420_v25 = vand.u32 2147483647, %v3693_v11 }
 0x160   :  { %v926_v24 = vsub.s32 0, %v4257_v40  ;;  %v528_v62 = vxor.u32 2147483648, %v527_v55  ;;  %vm550_vm13 = vcmp.lt.s32.totalorder %v3930_v50, 0  ;;  %v836_v46 = vand.u32 2147483647, %v835_v49 }
 0x161   :  { %vm4263_vm12 = vcmp.le.f32.partialorder %v6420_v25, 0.7853982  ;;  %vm238_vm14 = vcmp.lt.s32.totalorder %v3696_v13, 0  ;;  %v422_v56 = vcvt.s32.f32 %v415_v32  ;;  %v633_v58 = vsel %vm550_vm13, %v632_v22, %v631_v2 }
 0x162   :  { %v3274_v41 = vmin.u32 %v926_v24, %v4257_v40  ;;  %v320_v38 = vxor.u32 2147483648, %v319_v16  ;;  %vm446_vm15 = vcmp.lt.s32.totalorder %v3782_v39, 0  ;;  %v736_v3 = vxor.u32 2147483648, %v735_v30 }
 0x163   :  { %v838_v54 = vcvt.s32.f32 %v831_v19  ;;  %v217_v17 = vsel %vm134_vm11, %v216_v7, %v215_v0  ;;  %v423_v42 = vmul.f32 %v422_v56, %v420_v6  ;;  %v6423_v45 = vand.u32 2147483647, %v3930_v50 }
 0x164   :  { %v928_v53 = vclz %v3274_v41  ;;  %vm342_vm2 = vcmp.lt.s32.totalorder %v3699_v23, 0  ;;  %v529_v12 = vsel %vm446_vm15, %v528_v62, %v527_v55  ;;  %v6426_v15 = vand.u32 2147483647, %v3696_v13 }
 0x165   :  { %vm4277_vm1 = vcmp.le.f32.partialorder %v6423_v45, 0.7853982  ;;  %v839_v57 = vmul.f32 %v838_v54, %v836_v46  ;;  %v6429_v21 = vand.u32 2147483647, %v3782_v39  ;;  %vm654_vm5 = vcmp.lt.s32.totalorder %v3989_v63, 0 }
 0x166   :  { %v636_v28 = vsel %vm4277_vm1, %v3930_v50, %v633_v58  ;;  %vm4289_vm3 = vcmp.le.f32.partialorder %v6426_v15, 0.7853982  ;;  %v3275_v10 = vadd.s32 4294967294, %v928_v53  ;;  %v220_v47 = vsel %vm4263_vm12, %v3693_v11, %v217_v17 }
 0x167   :  { %vm4295_vm4 = vcmp.le.f32.partialorder %v6429_v21, 0.7853982  ;;  %v321_v2 = vsel %vm238_vm14, %v320_v38, %v319_v16  ;;  %v6432_v31 = vand.u32 2147483647, %v3989_v63  ;;  %v737_v52 = vsel %vm654_vm5, %v736_v3, %v735_v30 }
 0x168   :  { %v6435_v14 = vand.u32 2147483647, %v3699_v23  ;;  %v424_v27 = vxor.u32 2147483648, %v423_v42  ;;  %v532_v61 = vsel %vm4295_vm4, %v3782_v39, %v529_v12  ;;  %3481 = vcosq.f32 %v636_v28 }
 0x169   :  { %vm4307_vm6 = vcmp.le.f32.partialorder %v6432_v31, 0.7853982  ;;  %vm3276_vm8 = vcmp.lt.s32.totalorder %v3275_v10, 0  ;;  %3483 = vsinq.f32 %v636_v28  ;;  %v738_v9 = vsub.s32 4, %v4117_v8  ;;  %v6441_v31 = vld [vmem:[#allocation5_spill] sm:$0xff] }
 0x16a   :  { %vm4315_vm7 = vcmp.le.f32.partialorder %v6435_v14, 0.7853982  ;;  %v840_v33 = vxor.u32 2147483648, %v839_v57  ;;  %v931_v55 = vsel %vm3276_vm8, 0, %v3275_v10  ;;  %v740_v1 = vsel %vm4307_vm6, %v3989_v63, %v737_v52 }
 0x16b   :  { %v916_v36 = vadd.s32 %v4217_v60, %v4222_v59  ;;  %v932_v49 = vsub.s32 32, %v931_v55  ;;  %v936_v32 = vsub.s32 4294967266, %v931_v55  ;;  %3485 = vcosq.f32 %v220_v47 }
 0x16c   :  { %v324_v22 = vsel %vm4289_vm3, %v3696_v13, %v321_v2  ;;  %v634_v16 = vsub.s32 4, %v4056_v51  ;;  %vm758_vm9 = vcmp.lt.s32.totalorder %v4021_v34, 0  ;;  %3487 = vsinq.f32 %v532_v61 }
 0x16d   :  { %v933_v30 = vshll.u32 %v4257_v40, %v931_v55  ;;  %v934_v19 = vshrl.u32 %v916_v36, %v932_v49  ;;  %v937_v7 = vadd.s32 127, %v936_v32  ;;  %v425_v6 = vsel %vm342_vm2, %v424_v27, %v423_v42  ;;  %v4388_v27 = vpop.f32.mrf.mxu0 }
 0x16e   :  { %v739_v60 = vsel %vm654_vm5, %v738_v9, %v4117_v8  ;;  %3489 = vcosq.f32 %v740_v1  ;;  %v841_v59 = vsel %vm758_vm9, %v840_v33, %v839_v57  ;;  %v842_v62 = vsub.s32 4, %v4195_v48 }
 0x16f   :  { %3491 = vsinq.f32 %v740_v1  ;;  %v935_v24 = vor.u32 %v934_v19, %v933_v30  ;;  %v938_v25 = vshll.u32 %v937_v7, 23  ;;  %v530_v40 = vsub.s32 4, %v4016_v43 }
 0x170   :  { %3493 = vcosq.f32 %v532_v61  ;;  %v635_v46 = vsel %vm550_vm13, %v634_v16, %v4056_v51  ;;  %v6438_v56 = vand.u32 2147483647, %v4021_v34  ;;  %v741_v38 = vsel %vm4307_vm6, 0, %v739_v60 }
 0x171   :  { %3495 = vsinq.f32 %v220_v47  ;;  %v939_v41 = vor.u32 4788187, %v938_v25  ;;  %v428_v51 = vsel %vm4315_vm7, %v3699_v23, %v425_v6  ;;  %v946_v3 = vsub.s32 4, %v4249_v5 }
 0x172   :  { %vm4348_vm10 = vcmp.le.f32.partialorder %v6438_v56, 0.7853982  ;;  %3497 = vsinq.f32 %v324_v22  ;;  %v942_v17 = vcvt.s32.f32 %v935_v24  ;;  %v843_v42 = vsel %vm758_vm9, %v842_v62, %v4195_v48 }
 0x173   :  { %v844_v58 = vsel %vm4348_vm10, %v4021_v34, %v841_v59  ;;  %v940_v54 = vand.u32 2147483647, %v939_v41  ;;  %v637_v45 = vsel %vm4277_vm1, 0, %v635_v46  ;;  %v531_v53 = vsel %vm446_vm15, %v530_v40, %v4016_v43 }
 0x174   :  { %3499 = vcosq.f32 %v844_v58  ;;  %v745_v12 = vadd.s32 3, %v741_v38  ;;  %v426_v28 = vsub.s32 4, %v4003_v35  ;;  %vm862_vm13 = vcmp.lt.s32.totalorder %v4106_v37, 0 }
 0x175   :  { %3501 = vsinq.f32 %v844_v58  ;;  %v943_v57 = vmul.f32 %v942_v17, %v940_v54  ;;  %v3482_v15 = vpop.eup %3481  ;;  %v947_v48 = vsel %vm862_vm13, %v946_v3, %v4249_v5  ;;  %v845_v20 = vsel %vm4348_vm10, 0, %v843_v42 }
 0x176   :  { %3503 = vsinq.f32 %v428_v51  ;;  %v641_v21 = vadd.s32 3, %v637_v45  ;;  %v3484_v10 = vpop.eup %3483  ;;  %v218_v43 = vsub.s32 4, %v3859_v44  ;;  %v533_v2 = vsel %vm4295_vm4, 0, %v531_v53 }
 0x177   :  { %3505 = vcosq.f32 %v428_v51  ;;  %v944_v47 = vxor.u32 2147483648, %v943_v57  ;;  %v322_v4 = vsub.s32 4, %v6441_v31  ;;  %v6442_v52 = vand.u32 2147483647, %v4106_v37 }
 0x178   :  { %3507 = vcosq.f32 %v324_v22  ;;  %v4386_v5 = vand.u32 3, %v745_v12  ;;  %v4390_v61 = vpop.eup %3485  ;;  %v849_v33 = vadd.s32 3, %v845_v20  ;;  %v1203_v55 = vand.u32 2139095040, %v4388_v27 }
 0x179   :  { %vm4382_vm15 = vcmp.le.f32.partialorder %v6442_v52, 0.7853982  ;;  %v945_v9 = vsel %vm862_vm13, %v944_v47, %v943_v57  ;;  %v3488_v1 = vpop.eup %3487  ;;  %v427_v36 = vsel %vm342_vm2, %v426_v28, %v4003_v35  ;;  %v642_v32 = vand.u32 3, %v641_v21 }
 0x17a   :  { %v949_v29 = vsel %vm4382_vm15, 0, %v947_v48  ;;  %v948_v49 = vsel %vm4382_vm15, %v4106_v37, %v945_v9  ;;  %v537_v22 = vadd.s32 3, %v533_v2  ;;  %v219_v30 = vsel %vm134_vm11, %v218_v43, %v3859_v44 }
 0x17b   :  { %v3490_v16 = vpop.eup %3489  ;;  %3509 = vcosq.f32 %v948_v49  ;;  %v645_v19 = vxor.u32 2147483648, %v3484_v10  ;;  %v648_v7 = vxor.u32 2147483648, %v3482_v15  ;;  %v323_v60 = vsel %vm238_vm14, %v322_v4, %v6441_v31 }
 0x17c   :  { %v3492_v6 = vpop.eup %3491  ;;  %3511 = vsinq.f32 %v948_v49  ;;  %v953_v35 = vadd.s32 3, %v949_v29  ;;  %vm748_vm1 = vcmp.eq.s32.totalorder %v4386_v5, 0  ;;  %v4410_v24 = vand.u32 3, %v849_v33 }
 0x17d   :  { %v3494_v59 = vpop.eup %3493  ;;  %vm747_vm2 = vcmp.lt.s32.totalorder %v4386_v5, 2  ;;  %vm751_vm4 = vcmp.eq.s32.totalorder %v4386_v5, 2  ;;  %v429_v44 = vsel %vm4315_vm7, 0, %v427_v36  ;;  %v1204_v25 = vshrl.u32 %v1203_v55, 23  ;;  %v4445_v55 = vpop.f32.mrf.mxu0 }
 0x17e   :  { %v4416_v62 = vpop.eup %3495  ;;  %vm644_vm11 = vcmp.eq.s32.totalorder %v642_v32, 0  ;;  %vm647_vm5 = vcmp.eq.s32.totalorder %v642_v32, 2  ;;  %v538_v40 = vand.u32 3, %v537_v22  ;;  %v541_v46 = vxor.u32 2147483648, %v3488_v1 }
 0x17f   :  { %v4418_v56 = vpop.eup %3497  ;;  %v749_v8 = vxor.u32 2147483648, %v3492_v6  ;;  %v752_v58 = vxor.u32 2147483648, %v3490_v16  ;;  %v646_v41 = vsel %vm644_vm11, %v3482_v15, %v645_v19  ;;  %v649_v38 = vsel %vm647_vm5, %v648_v7, %v3484_v10 }
 0x180   :  { %v4420_v51 = vand.u32 3, %v953_v35  ;;  %v544_v3 = vxor.u32 2147483648, %v3494_v59  ;;  %v433_v54 = vadd.s32 3, %v429_v44  ;;  %v325_v18 = vsel %vm4289_vm3, 0, %v323_v60 }
 0x181   :  { %v3500_v17 = vpop.eup %3499  ;;  %vm852_vm14 = vcmp.eq.s32.totalorder %v4410_v24, 0  ;;  %vm855_vm6 = vcmp.eq.s32.totalorder %v4410_v24, 2  ;;  %vm643_vm7 = vcmp.lt.s32.totalorder %v642_v32, 2  ;;  %v3289_v42 = vadd.s32 4294967169, %v1204_v25 }
 0x182   :  { %v3502_v45 = vpop.eup %3501  ;;  %v4426_v53 = vsel %vm643_vm7, %v646_v41, %v649_v38  ;;  %vm539_vm8 = vcmp.lt.s32.totalorder %v538_v40, 2  ;;  %vm540_vm9 = vcmp.eq.s32.totalorder %v538_v40, 0  ;;  %vm543_vm10 = vcmp.eq.s32.totalorder %v538_v40, 2 }
 0x183   :  { %v3504_v12 = vpop.eup %3503  ;;  %vm851_vm13 = vcmp.lt.s32.totalorder %v4410_v24, 2  ;;  %v750_v0 = vsel %vm748_vm1, %v3490_v16, %v749_v8  ;;  %v753_v28 = vsel %vm751_vm4, %v752_v58, %v3492_v6  ;;  %v329_v57 = vadd.s32 3, %v325_v18 }
 0x184   :  { %v221_v15 = vsel %vm4263_vm12, 0, %v219_v30  ;;  %v3506_v48 = vpop.eup %3505  ;;  %vm955_vm3 = vcmp.lt.s32.totalorder %v4420_v51, 2  ;;  %v542_v20 = vsel %vm540_vm9, %v3494_v59, %v541_v46  ;;  %v545_v21 = vsel %vm543_vm10, %v544_v3, %v3488_v1 }
 0x185   :  { %v434_v10 = vand.u32 3, %v433_v54  ;;  %v3508_v43 = vpop.eup %3507  ;;  %vm952_vm15 = vweird.f32 %v4106_v37  ;;  %vm956_vm11 = vcmp.eq.s32.totalorder %v4420_v51, 0  ;;  %v853_v47 = vxor.u32 2147483648, %v3502_v45 }
 0x186   :  { %v856_v2 = vxor.u32 2147483648, %v3500_v17  ;;  %v1210_v31 = vadd.s32 1, %v3289_v42  ;;  %vm959_vm1 = vcmp.eq.s32.totalorder %v4420_v51, 2  ;;  %vm848_vm4 = vweird.f32 %v4021_v34 }
 0x187   :  { %v754_v26 = vsel %vm747_vm2, %v750_v0, %v753_v28  ;;  %v437_v4 = vxor.u32 2147483648, %v3504_v12  ;;  %v225_v52 = vadd.s32 3, %v221_v15  ;;  %vm744_vm12 = vweird.f32 %v3989_v63  ;;  %v965_v15 = vld [vmem:[%s6341_s2 + $0x8] sm:$0xff] }
 0x188   :  { %v546_v14 = vsel %vm539_vm8, %v542_v20, %v545_v21  ;;  %v440_v9 = vxor.u32 2147483648, %v3506_v48  ;;  %v330_v29 = vand.u32 3, %v329_v57  ;;  %v333_v33 = vxor.u32 2147483648, %v4418_v56  ;;  %v3510_v1 = vpop.eup %3509 }
 0x189   :  { %vm435_vm5 = vcmp.lt.s32.totalorder %v434_v10, 2  ;;  %vm436_vm7 = vcmp.eq.s32.totalorder %v434_v10, 0  ;;  %vm439_vm9 = vcmp.eq.s32.totalorder %v434_v10, 2  ;;  %v336_v36 = vxor.u32 2147483648, %v3508_v43  ;;  %v3512_v49 = vpop.eup %3511 }
 0x18a   :  { %v960_v5 = vxor.u32 2147483648, %v3510_v1  ;;  %v854_v32 = vsel %vm852_vm14, %v3500_v17, %v853_v47  ;;  %v857_v22 = vsel %vm855_vm6, %v856_v2, %v3502_v45  ;;  %vm1211_vm2 = vcmp.gt.s32.totalorder %v1210_v31, 0 }
 0x18b   :  { %v957_v16 = vxor.u32 2147483648, %v3512_v49  ;;  %v438_v30 = vsel %vm436_vm7, %v3506_v48, %v437_v4  ;;  %v226_v19 = vand.u32 3, %v225_v52  ;;  %v1307_v7 = vand.u32 2139095040, %v4445_v55 }
 0x18c   :  { %v961_v6 = vsel %vm959_vm1, %v960_v5, %v3512_v49  ;;  %vm332_vm8 = vcmp.eq.s32.totalorder %v330_v29, 0  ;;  %v229_v60 = vxor.u32 2147483648, %v4416_v62  ;;  %v232_v35 = vxor.u32 2147483648, %v4390_v61 }
 0x18d   :  { %v958_v59 = vsel %vm956_vm11, %v3510_v1, %v957_v16  ;;  %v858_v44 = vsel %vm851_vm13, %v854_v32, %v857_v22  ;;  %vm335_vm14 = vcmp.eq.s32.totalorder %v330_v29, 2  ;;  %v1212_v25 = vsel %vm1211_vm2, %v1210_v31, 0  ;;  %v3336_v32 = vld [vmem:[%s6340_s1 + $0x58] sm:$0xff] }
 0x18e   :  { %v962_v40 = vsel %vm955_vm3, %v958_v59, %v961_v6  ;;  %v441_v46 = vsel %vm439_vm9, %v440_v9, %v3504_v12  ;;  %v334_v8 = vsel %vm332_vm8, %v3508_v43, %v333_v33  ;;  %v337_v58 = vsel %vm335_vm14, %v336_v36, %v4418_v56  ;;  %v3333_v56 = vld [vmem:[%s6340_s1 + $0x40] sm:$0xff]  ;;  %v966_v36 = vld [vmem:[%s6341_s2 + $0x10] sm:$0xff] }
 0x18f   :  { %v963_v41 = vsel %vm952_vm15, nan, %v962_v40  ;;  %vm228_vm6 = vcmp.eq.s32.totalorder %v226_v19, 0  ;;  %vm231_vm10 = vcmp.eq.s32.totalorder %v226_v19, 2  ;;  %v1308_v38 = vshrl.u32 %v1307_v7, 23  ;;  %3337 = vmatmul.mubr.msk.f32.vlgmr.msra.gmra.mxu0 %vm30_vm0, %v3333_v56  ;;  %v4526_v7 = vpop.f32.mrf.mxu0 }
 0x190   :  { %1029 = vmatprep.subr.mxu1 %v963_v41  ;;  %v859_v24 = vsel %vm848_vm4, nan, %v858_v44  ;;  %v230_v3 = vsel %vm228_vm6, %v4390_v61, %v229_v60  ;;  %v233_v51 = vsel %vm231_vm10, %v232_v35, %v4416_v62  ;;  %v1214_v54 = vand.u32 31, %v1212_v25  ;;  %v967_v35 = vld [vmem:[%s6341_s2 + $0x18] sm:$0xff] }
 0x191   :  { %1030 = vmatpush1.msra.mxu1 %v859_v24  ;;  %v755_v18 = vsel %vm744_vm12, nan, %v754_v26  ;;  %vm640_vm13 = vweird.f32 %v3930_v50  ;;  %v442_v37 = vsel %vm435_vm5, %v438_v30, %v441_v46  ;;  %vm331_vm3 = vcmp.lt.s32.totalorder %v330_v29, 2 }
 0x192   :  { %1031 = vmatprep.subr.mxu1 %v755_v18  ;;  %v651_v34 = vsel %vm640_vm13, nan, %v4426_v53  ;;  %vm536_vm15 = vweird.f32 %v3782_v39  ;;  %v338_v61 = vsel %vm331_vm3, %v334_v8, %v337_v58  ;;  %vm227_vm11 = vcmp.lt.s32.totalorder %v226_v19, 2  ;;  %v964_v39 = vld [vmem:[%s6341_s2] sm:$0xff] }
 0x193   :  { %1032 = vmatpush1.msra.mxu1 %v651_v34  ;;  %v547_v63 = vsel %vm536_vm15, nan, %v546_v14  ;;  %vm432_vm1 = vweird.f32 %v3699_v23  ;;  %v234_v50 = vsel %vm227_vm11, %v230_v3, %v233_v51  ;;  %v3293_v62 = vadd.s32 4294967169, %v1308_v38  ;;  %v3334_v23 = vld [vmem:[%s6340_s1 + $0x48] sm:$0xff]  ;;  %v3335_v14 = vld [vmem:[%s6340_s1 + $0x50] sm:$0xff] }
 0x194   :  { %1033 = vmatprep.subr.mxu1 %v547_v63  ;;  %v443_v17 = vsel %vm432_vm1, nan, %v442_v37  ;;  %vm328_vm4 = vweird.f32 %v3696_v13  ;;  %v1215_v42 = vsub.s32 32, %v1214_v54  ;;  %v6445_v45 = vmov 0.0  }
 0x195   :  { %2274 = vmatprep.mubr.f32.mxu0 %v6445_v45  ;;  %1034 = vmatpush1.msra.mxu1 %v443_v17  ;;  %v339_v53 = vsel %vm328_vm4, nan, %v338_v61  ;;  %vm224_vm12 = vweird.f32 %v3693_v11  ;;  %vm6392_vm5 = vcmask 261120   ;;  %v1314_v13 = vadd.s32 1, %v3293_v62 }
 0x196   :  { %1035 = vmatprep.subr.mxu1 %v339_v53  ;;  %v235_v12 = vsel %vm224_vm12, nan, %v234_v50  ;;  %3338 = vmatmul.mubr.msk.f32.gmra.mxu0 %vm30_vm0, %v3334_v23  ;;  %v6446_v11 = vmov 2102212464   ;;  %v6447_v28 = vmov 920167782   ;;  %v4500_v20 = vshrl.u32 %v1212_v25, 5 }
 0x197   :  { %1036 = vmatpush1.msra.mxu1 %v235_v12  ;;  %2280 = vmatprep.mubr.f32.mxu0 %v6445_v45  ;;  %v1226_v0 = vshll.u32 %v6446_v11, %v1214_v54  ;;  %v1227_v57 = vshrl.u32 %v6447_v28, %v1215_v42  ;;  %v6377_v48 = vand.u32 2147483647, %v4388_v27  ;;  %v1229_v21 = vshll.u32 %v6447_v28, %v1214_v54 }
 0x198   :  { %3277 = vmatmul.mubr.msk.f32.vlgmr.msra.gmra.mxu1 %vm6392_vm5, %v964_v39  ;;  %v6448_v10 = vmov 1326507024   ;;  %v6449_v47 = vmov 683565275   ;;  %v6450_v31 = vmov 2475754826   ;;  %v1224_v33 = vshrl.u32 %v6446_v11, %v1215_v42 }
 0x199   :  { %1075 = vmatprep.mubr.f32.mxu1 %v6445_v45  ;;  %v1230_v43 = vshrl.u32 %v6448_v10, %v1215_v42  ;;  %v1217_v2 = vshll.u32 %v6449_v47, %v1214_v54  ;;  %v1220_v26 = vshll.u32 %v6450_v31, %v1214_v54  ;;  %v6451_v4 = vmov 2131351028  }
 0x19a   :  { %v1223_v52 = vshll.u32 %v6451_v4, %v1214_v54  ;;  %v1218_v9 = vshrl.u32 %v6450_v31, %v1215_v42  ;;  %v1221_v29 = vshrl.u32 %v6451_v4, %v1215_v42  ;;  %vm1315_vm7 = vcmp.gt.s32.totalorder %v1314_v13, 0  ;;  %3339 = vmatmul.mubr.msk.f32.gmra.mxu0 %vm30_vm0, %v3335_v14 }
 0x19b   :  { %v1228_v1 = vor.u32 %v1227_v57, %v1226_v0  ;;  %2286 = vmatprep.mubr.f32.mxu0 %v6445_v45  ;;  %v1207_v49 = vand.u32 8388607, %v6377_v48  ;;  %v1231_v5 = vor.u32 %v1230_v43, %v1229_v21  ;;  %vm1235_vm9 = vcmp.lt.s32.totalorder %v4500_v20, 4 }
 0x19c   :  { %3278 = vmatmul.mubr.msk.f32.gmra.mxu1 %vm6392_vm5, %v965_v15  ;;  %v1316_v22 = vsel %vm1315_vm7, %v1314_v13, 0  ;;  %v1219_v16 = vor.u32 %v1218_v9, %v1217_v2  ;;  %v1222_v30 = vor.u32 %v1221_v29, %v1220_v26  ;;  %v1225_v19 = vor.u32 %v1224_v33, %v1223_v52  ;;  %v4588_v33 = vpop.f32.mrf.mxu0 }
 0x19d   :  { %1081 = vmatprep.mubr.f32.mxu1 %v6445_v45  ;;  %vm1232_vm2 = vcmp.lt.s32.totalorder %v4500_v20, 1  ;;  %vm1234_vm8 = vcmp.lt.s32.totalorder %v4500_v20, 3  ;;  %v1241_v6 = vsel %vm1235_vm9, %v1228_v1, 920167782  ;;  %v1411_v60 = vand.u32 2139095040, %v4526_v7 }
 0x19e   :  { %3340 = vmatmul.mubr.msk.f32.gmra.mxu0 %vm30_vm0, %v3336_v32  ;;  %v1208_v59 = vor.u32 8388608, %v1207_v49  ;;  %v1245_v44 = vsel %vm1235_vm9, %v1231_v5, 1326507024  ;;  %v1318_v25 = vand.u32 31, %v1316_v22  ;;  %vm1233_vm0 = vcmp.lt.s32.totalorder %v4500_v20, 2 }
 0x19f   :  { %v1240_v40 = vsel %vm1232_vm2, %v1219_v16, %v1222_v30  ;;  %v1242_v46 = vsel %vm1234_vm8, %v1225_v19, %v1241_v6  ;;  %v6376_v8 = vand.u32 2147483647, %v4445_v55  ;;  %v1216_v58 = vshrl.u32 %v6449_v47, %v1215_v42 }
 0x1a0   :  { %3279 = vmatmul.mubr.msk.f32.gmra.mxu1 %vm6392_vm5, %v966_v36  ;;  %v1244_v41 = vsel %vm1232_vm2, %v1222_v30, %v1225_v19  ;;  %v1246_v38 = vsel %vm1234_vm8, %v1228_v1, %v1245_v44  ;;  %v1412_v24 = vshrl.u32 %v1411_v60, 23  ;;  %v1237_v3 = vsel %vm1235_vm9, %v1225_v19, 2102212464 }
 0x1a1   :  { %1087 = vmatprep.mubr.f32.mxu1 %v6445_v45  ;;  %v1248_v51 = vshll.u32 %v1208_v59, 8  ;;  %v1319_v54 = vsub.s32 32, %v1318_v25  ;;  %v1243_v18 = vsel %vm1233_vm0, %v1240_v40, %v1242_v46  ;;  %v1247_v37 = vsel %vm1233_vm0, %v1244_v41, %v1246_v38 }
 0x1a2   :  { %v1236_v56 = vsel %vm1232_vm2, %v1216_v58, %v1219_v16  ;;  %v1238_v34 = vsel %vm1234_vm8, %v1222_v30, %v1237_v3  ;;  %v1311_v61 = vand.u32 8388607, %v6376_v8  ;;  %v3297_v63 = vadd.s32 4294967169, %v1412_v24 }
 0x1a3   :  { %v4566_v50 = vmul.u32.u64.low %v1248_v51, %v1243_v18  ;;  %v4567_v62 = vmul.u32.u64.high %v1248_v51, %v1243_v18, %v4566_v50  ;;  %v1330_v17 = vshll.u32 %v6446_v11, %v1318_v25  ;;  %v1331_v42 = vshrl.u32 %v6447_v28, %v1319_v54 }
 0x1a4   :  { %3280 = vmatmul.mubr.msk.f32.gmra.mxu1 %vm6392_vm5, %v967_v35  ;;  %v4572_v53 = vmul.u32.u64.low %v1248_v51, %v1247_v37  ;;  %v4573_v39 = vmul.u32.u64.high %v1248_v51, %v1247_v37, %v4572_v53  ;;  %v4575_v23 = vshrl.u32 %v1316_v22, 5  ;;  %v1321_v12 = vshll.u32 %v6449_v47, %v1318_v25  ;;  %v4622_v37 = vpop.f32.mrf.mxu0 }
 0x1a5   :  { %2162 = vmatprep.mubr.f32.mxu1 %v6445_v45  ;;  %v1322_v13 = vshrl.u32 %v6450_v31, %v1319_v54  ;;  %v1324_v0 = vshll.u32 %v6450_v31, %v1318_v25  ;;  %v1333_v57 = vshll.u32 %v6447_v28, %v1318_v25  ;;  %v1334_v15 = vshrl.u32 %v6448_v10, %v1319_v54 }
 0x1a6   :  { %v1325_v21 = vshrl.u32 %v6451_v4, %v1319_v54  ;;  %v1327_v43 = vshll.u32 %v6451_v4, %v1318_v25  ;;  %v1328_v2 = vshrl.u32 %v6446_v11, %v1319_v54  ;;  %v1418_v26 = vadd.s32 1, %v3297_v63  ;;  %6452 = vst [vmem:[#allocation5_spill] sm:$0xff] %v4622_v37 }
 0x1a7   :  { %v1332_v52 = vor.u32 %v1331_v42, %v1330_v17  ;;  %vm1339_vm14 = vcmp.lt.s32.totalorder %v4575_v23, 4  ;;  %v1239_v14 = vsel %vm1233_vm0, %v1236_v56, %v1238_v34  ;;  %v1312_v9 = vor.u32 8388608, %v1311_v61 }
 0x1a8   :  { %v1335_v29 = vor.u32 %v1334_v15, %v1333_v57  ;;  %v1323_v1 = vor.u32 %v1322_v13, %v1321_v12  ;;  %v1326_v36 = vor.u32 %v1325_v21, %v1324_v0  ;;  %v1329_v49 = vor.u32 %v1328_v2, %v1327_v43 }
 0x1a9   :  { %vm1419_vm6 = vcmp.gt.s32.totalorder %v1418_v26, 0  ;;  %v1258_v5 = vadd.s32 1, %v4567_v62  ;;  %vm1336_vm10 = vcmp.lt.s32.totalorder %v4575_v23, 1  ;;  %vm1338_vm13 = vcmp.lt.s32.totalorder %v4575_v23, 3 }
 0x1aa   :  { %v1345_v32 = vsel %vm1339_vm14, %v1332_v52, 920167782  ;;  %vm1257_vm3 = vc.u32 %v4573_v39, %v4566_v50  ;;  %v1515_v20 = vand.u32 2139095040, %v4588_v33  ;;  %v1349_v22 = vsel %vm1339_vm14, %v1335_v29, 1326507024 }
 0x1ab   :  { %v1420_v16 = vsel %vm1419_vm6, %v1418_v26, 0  ;;  %v1255_v30 = vmul.u32 %v1248_v51, %v1239_v14  ;;  %vm1337_vm15 = vcmp.lt.s32.totalorder %v4575_v23, 2  ;;  %v1344_v19 = vsel %vm1336_vm10, %v1323_v1, %v1326_v36 }
 0x1ac   :  { %v1346_v6 = vsel %vm1338_vm13, %v1329_v49, %v1345_v32  ;;  %v1259_v60 = vsel %vm1257_vm3, %v1258_v5, %v4567_v62  ;;  %v4606_v35 = vshll.u32 %v1312_v9, 8  ;;  %v1348_v59 = vsel %vm1336_vm10, %v1326_v36, %v1329_v49 }
 0x1ad   :  { %v1350_v44 = vsel %vm1338_vm13, %v1332_v52, %v1349_v22  ;;  %v1422_v25 = vand.u32 31, %v1420_v16  ;;  %v1516_v40 = vshrl.u32 %v1515_v20, 23  ;;  %v1347_v46 = vsel %vm1337_vm15, %v1344_v19, %v1346_v6 }
 0x1ae   :  { %v1260_v58 = vadd.s32 %v1259_v60, %v1255_v30  ;;  %v1351_v41 = vsel %vm1337_vm15, %v1348_v59, %v1350_v44  ;;  %v6375_v38 = vand.u32 2147483647, %v4526_v7  ;;  %v1320_v56 = vshrl.u32 %v6449_v47, %v1319_v54 }
 0x1af   :  { %v4618_v24 = vmul.u32.u64.low %v4606_v35, %v1347_v46  ;;  %v4619_v3 = vmul.u32.u64.high %v4606_v35, %v1347_v46, %v4618_v24  ;;  %v1423_v51 = vsub.s32 32, %v1422_v25  ;;  %v3301_v18 = vadd.s32 4294967169, %v1516_v40 }
 0x1b0   :  { %v1619_v34 = vand.u32 2139095040, %v4622_v37  ;;  %v1261_v61 = vadd.s32 536870912, %v1260_v58  ;;  %v1341_v63 = vsel %vm1339_vm14, %v1329_v49, 2102212464  ;;  %v1415_v42 = vand.u32 8388607, %v6375_v38 }
 0x1b1   :  { %v4629_v62 = vmul.u32.u64.low %v4606_v35, %v1351_v41  ;;  %v4630_v17 = vmul.u32.u64.high %v4606_v35, %v1351_v41, %v4629_v62  ;;  %v1437_v53 = vshll.u32 %v6447_v28, %v1422_v25  ;;  %v1438_v12 = vshrl.u32 %v6448_v10, %v1423_v51 }
 0x1b2   :  { %v1522_v13 = vadd.s32 1, %v3301_v18  ;;  %v1340_v54 = vsel %vm1336_vm10, %v1320_v56, %v1323_v1  ;;  %v1342_v0 = vsel %vm1338_vm13, %v1326_v36, %v1341_v63  ;;  %v1421_v57 = vshrl.u32 %v1420_v16, 5 }
 0x1b3   :  { %v1620_v15 = vshrl.u32 %v1619_v34, 23  ;;  %v4640_v21 = vshrl.u32 %v1261_v61, 30  ;;  %v1434_v43 = vshll.u32 %v6446_v11, %v1422_v25  ;;  %v1435_v2 = vshrl.u32 %v6447_v28, %v1423_v51 }
 0x1b4   :  { %v6374_v26 = vand.u32 2147483647, %v4588_v33  ;;  %v1428_v52 = vshll.u32 %v6450_v31, %v1422_v25  ;;  %v1429_v14 = vshrl.u32 %v6451_v4, %v1423_v51  ;;  %v1431_v9 = vshll.u32 %v6451_v4, %v1422_v25 }
 0x1b5   :  { %6453 = vst [vmem:[#allocation6_spill] sm:$0xff] %v4640_v21  ;;  %v1432_v29 = vshrl.u32 %v6446_v11, %v1423_v51  ;;  %v1343_v1 = vsel %vm1337_vm15, %v1340_v54, %v1342_v0  ;;  %v1362_v36 = vadd.s32 1, %v4619_v3  ;;  %v1439_v49 = vor.u32 %v1438_v12, %v1437_v53  ;;  %v4677_v12 = vpop.f32.mrf.mxu0 }
 0x1b6   :  { %vm1523_vm11 = vcmp.gt.s32.totalorder %v1522_v13, 0  ;;  %v1425_v5 = vshll.u32 %v6449_v47, %v1422_v25  ;;  %v1426_v32 = vshrl.u32 %v6450_v31, %v1423_v51  ;;  %vm1443_vm1 = vcmp.lt.s32.totalorder %v1421_v57, 4 }
 0x1b7   :  { %v3305_v20 = vadd.s32 4294967169, %v1620_v15  ;;  %v1263_v22 = vshll.u32 %v4640_v21, 30  ;;  %vm1361_vm4 = vc.u32 %v4630_v17, %v4618_v24  ;;  %v1416_v16 = vor.u32 8388608, %v1415_v42 }
 0x1b8   :  { %v1436_v30 = vor.u32 %v1435_v2, %v1434_v43  ;;  %v1430_v19 = vor.u32 %v1429_v14, %v1428_v52  ;;  %v1433_v23 = vor.u32 %v1432_v29, %v1431_v9  ;;  %v1524_v6 = vsel %vm1523_vm11, %v1522_v13, 0 }
 0x1b9   :  { %v1626_v60 = vadd.s32 1, %v3305_v20  ;;  %v1359_v59 = vmul.u32 %v4606_v35, %v1343_v1  ;;  %vm1440_vm12 = vcmp.lt.s32.totalorder %v1421_v57, 1  ;;  %vm1442_vm7 = vcmp.lt.s32.totalorder %v1421_v57, 3 }
 0x1ba   :  { %v1453_v44 = vsel %vm1443_vm1, %v1439_v49, 1326507024  ;;  %v1363_v25 = vsel %vm1361_vm4, %v1362_v36, %v4619_v3  ;;  %v1424_v40 = vshrl.u32 %v6449_v47, %v1423_v51  ;;  %v1427_v46 = vor.u32 %v1426_v32, %v1425_v5 }
 0x1bb   :  { %v4661_v41 = vsub.s32 %v1260_v58, %v1263_v22  ;;  %v1445_v18 = vsel %vm1443_vm1, %v1433_v23, 2102212464  ;;  %v1449_v56 = vsel %vm1443_vm1, %v1436_v30, 920167782  ;;  %v1526_v34 = vand.u32 31, %v1524_v6 }
 0x1bc   :  { %vm1441_vm9 = vcmp.lt.s32.totalorder %v1421_v57, 2  ;;  %v1452_v61 = vsel %vm1440_vm12, %v1430_v19, %v1433_v23  ;;  %v1454_v35 = vsel %vm1442_vm7, %v1436_v30, %v1453_v44  ;;  %vm1627_vm2 = vcmp.gt.s32.totalorder %v1626_v60, 0 }
 0x1bd   :  { %v4667_v63 = vadd.s32 %v1363_v25, %v1359_v59  ;;  %v4669_v62 = vshll.u32 %v1416_v16, 8  ;;  %v1519_v3 = vand.u32 8388607, %v6374_v26  ;;  %v1444_v58 = vsel %vm1440_vm12, %v1424_v40, %v1427_v46 }
 0x1be   :  { %v1446_v51 = vsel %vm1442_vm7, %v1430_v19, %v1445_v18  ;;  %v1448_v42 = vsel %vm1440_vm12, %v1427_v46, %v1430_v19  ;;  %v1450_v53 = vsel %vm1442_vm7, %v1433_v23, %v1449_v56  ;;  %v1455_v13 = vsel %vm1441_vm9, %v1452_v61, %v1454_v35 }
 0x1bf   :  { %v4680_v54 = vsub.s32 32, %v1526_v34  ;;  %v1628_v0 = vsel %vm1627_vm2, %v1626_v60, 0  ;;  %v1266_v15 = vsub.s32 0, %v4661_v41  ;;  %v6373_v43 = vand.u32 2147483647, %v4622_v37 }
 0x1c0   :  { %v1365_v2 = vadd.s32 536870912, %v4667_v63  ;;  %v4686_v52 = vsel %vm1441_vm9, %v1444_v58, %v1446_v51  ;;  %v1451_v14 = vsel %vm1441_vm9, %v1448_v42, %v1450_v53  ;;  %v1723_v9 = vand.u32 2139095040, %v4677_v12 }
 0x1c1   :  { %v4691_v29 = vmul.u32.u64.low %v4669_v62, %v1455_v13  ;;  %v4692_v1 = vmul.u32.u64.high %v4669_v62, %v1455_v13, %v4691_v29  ;;  %v1520_v36 = vor.u32 8388608, %v1519_v3  ;;  %v1630_v49 = vand.u32 31, %v1628_v0 }
 0x1c2   :  { %v4694_v5 = vshrl.u32 %v1524_v6, 5  ;;  %v1529_v32 = vshll.u32 %v6449_v47, %v1526_v34  ;;  %v1538_v20 = vshll.u32 %v6446_v11, %v1526_v34  ;;  %v1539_v22 = vshrl.u32 %v6447_v28, %v4680_v54 }
 0x1c3   :  { %v1532_v57 = vshll.u32 %v6450_v31, %v1526_v34  ;;  %v1535_v16 = vshll.u32 %v6451_v4, %v1526_v34  ;;  %v1541_v30 = vshll.u32 %v6447_v28, %v1526_v34  ;;  %v1542_v19 = vshrl.u32 %v6448_v10, %v4680_v54 }
 0x1c4   :  { %v1530_v23 = vshrl.u32 %v6450_v31, %v4680_v54  ;;  %v1533_v6 = vshrl.u32 %v6451_v4, %v4680_v54  ;;  %v1536_v60 = vshrl.u32 %v6446_v11, %v4680_v54  ;;  %v1724_v59 = vshrl.u32 %v1723_v9, 23 }
 0x1c5   :  { %v4712_v44 = vmul.u32.u64.low %v4669_v62, %v1451_v14  ;;  %v4713_v25 = vmul.u32.u64.high %v4669_v62, %v1451_v14, %v4712_v44  ;;  %v4716_v40 = vsub.s32 32, %v1630_v49  ;;  %v4719_v46 = vmin.u32 %v1266_v15, %v4661_v41 }
 0x1c6   :  { %v4721_v18 = vshrl.u32 %v1365_v2, 30  ;;  %v1540_v34 = vor.u32 %v1539_v22, %v1538_v20  ;;  %v1543_v61 = vor.u32 %v1542_v19, %v1541_v30  ;;  %vm1547_vm8 = vcmp.lt.s32.totalorder %v4694_v5, 4 }
 0x1c7   :  { %v4726_v35 = vshll.u32 %v1520_v36, 8  ;;  %v1623_v3 = vand.u32 8388607, %v6373_v43  ;;  %v4730_v58 = vor.u32 %v1530_v23, %v1529_v32  ;;  %v4732_v51 = vor.u32 %v1533_v6, %v1532_v57 }
 0x1c8   :  { %6454 = vst [vmem:[#allocation7_spill] sm:$0xff] %v4721_v18  ;;  %v1537_v42 = vor.u32 %v1536_v60, %v1535_v16  ;;  %v3309_v53 = vadd.s32 4294967169, %v1724_v59  ;;  %v1642_v13 = vshll.u32 %v6446_v11, %v1630_v49  ;;  %v1643_v15 = vshrl.u32 %v6447_v28, %v4716_v40 }
 0x1c9   :  { %v1645_v2 = vshll.u32 %v6447_v28, %v1630_v49  ;;  %v1646_v14 = vshrl.u32 %v6448_v10, %v4716_v40  ;;  %vm1544_vm0 = vcmp.lt.s32.totalorder %v4694_v5, 1  ;;  %vm1546_vm14 = vcmp.lt.s32.totalorder %v4694_v5, 3 }
 0x1ca   :  { %v1553_v9 = vsel %vm1547_vm8, %v1540_v34, 920167782  ;;  %v4744_v29 = vshrl.u32 %v1628_v0, 5  ;;  %v1557_v36 = vsel %vm1547_vm8, %v1543_v61, 1326507024  ;;  %v1633_v32 = vshll.u32 %v6449_v47, %v1630_v49 }
 0x1cb   :  { %v1636_v20 = vshll.u32 %v6450_v31, %v1630_v49  ;;  %v1639_v22 = vshll.u32 %v6451_v4, %v1630_v49  ;;  %v1634_v57 = vshrl.u32 %v6450_v31, %v4716_v40  ;;  %v1637_v16 = vshrl.u32 %v6451_v4, %v4716_v40 }
 0x1cc   :  { %v1640_v30 = vshrl.u32 %v6446_v11, %v4716_v40  ;;  %v1730_v0 = vadd.s32 1, %v3309_v53  ;;  %vm1465_vm6 = vc.u32 %v4692_v1, %v4712_v44  ;;  %v1466_v19 = vadd.s32 1, %v4713_v25 }
 0x1cd   :  { %v1644_v23 = vor.u32 %v1643_v15, %v1642_v13  ;;  %v1647_v6 = vor.u32 %v1646_v14, %v1645_v2  ;;  %vm1545_vm10 = vcmp.lt.s32.totalorder %v4694_v5, 2  ;;  %v1552_v49 = vsel %vm1544_vm0, %v4730_v58, %v4732_v51 }
 0x1ce   :  { %vm1651_vm13 = vcmp.lt.s32.totalorder %v4744_v29, 4  ;;  %vm1731_vm3 = vcmp.gt.s32.totalorder %v1730_v0, 0  ;;  %v1554_v60 = vsel %vm1546_vm14, %v1537_v42, %v1553_v9  ;;  %v1556_v59 = vsel %vm1544_vm0, %v4732_v51, %v1537_v42 }
 0x1cf   :  { %v1558_v61 = vsel %vm1546_vm14, %v1540_v34, %v1557_v36  ;;  %v1732_v53 = vsel %vm1731_vm3, %v1730_v0, 0  ;;  %v4773_v13 = vor.u32 %v1634_v57, %v1633_v32  ;;  %v4775_v15 = vor.u32 %v1637_v16, %v1636_v20 }
 0x1d0   :  { %v1641_v2 = vor.u32 %v1640_v30, %v1639_v22  ;;  %v1734_v14 = vand.u32 31, %v1732_v53  ;;  %vm1648_vm15 = vcmp.lt.s32.totalorder %v4744_v29, 1  ;;  %vm1650_vm11 = vcmp.lt.s32.totalorder %v4744_v29, 3 }
 0x1d1   :  { %v1657_v9 = vsel %vm1651_vm13, %v1644_v23, 920167782  ;;  %v1661_v43 = vsel %vm1651_vm13, %v1647_v6, 1326507024  ;;  %v1555_v34 = vsel %vm1545_vm10, %v1552_v49, %v1554_v60  ;;  %v1559_v36 = vsel %vm1545_vm10, %v1556_v59, %v1558_v61 }
 0x1d2   :  { %v1624_v32 = vor.u32 8388608, %v1623_v3  ;;  %v4787_v20 = vsub.s32 32, %v1734_v14  ;;  %v1467_v22 = vsel %vm1465_vm6, %v1466_v19, %v4713_v25  ;;  %v1528_v57 = vshrl.u32 %v6449_v47, %v4680_v54 }
 0x1d3   :  { %v1549_v16 = vsel %vm1547_vm8, %v1537_v42, 2102212464  ;;  %vm1649_vm1 = vcmp.lt.s32.totalorder %v4744_v29, 2  ;;  %v1656_v3 = vsel %vm1648_vm15, %v4773_v13, %v4775_v15  ;;  %v1658_v30 = vsel %vm1650_vm11, %v1641_v2, %v1657_v9 }
 0x1d4   :  { %v1660_v25 = vsel %vm1648_vm15, %v4775_v15, %v1641_v2  ;;  %v1662_v54 = vsel %vm1650_vm11, %v1644_v23, %v1661_v43  ;;  %v4810_v0 = vmul.u32.u64.low %v4726_v35, %v1559_v36  ;;  %v4811_v42 = vmul.u32.u64.high %v4726_v35, %v1559_v36, %v4810_v0  ;;  %v4831_v36 = vpop.f32.mrf.mxu0 }
 0x1d5   :  { %v4814_v19 = vmul.u32.u64.low %v4726_v35, %v1555_v34  ;;  %v4815_v6 = vmul.u32.u64.high %v4726_v35, %v1555_v34, %v4814_v19  ;;  %v4818_v49 = vshll.u32 %v1624_v32, 8  ;;  %v6384_v60 = vand.u32 2147483647, %v4677_v12 }
 0x1d6   :  { %v1746_v59 = vshll.u32 %v6446_v11, %v1734_v14  ;;  %v1747_v61 = vshrl.u32 %v6447_v28, %v4787_v20  ;;  %v1659_v43 = vsel %vm1649_vm1, %v1656_v3, %v1658_v30  ;;  %v1663_v23 = vsel %vm1649_vm1, %v1660_v25, %v1662_v54 }
 0x1d7   :  { %v4828_v9 = vshrl.u32 %v1732_v53, 5  ;;  %v1749_v34 = vshll.u32 %v6447_v28, %v1734_v14  ;;  %v1737_v32 = vshll.u32 %v6449_v47, %v1734_v14  ;;  %v1740_v0 = vshll.u32 %v6450_v31, %v1734_v14 }
 0x1d8   :  { %v1750_v26 = vshrl.u32 %v6448_v10, %v4787_v20  ;;  %v1827_v38 = vand.u32 2139095040, %v4831_v36  ;;  %v1738_v3 = vshrl.u32 %v6450_v31, %v4787_v20  ;;  %v1741_v53 = vshrl.u32 %v6451_v4, %v4787_v20 }
 0x1d9   :  { %v1743_v30 = vshll.u32 %v6451_v4, %v1734_v14  ;;  %v1744_v25 = vshrl.u32 %v6446_v11, %v4787_v20  ;;  %v1548_v54 = vsel %vm1544_vm0, %v1528_v57, %v4730_v58  ;;  %v1550_v8 = vsel %vm1546_vm14, %v4732_v51, %v1549_v16 }
 0x1da   :  { %v1727_v48 = vand.u32 8388607, %v6384_v60  ;;  %v1748_v56 = vor.u32 %v1747_v61, %v1746_v59  ;;  %v4854_v45 = vmul.u32.u64.low %v4818_v49, %v1659_v43  ;;  %v4855_v37 = vmul.u32.u64.high %v4818_v49, %v1659_v43, %v4854_v45 }
 0x1db   :  { %v1751_v14 = vor.u32 %v1750_v26, %v1749_v34  ;;  %vm1755_vm4 = vcmp.lt.s32.totalorder %v4828_v9, 4  ;;  %v1632_v21 = vshrl.u32 %v6449_v47, %v4716_v40  ;;  %v1828_v51 = vshrl.u32 %v1827_v38, 23 }
 0x1dc   :  { %v4862_v58 = vmul.u32.u64.low %v4818_v49, %v1663_v23  ;;  %v4863_v57 = vmul.u32.u64.high %v4818_v49, %v1663_v23, %v4862_v58  ;;  %v6455_v16 = vmul.u32 %v4669_v62, %v4686_v52  ;;  %v4870_v61 = vor.u32 %v1738_v3, %v1737_v32  ;;  %v971_v3 = vld [vmem:[%s6342_s3 + $0x18] sm:$0xff] }
 0x1dd   :  { %v4872_v43 = vor.u32 %v1741_v53, %v1740_v0  ;;  %v1745_v26 = vor.u32 %v1744_v25, %v1743_v30  ;;  %v1653_v34 = vsel %vm1651_vm13, %v1641_v2, 2102212464  ;;  %vm1752_vm12 = vcmp.lt.s32.totalorder %v4828_v9, 1  ;;  %v969_v53 = vld [vmem:[%s6342_s3 + $0x8] sm:$0xff] }
 0x1de   :  { %v4868_v59 = vadd.s32 %v1467_v22, %v6455_v16  ;;  %vm1754_vm7 = vcmp.lt.s32.totalorder %v4828_v9, 3  ;;  %v1761_v38 = vsel %vm1755_vm4, %v1748_v56, 920167782  ;;  %v1367_v40 = vshll.u32 %v4721_v18, 30 }
 0x1df   :  { %v1551_v62 = vsel %vm1545_vm10, %v1548_v54, %v1550_v8  ;;  %v1728_v52 = vor.u32 8388608, %v1727_v48  ;;  %v1765_v22 = vsel %vm1755_vm4, %v1751_v14, 1326507024  ;;  %vm1569_vm9 = vc.u32 %v4811_v42, %v4814_v19 }
 0x1e0   :  { %v1570_v2 = vadd.s32 1, %v4815_v6  ;;  %v1652_v23 = vsel %vm1648_vm15, %v1632_v21, %v4773_v13  ;;  %v3313_v32 = vadd.s32 4294967169, %v1828_v51  ;;  %v1654_v0 = vsel %vm1650_vm11, %v4775_v15, %v1653_v34 }
 0x1e1   :  { %vm1753_vm2 = vcmp.lt.s32.totalorder %v4828_v9, 2  ;;  %v1760_v48 = vsel %vm1752_vm12, %v4870_v61, %v4872_v43  ;;  %v1762_v8 = vsel %vm1754_vm7, %v1745_v26, %v1761_v38  ;;  %v1469_v5 = vadd.s32 536870912, %v4868_v59 }
 0x1e2   :  { %v1764_v21 = vsel %vm1752_vm12, %v4872_v43, %v1745_v26  ;;  %v1766_v13 = vsel %vm1754_vm7, %v1748_v56, %v1765_v22  ;;  %v1834_v15 = vadd.s32 1, %v3313_v32  ;;  %v1567_v30 = vmul.u32 %v4726_v35, %v1551_v62  ;;  %v970_v22 = vld [vmem:[%s6342_s3 + $0x10] sm:$0xff] }
 0x1e3   :  { %v4914_v25 = vshll.u32 %v1728_v52, 8  ;;  %v6383_v54 = vand.u32 2147483647, %v4831_v36  ;;  %v1571_v56 = vsel %vm1569_vm9, %v1570_v2, %v4815_v6  ;;  %v1655_v14 = vsel %vm1649_vm1, %v1652_v23, %v1654_v0  ;;  %v4936_v52 = vpop.f32.mrf.mxu0  ;;  %v968_v2 = vld [vmem:[%s6342_s3] sm:$0xff] }
 0x1e4   :  { %v1763_v58 = vsel %vm1753_vm2, %v1760_v48, %v1762_v8  ;;  %vm1835_vm8 = vcmp.gt.s32.totalorder %v1834_v15, 0  ;;  %v3608_v51 = vmov 0   ;;  %v1674_v16 = vadd.s32 1, %v4855_v37 }
 0x1e5   :  { %3480 = vset.pattern.permute.xlu1 %v3608_v51  ;;  %3479 = vset.pattern.permute.xlu0 %v3608_v51  ;;  %v1767_v34 = vsel %vm1753_vm2, %v1764_v21, %v1766_v13  ;;  %v1836_v38 = vsel %vm1835_vm8, %v1834_v15, 0  ;;  %v4930_v29 = vsub.s32 %v4667_v63, %v1367_v40  ;;  %v4932_v6 = vshrl.u32 %v1469_v5, 30 }
 0x1e6   :  { %989 = vperm.xlu0 %3479, %v971_v3   ;;  %979 = vperm.xlu1 %3480, %v969_v53   ;;  %vm1673_vm0 = vc.u32 %v4863_v57, %v4854_v45  ;;  %v1838_v62 = vand.u32 31, %v1836_v38  ;;  %v4944_v23 = vadd.s32 %v1571_v56, %v1567_v30  ;;  %v1671_v63 = vmul.u32 %v4818_v49, %v1655_v14 }
 0x1e7   :  { %6456 = vst [vmem:[#allocation8_spill] sm:$0xff] %v4932_v6  ;;  %v4948_v40 = vmul.u32.u64.low %v4914_v25, %v1763_v58  ;;  %v4949_v32 = vmul.u32.u64.high %v4914_v25, %v1763_v58, %v4948_v40  ;;  %v4953_v0 = vmul.u32.u64.low %v4914_v25, %v1767_v34  ;;  %v4954_v48 = vmul.u32.u64.high %v4914_v25, %v1767_v34, %v4953_v0 }
 0x1e8   :  { %v1831_v8 = vand.u32 8388607, %v6383_v54  ;;  %v1839_v5 = vsub.s32 32, %v1838_v62  ;;  %v1675_v21 = vsel %vm1673_vm0, %v1674_v16, %v4855_v37  ;;  %v1736_v13 = vshrl.u32 %v6449_v47, %v4787_v20  ;;  %v3328_v37 = vld [vmem:[%s6342_s3 + $0x38] sm:$0xff]  ;;  %v3327_v20 = vld [vmem:[%s6342_s3 + $0x30] sm:$0xff] }
 0x1e9   :  { %v1757_v49 = vsel %vm1755_vm4, %v1745_v26, 2102212464  ;;  %v1931_v15 = vand.u32 2139095040, %v4936_v52  ;;  %v4964_v3 = vshrl.u32 %v1836_v38, 5  ;;  %v1841_v53 = vshll.u32 %v6449_v47, %v1838_v62 }
 0x1ea   :  { %984 = vperm.xlu0 %3479, %v970_v22   ;;  %974 = vperm.xlu1 %3480, %v968_v2   ;;  %v1842_v30 = vshrl.u32 %v6450_v31, %v1839_v5  ;;  %v1844_v56 = vshll.u32 %v6450_v31, %v1838_v62  ;;  %v1845_v26 = vshrl.u32 %v6451_v4, %v1839_v5  ;;  %v1471_v16 = vshll.u32 %v4932_v6, 30 }
 0x1eb   :  { %v1847_v14 = vshll.u32 %v6451_v4, %v1838_v62  ;;  %v1848_v58 = vshrl.u32 %v6446_v11, %v1839_v5  ;;  %v1850_v51 = vshll.u32 %v6446_v11, %v1838_v62  ;;  %v1573_v34 = vadd.s32 536870912, %v4944_v23 }
 0x1ec   :  { %v1832_v38 = vor.u32 8388608, %v1831_v8  ;;  %v1851_v22 = vshrl.u32 %v6447_v28, %v1839_v5  ;;  %v4982_v2 = vadd.s32 %v1675_v21, %v1671_v63  ;;  %v1756_v0 = vsel %vm1752_vm12, %v1736_v13, %v4870_v61  ;;  %v3326_v63 = vld [vmem:[%s6342_s3 + $0x28] sm:$0xff]  ;;  %v3325_v61 = vld [vmem:[%s6342_s3 + $0x20] sm:$0xff] }
 0x1ed   :  { %v1758_v54 = vsel %vm1754_vm7, %v4872_v43, %v1757_v49  ;;  %v1932_v60 = vshrl.u32 %v1931_v15, 23  ;;  %v1843_v35 = vor.u32 %v1842_v30, %v1841_v53  ;;  %v1846_v6 = vor.u32 %v1845_v26, %v1844_v56  ;;  %v3142_v30 = vld [vmem:[%s6344_s5] sm:$0xf] }
 0x1ee   :  { %2083 = vperm.xlu0 %3479, %v3328_v37   ;;  %2078 = vperm.xlu1 %3480, %v3327_v20   ;;  %v1852_v18 = vor.u32 %v1851_v22, %v1850_v51  ;;  %v1853_v8 = vshll.u32 %v6447_v28, %v1838_v62  ;;  %v1778_v21 = vadd.s32 1, %v4949_v32  ;;  %v1849_v13 = vor.u32 %v1848_v58, %v1847_v14 }
 0x1ef   :  { %v1854_v43 = vshrl.u32 %v6448_v10, %v1839_v5  ;;  %vm1856_vm14 = vcmp.lt.s32.totalorder %v4964_v3, 1  ;;  %v1759_v49 = vsel %vm1753_vm2, %v1756_v0, %v1758_v54  ;;  %vm1777_vm6 = vc.u32 %v4954_v48, %v4948_v40 }
 0x1f0   :  { %v1840_v62 = vshrl.u32 %v6449_v47, %v1839_v5  ;;  %vm1858_vm10 = vcmp.lt.s32.totalorder %v4964_v3, 3  ;;  %vm1857_vm13 = vcmp.lt.s32.totalorder %v4964_v3, 2  ;;  %vm1859_vm3 = vcmp.lt.s32.totalorder %v4964_v3, 4 }
 0x1f1   :  { %v1855_v15 = vor.u32 %v1854_v43, %v1853_v8  ;;  %v1872_v53 = vshll.u32 %v1832_v38, 8  ;;  %v1861_v9 = vsel %vm1859_vm3, %v1849_v13, 2102212464  ;;  %v1864_v54 = vsel %vm1856_vm14, %v1843_v35, %v1846_v6 }
 0x1f2   :  { %2073 = vperm.xlu0 %3479, %v3326_v63   ;;  %2068 = vperm.xlu1 %3480, %v3325_v61   ;;  %v1865_v5 = vsel %vm1859_vm3, %v1852_v18, 920167782  ;;  %v3317_v56 = vadd.s32 4294967169, %v1932_v60  ;;  %v1775_v37 = vmul.u32 %v4914_v25, %v1759_v49  ;;  %v1779_v20 = vsel %vm1777_vm6, %v1778_v21, %v4949_v32 }
 0x1f3   :  { %v1866_v26 = vsel %vm1858_vm10, %v1849_v13, %v1865_v5  ;;  %v1868_v14 = vsel %vm1856_vm14, %v1846_v6, %v1849_v13  ;;  %v1860_v58 = vsel %vm1856_vm14, %v1840_v62, %v1843_v35  ;;  %v1862_v51 = vsel %vm1858_vm10, %v1846_v6, %v1861_v9 }
 0x1f4   :  { %v1867_v38 = vsel %vm1857_vm13, %v1864_v54, %v1866_v26  ;;  %v1869_v60 = vsel %vm1859_vm3, %v1855_v15, 1326507024  ;;  %v1370_v25 = vsub.s32 0, %v4930_v29  ;;  %v5039_v35 = vsub.s32 %v4868_v59, %v1471_v16 }
 0x1f5   :  { %v1870_v32 = vsel %vm1858_vm10, %v1852_v18, %v1869_v60  ;;  %v5034_v22 = vmul.u32.u64.low %v1872_v53, %v1867_v38  ;;  %v5035_v0 = vmul.u32.u64.high %v1872_v53, %v1867_v38, %v5034_v22  ;;  %v5041_v6 = vshrl.u32 %v1573_v34, 30 }
 0x1f6   :  { %3145 = vperm.xlu0 %3479, %v3142_v30   ;;  %v1871_v8 = vsel %vm1857_vm13, %v1868_v14, %v1870_v32  ;;  %v1938_v63 = vadd.s32 1, %v3317_v56  ;;  %v1780_v61 = vadd.s32 %v1779_v20, %v1775_v37  ;;  %v1863_v21 = vsel %vm1857_vm13, %v1860_v58, %v1862_v51 }
 0x1f7   :  { %v5047_v13 = vmul.u32.u64.low %v1872_v53, %v1871_v8  ;;  %v5048_v18 = vmul.u32.u64.high %v1872_v53, %v1871_v8, %v5047_v13  ;;  %v1677_v43 = vadd.s32 536870912, %v4982_v2  ;;  %v6389_v49 = vand.u32 2147483647, %v4936_v52 }
 0x1f8   :  { %vm1939_vm15 = vcmp.gt.s32.totalorder %v1938_v63, 0  ;;  %v1882_v59 = vadd.s32 1, %v5035_v0  ;;  %v6457_v34 = vclz %v4719_v46  ;;  %v1879_v15 = vmul.u32 %v1872_v53, %v1863_v21 }
 0x1f9   :  { %v1940_v16 = vsel %vm1939_vm15, %v1938_v63, 0  ;;  %v3294_v3 = vmin.u32 %v1370_v25, %v4930_v29  ;;  %v1474_v9 = vsub.s32 0, %v5039_v35  ;;  %v1575_v54 = vshll.u32 %v5041_v6, 30 }
 0x1fa   :  { %v5055_v62 = vadd.s32 4294967294, %v6457_v34  ;;  %v1942_v30 = vand.u32 31, %v1940_v16  ;;  %v1781_v5 = vadd.s32 536870912, %v1780_v61  ;;  %v5060_v56 = vshrl.u32 %v1677_v43, 30 }
 0x1fb   :  { %vm1881_vm11 = vc.u32 %v5048_v18, %v5034_v22  ;;  %v1935_v37 = vand.u32 8388607, %v6389_v49  ;;  %v1941_v51 = vshrl.u32 %v1940_v16, 5  ;;  %v5073_v25 = vsub.s32 %v4944_v23, %v1575_v54 }
 0x1fc   :  { %v1943_v46 = vsub.s32 32, %v1942_v30  ;;  %v1883_v20 = vsel %vm1881_vm11, %v1882_v59, %v5035_v0  ;;  %v1945_v53 = vshll.u32 %v6449_v47, %v1942_v30  ;;  %v1948_v26 = vshll.u32 %v6450_v31, %v1942_v30 }
 0x1fd   :  { %v1951_v14 = vshll.u32 %v6451_v4, %v1942_v30  ;;  %v1884_v58 = vadd.s32 %v1883_v20, %v1879_v15  ;;  %v5075_v32 = vshrl.u32 %v1781_v5, 30  ;;  %v1954_v0 = vshll.u32 %v6446_v11, %v1942_v30 }
 0x1fe   :  { %v1946_v38 = vshrl.u32 %v6450_v31, %v1943_v46  ;;  %v1949_v60 = vshrl.u32 %v6451_v4, %v1943_v46  ;;  %v1952_v8 = vshrl.u32 %v6446_v11, %v1943_v46  ;;  %v1679_v63 = vshll.u32 %v5060_v56, 30 }
 0x1ff   :  { %v1885_v21 = vadd.s32 536870912, %v1884_v58  ;;  %v1936_v13 = vor.u32 8388608, %v1935_v37  ;;  %v1955_v43 = vshrl.u32 %v6447_v28, %v1943_v46  ;;  %v1957_v15 = vshll.u32 %v6447_v28, %v1942_v30 }
 0x200   :  { %v1947_v59 = vor.u32 %v1946_v38, %v1945_v53  ;;  %v1950_v16 = vor.u32 %v1949_v60, %v1948_v26  ;;  %v1953_v34 = vor.u32 %v1952_v8, %v1951_v14  ;;  %v1958_v54 = vshrl.u32 %v6448_v10, %v1943_v46 }
 0x201   :  { %v5082_v20 = vshrl.u32 %v1885_v21, 30  ;;  %v1956_v23 = vor.u32 %v1955_v43, %v1954_v0  ;;  %vm1960_vm1 = vcmp.lt.s32.totalorder %v1941_v51, 1  ;;  %v1783_v5 = vshll.u32 %v5075_v32, 30 }
 0x202   :  { %v1944_v49 = vshrl.u32 %v6449_v47, %v1943_v46  ;;  %vm1962_vm4 = vcmp.lt.s32.totalorder %v1941_v51, 3  ;;  %vm1963_vm12 = vcmp.lt.s32.totalorder %v1941_v51, 4  ;;  %v5088_v37 = vsub.s32 %v4982_v2, %v1679_v63 }
 0x203   :  { %v1959_v53 = vor.u32 %v1958_v54, %v1957_v15  ;;  %vm1961_vm7 = vcmp.lt.s32.totalorder %v1941_v51, 2  ;;  %v1976_v26 = vshll.u32 %v1936_v13, 8  ;;  %v1887_v30 = vshll.u32 %v5082_v20, 30 }
 0x204   :  { %v1965_v14 = vsel %vm1963_vm12, %v1953_v34, 2102212464  ;;  %v1968_v38 = vsel %vm1960_vm1, %v1947_v59, %v1950_v16  ;;  %v1969_v60 = vsel %vm1963_vm12, %v1956_v23, 920167782  ;;  %vm3292_vm9 = vcmp.lt.s32.totalorder %v5055_v62, 0 }
 0x205   :  { %v1372_v8 = vclz %v3294_v3  ;;  %v1578_v46 = vsub.s32 0, %v5073_v25  ;;  %v1970_v0 = vsel %vm1962_vm4, %v1953_v34, %v1969_v60  ;;  %v5097_v2 = vsub.s32 %v1780_v61, %v1783_v5 }
 0x206   :  { %v1964_v63 = vsel %vm1960_vm1, %v1944_v49, %v1947_v59  ;;  %v1966_v21 = vsel %vm1962_vm4, %v1950_v16, %v1965_v14  ;;  %v1971_v13 = vsel %vm1961_vm7, %v1968_v38, %v1970_v0  ;;  %v3298_v43 = vmin.u32 %v1474_v9, %v5039_v35 }
 0x207   :  { %v1682_v15 = vsub.s32 0, %v5088_v37  ;;  %v1972_v54 = vsel %vm1960_vm1, %v1950_v16, %v1953_v34  ;;  %v1973_v3 = vsel %vm1963_vm12, %v1959_v53, 1326507024  ;;  %v5106_v10 = vsub.s32 %v1884_v58, %v1887_v30 }
 0x208   :  { %v1974_v60 = vsel %vm1962_vm4, %v1956_v23, %v1973_v3  ;;  %v5109_v61 = vmul.u32.u64.low %v1976_v26, %v1971_v13  ;;  %v5110_v5 = vmul.u32.u64.high %v1976_v26, %v1971_v13, %v5109_v61  ;;  %v3295_v49 = vadd.s32 4294967294, %v1372_v8 }
 0x209   :  { %v3302_v59 = vmin.u32 %v1578_v46, %v5073_v25  ;;  %v1967_v14 = vsel %vm1961_vm7, %v1964_v63, %v1966_v21  ;;  %v1975_v9 = vsel %vm1961_vm7, %v1972_v54, %v1974_v60  ;;  %v1271_v16 = vsel %vm3292_vm9, 0, %v5055_v62 }
 0x20a   :  { %v1786_v58 = vsub.s32 0, %v5097_v2  ;;  %v5120_v34 = vmul.u32.u64.low %v1976_v26, %v1975_v9  ;;  %v5121_v53 = vmul.u32.u64.high %v1976_v26, %v1975_v9, %v5120_v34  ;;  %v1476_v23 = vclz %v3298_v43 }
 0x20b   :  { %v3306_v30 = vmin.u32 %v1682_v15, %v5088_v37  ;;  %v1890_v38 = vsub.s32 0, %v5106_v10  ;;  %v1983_v8 = vmul.u32 %v1976_v26, %v1967_v14  ;;  %v1986_v46 = vadd.s32 1, %v5110_v5 }
 0x20c   :  { %v1276_v0 = vsub.s32 4294967266, %v1271_v16  ;;  %vm3296_vm2 = vcmp.lt.s32.totalorder %v3295_v49, 0  ;;  %v1580_v51 = vclz %v3302_v59  ;;  %v3310_v63 = vmin.u32 %v1786_v58, %v5097_v2 }
 0x20d   :  { %vm1985_vm8 = vc.u32 %v5121_v53, %v5109_v61  ;;  %v3299_v62 = vadd.s32 4294967294, %v1476_v23  ;;  %v1375_v13 = vsel %vm3296_vm2, 0, %v3295_v49  ;;  %v1684_v43 = vclz %v3306_v30 }
 0x20e   :  { %v1987_v21 = vsel %vm1985_vm8, %v1986_v46, %v5110_v5  ;;  %v3314_v15 = vmin.u32 %v1890_v38, %v5106_v10  ;;  %v1256_v26 = vadd.s32 %v4566_v50, %v4573_v39  ;;  %v1272_v3 = vsub.s32 32, %v1271_v16 }
 0x20f   :  { %v1988_v54 = vadd.s32 %v1987_v21, %v1983_v8  ;;  %v1277_v60 = vadd.s32 127, %v1276_v0  ;;  %v3303_v14 = vadd.s32 4294967294, %v1580_v51  ;;  %v1788_v59 = vclz %v3310_v63 }
 0x210   :  { %v1380_v58 = vsub.s32 4294967266, %v1375_v13  ;;  %vm3300_vm0 = vcmp.lt.s32.totalorder %v3299_v62, 0  ;;  %v3307_v34 = vadd.s32 4294967294, %v1684_v43  ;;  %v1892_v4 = vclz %v3314_v15 }
 0x211   :  { %v1989_v9 = vadd.s32 536870912, %v1988_v54  ;;  %v1273_v5 = vshll.u32 %v4661_v41, %v1271_v16  ;;  %v1274_v49 = vshrl.u32 %v1256_v26, %v1272_v3  ;;  %v1278_v30 = vshll.u32 %v1277_v60, 23 }
 0x212   :  { %vm3304_vm14 = vcmp.lt.s32.totalorder %v3303_v14, 0  ;;  %v1479_v38 = vsel %vm3300_vm0, 0, %v3299_v62  ;;  %v3311_v8 = vadd.s32 4294967294, %v1788_v59  ;;  %v1360_v39 = vadd.s32 %v4618_v24, %v4630_v17 }
 0x213   :  { %v5133_v23 = vshrl.u32 %v1989_v9, 30  ;;  %v1376_v46 = vsub.s32 32, %v1375_v13  ;;  %v1381_v0 = vadd.s32 127, %v1380_v58  ;;  %v1583_v51 = vsel %vm3304_vm14, 0, %v3303_v14 }
 0x214   :  { %vm3308_vm6 = vcmp.lt.s32.totalorder %v3307_v34, 0  ;;  %v3315_v63 = vadd.s32 4294967294, %v1892_v4  ;;  %v5141_v43 = vor.u32 %v1274_v49, %v1273_v5  ;;  %v1279_v41 = vor.u32 4788187, %v1278_v30 }
 0x215   :  { %v1991_v50 = vshll.u32 %v5133_v23, 30  ;;  %v1484_v16 = vsub.s32 4294967266, %v1479_v38  ;;  %v1377_v15 = vshll.u32 %v4930_v29, %v1375_v13  ;;  %vm3312_vm10 = vcmp.lt.s32.totalorder %v3311_v8, 0 }
 0x216   :  { %v1378_v26 = vshrl.u32 %v1360_v39, %v1376_v46  ;;  %v1382_v3 = vshll.u32 %v1381_v0, 23  ;;  %v1588_v60 = vsub.s32 4294967266, %v1583_v51  ;;  %v1687_v24 = vsel %vm3308_vm6, 0, %v3307_v34 }
 0x217   :  { %v5139_v21 = vsub.s32 %v1988_v54, %v1991_v50  ;;  %v1464_v17 = vadd.s32 %v4712_v44, %v4692_v1  ;;  %v1480_v14 = vsub.s32 32, %v1479_v38  ;;  %vm3316_vm13 = vcmp.lt.s32.totalorder %v3315_v63, 0 }
 0x218   :  { %v1280_v54 = vand.u32 2147483647, %v1279_v41  ;;  %v1282_v59 = vcvt.s32.f32 %v5141_v43  ;;  %v1485_v9 = vadd.s32 127, %v1484_v16  ;;  %v1791_v58 = vsel %vm3312_vm10, 0, %v3311_v8 }
 0x219   :  { %v1994_v62 = vsub.s32 0, %v5139_v21  ;;  %v1568_v29 = vadd.s32 %v4814_v19, %v4811_v42  ;;  %v1584_v13 = vsub.s32 32, %v1583_v51  ;;  %v1692_v5 = vsub.s32 4294967266, %v1687_v24 }
 0x21a   :  { %v1379_v30 = vor.u32 %v1378_v26, %v1377_v15  ;;  %v1383_v34 = vor.u32 4788187, %v1382_v3  ;;  %v1589_v50 = vadd.s32 127, %v1588_v60  ;;  %v1895_v39 = vsel %vm3316_vm13, 0, %v3315_v63 }
 0x21b   :  { %v3318_v4 = vmin.u32 %v1994_v62, %v5139_v21  ;;  %v1481_v1 = vshll.u32 %v5039_v35, %v1479_v38  ;;  %v1482_v44 = vshrl.u32 %v1464_v17, %v1480_v14  ;;  %v1796_v46 = vsub.s32 4294967266, %v1791_v58 }
 0x21c   :  { %v1486_v41 = vshll.u32 %v1485_v9, 23  ;;  %v1585_v43 = vshll.u32 %v5073_v25, %v1583_v51  ;;  %v1672_v8 = vadd.s32 %v4854_v45, %v4863_v57  ;;  %v1688_v16 = vsub.s32 32, %v1687_v24 }
 0x21d   :  { %v1996_v49 = vclz %v3318_v4  ;;  %v1586_v42 = vshrl.u32 %v1568_v29, %v1584_v13  ;;  %v1693_v19 = vadd.s32 127, %v1692_v5  ;;  %v1900_v62 = vsub.s32 4294967266, %v1895_v39 }
 0x21e   :  { %v1590_v15 = vshll.u32 %v1589_v50, 23  ;;  %v1776_v63 = vadd.s32 %v4948_v40, %v4954_v48  ;;  %v1792_v26 = vsub.s32 32, %v1791_v58  ;;  %v1384_v38 = vand.u32 2147483647, %v1383_v34 }
 0x21f   :  { %v3319_v0 = vadd.s32 4294967294, %v1996_v49  ;;  %v1386_v3 = vcvt.s32.f32 %v1379_v30  ;;  %v1797_v60 = vadd.s32 127, %v1796_v46  ;;  %v1483_v14 = vor.u32 %v1482_v44, %v1481_v1 }
 0x220   :  { %v1487_v25 = vor.u32 4788187, %v1486_v41  ;;  %v1689_v51 = vshll.u32 %v5088_v37, %v1687_v24  ;;  %v1690_v45 = vshrl.u32 %v1672_v8, %v1688_v16  ;;  %v1694_v57 = vshll.u32 %v1693_v19, 23 }
 0x221   :  { %vm3320_vm3 = vcmp.lt.s32.totalorder %v3319_v0, 0  ;;  %v1880_v4 = vadd.s32 %v5034_v22, %v5048_v18  ;;  %v1896_v9 = vsub.s32 32, %v1895_v39  ;;  %v1901_v29 = vadd.s32 127, %v1900_v62 }
 0x222   :  { %v1999_v35 = vsel %vm3320_vm3, 0, %v3319_v0  ;;  %v1587_v13 = vor.u32 %v1586_v42, %v1585_v43  ;;  %v1591_v5 = vor.u32 4788187, %v1590_v15  ;;  %v1793_v40 = vshll.u32 %v5097_v2, %v1791_v58 }
 0x223   :  { %v2004_v17 = vsub.s32 4294967266, %v1999_v35  ;;  %v1794_v48 = vshrl.u32 %v1776_v63, %v1792_v26  ;;  %v1798_v49 = vshll.u32 %v1797_v60, 23  ;;  %v1984_v30 = vadd.s32 %v5109_v61, %v5121_v53 }
 0x224   :  { %v2000_v34 = vsub.s32 32, %v1999_v35  ;;  %v1283_v1 = vmul.f32 %v1282_v59, %v1280_v54  ;;  %v1488_v37 = vand.u32 2147483647, %v1487_v25  ;;  %v1490_v24 = vcvt.s32.f32 %v1483_v14 }
 0x225   :  { %v2005_v50 = vadd.s32 127, %v2004_v17  ;;  %v1691_v44 = vor.u32 %v1690_v45, %v1689_v51  ;;  %v1695_v46 = vor.u32 4788187, %v1694_v57  ;;  %v1897_v22 = vshll.u32 %v5106_v10, %v1895_v39 }
 0x226   :  { %v1898_v18 = vshrl.u32 %v1880_v4, %v1896_v9  ;;  %v1902_v0 = vshll.u32 %v1901_v29, 23  ;;  %v1387_v41 = vmul.f32 %v1386_v3, %v1384_v38  ;;  %v1592_v43 = vand.u32 2147483647, %v1591_v5 }
 0x227   :  { %v1594_v8 = vcvt.s32.f32 %v1587_v13  ;;  %v1795_v2 = vor.u32 %v1794_v48, %v1793_v40  ;;  %v1799_v58 = vor.u32 4788187, %v1798_v49  ;;  %v2001_v16 = vshll.u32 %v5139_v21, %v1999_v35 }
 0x228   :  { %v2002_v42 = vshrl.u32 %v1984_v30, %v2000_v34  ;;  %v2006_v61 = vshll.u32 %v2005_v50, 23  ;;  %vm1202_vm15 = vcmp.lt.s32.totalorder %v4388_v27, 0  ;;  %v1284_v53 = vxor.u32 2147483648, %v1283_v1 }
 0x229   :  { %v1491_v54 = vmul.f32 %v1490_v24, %v1488_v37  ;;  %v1696_v59 = vand.u32 2147483647, %v1695_v46  ;;  %v1698_v19 = vcvt.s32.f32 %v1691_v44  ;;  %v1899_v62 = vor.u32 %v1898_v18, %v1897_v22  ;;  %v6471_v22 = vld [vmem:[#allocation5_spill] sm:$0xff] }
 0x22a   :  { %v1903_v15 = vor.u32 4788187, %v1902_v0  ;;  %vm1306_vm11 = vcmp.lt.s32.totalorder %v4445_v55, 0  ;;  %v1388_v10 = vxor.u32 2147483648, %v1387_v41  ;;  %v1595_v39 = vmul.f32 %v1594_v8, %v1592_v43 }
 0x22b   :  { %v1800_v63 = vand.u32 2147483647, %v1799_v58  ;;  %v1802_v26 = vcvt.s32.f32 %v1795_v2  ;;  %v2003_v38 = vor.u32 %v2002_v42, %v2001_v16  ;;  %v2007_v3 = vor.u32 4788187, %v2006_v61 }
 0x22c   :  { %v6458_v21 = vand.u32 2147483647, %v4388_v27  ;;  %v1285_v60 = vsel %vm1202_vm15, %v1284_v53, %v1283_v1  ;;  %v1492_v17 = vxor.u32 2147483648, %v1491_v54  ;;  %v1699_v14 = vmul.f32 %v1698_v19, %v1696_v59  ;;  %v6467_v1 = vld [vmem:[#allocation6_spill] sm:$0xff] }
 0x22d   :  { %v1904_v25 = vand.u32 2147483647, %v1903_v15  ;;  %v1906_v51 = vcvt.s32.f32 %v1899_v62  ;;  %v6461_v45 = vand.u32 2147483647, %v4445_v55  ;;  %v1389_v4 = vsel %vm1306_vm11, %v1388_v10, %v1387_v41  ;;  %v6478_v62 = vld [vmem:[#allocation7_spill] sm:$0xff] }
 0x22e   :  { %vm5169_vm1 = vcmp.le.f32.partialorder %v6458_v21, 0.7853982  ;;  %vm1410_vm12 = vcmp.lt.s32.totalorder %v4526_v7, 0  ;;  %v1596_v9 = vxor.u32 2147483648, %v1595_v39  ;;  %v1803_v29 = vmul.f32 %v1802_v26, %v1800_v63 }
 0x22f   :  { %vm5177_vm4 = vcmp.le.f32.partialorder %v6461_v45, 0.7853982  ;;  %v2008_v13 = vand.u32 2147483647, %v2007_v3  ;;  %v2010_v5 = vcvt.s32.f32 %v2003_v38  ;;  %v1288_v40 = vsel %vm5169_vm1, %v4388_v27, %v1285_v60 }
 0x230   :  { %vm1514_vm7 = vcmp.lt.s32.totalorder %v4588_v33, 0  ;;  %v6464_v48 = vand.u32 2147483647, %v4526_v7  ;;  %v1493_v30 = vsel %vm1410_vm12, %v1492_v17, %v1491_v54  ;;  %v1700_v34 = vxor.u32 2147483648, %v1699_v14 }
 0x231   :  { %v1907_v50 = vmul.f32 %v1906_v51, %v1904_v25  ;;  %v1286_v37 = vsub.s32 4, %v6467_v1  ;;  %v1392_v24 = vsel %vm5177_vm4, %v4445_v55, %v1389_v4  ;;  %v6468_v44 = vand.u32 2147483647, %v4588_v33 }
 0x232   :  { %vm5190_vm9 = vcmp.le.f32.partialorder %v6464_v48, 0.7853982  ;;  %vm1618_vm8 = vcmp.lt.s32.totalorder %v6471_v22, 0  ;;  %3513 = vcosq.f32 %v1288_v40  ;;  %v1597_v18 = vsel %vm1514_vm7, %v1596_v9, %v1595_v39  ;;  %v6479_v39 = vld [vmem:[#allocation8_spill] sm:$0xff] }
 0x233   :  { %vm5202_vm2 = vcmp.le.f32.partialorder %v6468_v44, 0.7853982  ;;  %v1804_v0 = vxor.u32 2147483648, %v1803_v29  ;;  %v2011_v41 = vmul.f32 %v2010_v5, %v2008_v13  ;;  %3515 = vsinq.f32 %v1288_v40 }
 0x234   :  { %v1496_v43 = vsel %vm5190_vm9, %v4526_v7, %v1493_v30  ;;  %vm1722_vm0 = vcmp.lt.s32.totalorder %v4677_v12, 0  ;;  %3517 = vcosq.f32 %v1392_v24  ;;  %v6472_v8 = vand.u32 2147483647, %v6471_v22 }
 0x235   :  { %v1701_v58 = vsel %vm1618_vm8, %v1700_v34, %v1699_v14  ;;  %v1908_v16 = vxor.u32 2147483648, %v1907_v50  ;;  %v1287_v42 = vsel %vm1202_vm15, %v1286_v37, %v6467_v1  ;;  %3519 = vsinq.f32 %v1392_v24 }
 0x236   :  { %vm5215_vm14 = vcmp.le.f32.partialorder %v6472_v8, 0.7853982  ;;  %v1600_v61 = vsel %vm5202_vm2, %v4588_v33, %v1597_v18  ;;  %vm1826_vm6 = vcmp.lt.s32.totalorder %v4831_v36, 0  ;;  %3521 = vcosq.f32 %v1496_v43 }
 0x237   :  { %v6475_v53 = vand.u32 2147483647, %v4677_v12  ;;  %v1805_v59 = vsel %vm1722_vm0, %v1804_v0, %v1803_v29  ;;  %v2012_v19 = vxor.u32 2147483648, %v2011_v41  ;;  %v1390_v15 = vsub.s32 4, %v6478_v62 }
 0x238   :  { %3523 = vsinq.f32 %v1496_v43  ;;  %v1704_v10 = vsel %vm5215_vm14, %v6471_v22, %v1701_v58  ;;  %vm1930_vm13 = vcmp.lt.s32.totalorder %v4936_v52, 0  ;;  %v1494_v63 = vsub.s32 4, %v6479_v39 }
 0x239   :  { %vm5230_vm10 = vcmp.le.f32.partialorder %v6475_v53, 0.7853982  ;;  %3525 = vcosq.f32 %v1600_v61  ;;  %v6480_v26 = vand.u32 2147483647, %v4831_v36  ;;  %v1909_v3 = vsel %vm1826_vm6, %v1908_v16, %v1907_v50 }
 0x23a   :  { %v2040_v21 = vlaneseq  ;;  %v1598_v60 = vsub.s32 4, %v5041_v6  ;;  %3527 = vsinq.f32 %v1600_v61  ;;  %v1808_v17 = vsel %vm5230_vm10, %v4677_v12, %v1805_v59 }
 0x23b   :  { %vm5244_vm3 = vcmp.le.f32.partialorder %v6480_v26, 0.7853982  ;;  %v1289_v14 = vsel %vm5169_vm1, 0, %v1287_v42  ;;  %3529 = vcosq.f32 %v1704_v10  ;;  %v6483_v25 = vand.u32 2147483647, %v4936_v52 }
 0x23c   :  { %v2013_v45 = vsel %vm1930_vm13, %v2012_v19, %v2011_v41  ;;  %v1391_v4 = vsel %vm1306_vm11, %v1390_v15, %v6478_v62  ;;  %3531 = vsinq.f32 %v1704_v10  ;;  %v1912_v35 = vsel %vm5244_vm3, %v4831_v36, %v1909_v3 }
 0x23d   :  { %vm5258_vm15 = vcmp.le.f32.partialorder %v6483_v25, 0.7853982  ;;  %v1495_v9 = vsel %vm1410_vm12, %v1494_v63, %v6479_v39  ;;  %3533 = vcosq.f32 %v1808_v17  ;;  %v1599_v29 = vsel %vm1514_vm7, %v1598_v60, %v5041_v6  ;;  %v3577_v39 = vld [vmem:[%s6339_s0 + $0x8] sm:$0xff] }
 0x23e   :  { %3535 = vsinq.f32 %v1808_v17  ;;  %v2016_v13 = vsel %vm5258_vm15, %v4936_v52, %v2013_v45  ;;  %v1293_v5 = vadd.s32 3, %v1289_v14  ;;  %v5279_v40 = vshrl.u32 %v2040_v21, 7 }
 0x23f   :  { %v1393_v48 = vsel %vm5177_vm4, 0, %v1391_v4  ;;  %3537 = vcosq.f32 %v1912_v35  ;;  %v3514_v30 = vpop.eup %3513  ;;  %v1497_v34 = vsel %vm5190_vm9, 0, %v1495_v9  ;;  %v1702_v50 = vsub.s32 4, %v5060_v56 }
 0x240   :  { %v1806_v6 = vsub.s32 4, %v5075_v32  ;;  %3539 = vsinq.f32 %v1912_v35  ;;  %v3516_v1 = vpop.eup %3515  ;;  %v1601_v37 = vsel %vm5202_vm2, 0, %v1599_v29  ;;  %v1910_v24 = vsub.s32 4, %v5082_v20 }
 0x241   :  { %v2014_v44 = vsub.s32 4, %v5133_v23  ;;  %3541 = vcosq.f32 %v2016_v13  ;;  %v5291_v57 = vpop.eup %3517  ;;  %v1294_v18 = vand.u32 3, %v1293_v5  ;;  %v1397_v49 = vadd.s32 3, %v1393_v48 }
 0x242   :  { %3543 = vsinq.f32 %v2016_v13  ;;  %v3520_v0 = vpop.eup %3519  ;;  %v1501_v41 = vadd.s32 3, %v1497_v34  ;;  %v2042_v8 = vsub.s32 3, %v5279_v40  ;;  %v1703_v46 = vsel %vm1618_vm8, %v1702_v50, %v5060_v56 }
 0x243   :  { %v5293_v43 = vpop.eup %3521  ;;  %v1807_v58 = vsel %vm1722_vm0, %v1806_v6, %v5075_v32  ;;  %v1605_v42 = vadd.s32 3, %v1601_v37  ;;  %v1911_v53 = vsel %vm1826_vm6, %v1910_v24, %v5082_v20  ;;  %v2015_v59 = vsel %vm1930_vm13, %v2014_v44, %v5133_v23  ;;  %v3578_v24 = vld [vmem:[%s6339_s0] sm:$0xff] }
 0x244   :  { %v1297_v19 = vxor.u32 2147483648, %v3516_v1  ;;  %v1300_v62 = vxor.u32 2147483648, %v3514_v30  ;;  %vm1296_vm11 = vcmp.eq.s32.totalorder %v1294_v18, 0  ;;  %vm1299_vm1 = vcmp.eq.s32.totalorder %v1294_v18, 2 }
 0x245   :  { %v5304_v61 = vpop.eup %3523  ;;  %v5314_v32 = vand.u32 3, %v1397_v49  ;;  %v5319_v63 = vrot.slane %v3577_v39, %v2042_v8  ;;  %v1705_v20 = vsel %vm5215_vm14, 0, %v1703_v46  ;;  %v1809_v23 = vsel %vm5230_vm10, 0, %v1807_v58 }
 0x246   :  { %v3526_v56 = vpop.eup %3525  ;;  %v5325_v26 = vand.u32 3, %v1501_v41  ;;  %v1913_v60 = vsel %vm5244_vm3, 0, %v1911_v53  ;;  %v2017_v17 = vsel %vm5258_vm15, 0, %v2015_v59  ;;  %v5337_v25 = vand.u32 3, %v1605_v42 }
 0x247   :  { %v3528_v10 = vpop.eup %3527  ;;  %6486 = vst [vmem:[#allocation6_spill] sm:$0xff] %v5319_v63  ;;  %vm1295_vm4 = vcmp.lt.s32.totalorder %v1294_v18, 2  ;;  %v1298_v45 = vsel %vm1296_vm11, %v3514_v30, %v1297_v19  ;;  %v1301_v4 = vsel %vm1299_vm1, %v1300_v62, %v3516_v1  ;;  %v1401_v35 = vxor.u32 2147483648, %v3520_v0 }
 0x248   :  { %v5329_v21 = vpop.eup %3529  ;;  %vm1400_vm12 = vcmp.eq.s32.totalorder %v5314_v32, 0  ;;  %vm1403_vm7 = vcmp.eq.s32.totalorder %v5314_v32, 2  ;;  %v1404_v38 = vxor.u32 2147483648, %v5291_v57  ;;  %v1505_v51 = vxor.u32 2147483648, %v5304_v61 }
 0x249   :  { %v5340_v54 = vpop.eup %3531  ;;  %vm1504_vm9 = vcmp.eq.s32.totalorder %v5325_v26, 0  ;;  %v1609_v5 = vxor.u32 2147483648, %v3528_v10  ;;  %v1917_v40 = vadd.s32 3, %v1913_v60  ;;  %v2021_v48 = vadd.s32 3, %v2017_v17 }
 0x24a   :  { %v5344_v9 = vpop.eup %3533  ;;  %vm1608_vm2 = vcmp.eq.s32.totalorder %v5337_v25, 0  ;;  %v1612_v34 = vxor.u32 2147483648, %v3526_v56  ;;  %v1709_v6 = vadd.s32 3, %v1705_v20  ;;  %v5361_v44 = vrot.slane %v3578_v24, %v2042_v8 }
 0x24b   :  { %v5352_v13 = vpop.eup %3535  ;;  %v5364_v49 = vsel %vm1295_vm4, %v1298_v45, %v1301_v4  ;;  %vm1611_vm8 = vcmp.eq.s32.totalorder %v5337_v25, 2  ;;  %v1813_v41 = vadd.s32 3, %v1809_v23  ;;  %v5370_v58 = vsel %vm1400_vm12, %v5291_v57, %v1401_v35 }
 0x24c   :  { %v3538_v30 = vpop.eup %3537  ;;  %6487 = vst [vmem:[#allocation5_spill] sm:$0xff] %v5361_v44  ;;  %v5374_v42 = vsel %vm1403_vm7, %v1404_v38, %v3520_v0  ;;  %v5379_v8 = vsel %vm1504_vm9, %v5293_v43, %v1505_v51  ;;  %v1508_v18 = vxor.u32 2147483648, %v5293_v43  ;;  %v1610_v57 = vsel %vm1608_vm2, %v3526_v56, %v1609_v5 }
 0x24d   :  { %v3540_v37 = vpop.eup %3539  ;;  %v1918_v59 = vand.u32 3, %v1917_v40  ;;  %v2022_v19 = vand.u32 3, %v2021_v48  ;;  %v1613_v62 = vsel %vm1611_vm8, %v1612_v34, %v3528_v10  ;;  %v1710_v0 = vand.u32 3, %v1709_v6 }
 0x24e   :  { %v3542_v46 = vpop.eup %3541  ;;  %v1713_v39 = vxor.u32 2147483648, %v5340_v54  ;;  %v1716_v60 = vxor.u32 2147483648, %v5329_v21  ;;  %v1814_v43 = vand.u32 3, %v1813_v41  ;;  %v1817_v17 = vxor.u32 2147483648, %v5352_v13 }
 0x24f   :  { %v5327_v3 = vpop.f32.mrf.mxu0  ;;  %v3544_v53 = vpop.eup %3543  ;;  %v1921_v56 = vxor.u32 2147483648, %v3540_v37  ;;  %v1924_v10 = vxor.u32 2147483648, %v3538_v30  ;;  %v2028_v35 = vxor.u32 2147483648, %v3542_v46  ;;  %vm1920_vm3 = vcmp.eq.s32.totalorder %v1918_v59, 0 }
 0x250   :  { %v2296_v2 = vand.u32 2139095040, %v5327_v3  ;;  %v2025_v4 = vxor.u32 2147483648, %v3544_v53  ;;  %vm1923_vm15 = vcmp.eq.s32.totalorder %v1918_v59, 2  ;;  %vm2024_vm11 = vcmp.eq.s32.totalorder %v2022_v19, 0 }
 0x251   :  { %v5392_v45 = vpop.f32.mrf.mxu0  ;;  %vm2027_vm1 = vcmp.eq.s32.totalorder %v2022_v19, 2  ;;  %vm1712_vm4 = vcmp.eq.s32.totalorder %v1710_v0, 0  ;;  %vm1715_vm12 = vcmp.eq.s32.totalorder %v1710_v0, 2  ;;  %vm1816_vm7 = vcmp.eq.s32.totalorder %v1814_v43, 0 }
 0x252   :  { %v2297_v1 = vshrl.u32 %v2296_v2, 23  ;;  %v1820_v2 = vxor.u32 2147483648, %v5344_v9  ;;  %v2400_v5 = vand.u32 2139095040, %v5392_v45  ;;  %vm1819_vm9 = vcmp.eq.s32.totalorder %v1814_v43, 2 }
 0x253   :  { %vm1919_vm2 = vcmp.lt.s32.totalorder %v1918_v59, 2  ;;  %vm2023_vm8 = vcmp.lt.s32.totalorder %v2022_v19, 2  ;;  %v1922_v40 = vsel %vm1920_vm3, %v3538_v30, %v1921_v56  ;;  %v1925_v48 = vsel %vm1923_vm15, %v1924_v10, %v3540_v37 }
 0x254   :  { %v3341_v23 = vadd.s32 4294967169, %v2297_v1  ;;  %v2026_v34 = vsel %vm2024_vm11, %v3542_v46, %v2025_v4  ;;  %v2029_v6 = vsel %vm2027_vm1, %v2028_v35, %v3544_v53  ;;  %vm1500_vm5 = vweird.f32 %v4526_v7 }
 0x255   :  { %vm1711_vm13 = vcmp.lt.s32.totalorder %v1710_v0, 2  ;;  %v1714_v1 = vsel %vm1712_vm4, %v5329_v21, %v1713_v39  ;;  %v1717_v24 = vsel %vm1715_vm12, %v1716_v60, %v5340_v54  ;;  %vm1916_vm10 = vweird.f32 %v4831_v36 }
 0x256   :  { %v2303_v51 = vadd.s32 1, %v3341_v23  ;;  %vm1396_vm6 = vweird.f32 %v4445_v55  ;;  %vm1815_vm14 = vcmp.lt.s32.totalorder %v1814_v43, 2  ;;  %v1818_v41 = vsel %vm1816_vm7, %v5344_v9, %v1817_v17 }
 0x257   :  { %v2401_v30 = vshrl.u32 %v2400_v5, 23  ;;  %vm1292_vm3 = vweird.f32 %v4388_v27  ;;  %v1821_v37 = vsel %vm1819_vm9, %v1820_v2, %v5352_v13  ;;  %v1926_v46 = vsel %vm1919_vm2, %v1922_v40, %v1925_v48 }
 0x258   :  { %v5302_v16 = vpop.f32.mrf.mxu1  ;;  %vm2304_vm0 = vcmp.gt.s32.totalorder %v2303_v51, 0  ;;  %vm2020_vm15 = vweird.f32 %v4936_v52  ;;  %v2030_v21 = vsel %vm2023_vm8, %v2026_v34, %v2029_v6  ;;  %vm6488_vm11 = vcmp.eq.s32.totalorder %v5325_v26, 2 }
 0x259   :  { %v1509_v9 = vsel %vm6488_vm11, %v1508_v18, %v5304_v61  ;;  %vm6489_vm1 = vcmp.lt.s32.totalorder %v5337_v25, 2  ;;  %vm1708_vm4 = vweird.f32 %v6471_v22  ;;  %vm1812_vm12 = vweird.f32 %v4677_v12 }
 0x25a   :  { %v5312_v15 = vpop.f32.mrf.mxu1  ;;  %v1614_v39 = vsel %vm6489_vm1, %v1610_v57, %v1613_v62  ;;  %v1718_v13 = vsel %vm1711_vm13, %v1714_v1, %v1717_v24  ;;  %v2305_v52 = vsel %vm2304_vm0, %v2303_v51, 0  ;;  %v1822_v19 = vsel %vm1815_vm14, %v1818_v41, %v1821_v37 }
 0x25b   :  { %v1927_v17 = vsel %vm1916_vm10, nan, %v1926_v46  ;;  %v2031_v2 = vsel %vm2020_vm15, nan, %v2030_v21  ;;  %v3345_v61 = vadd.s32 4294967169, %v2401_v30  ;;  %vm6490_vm7 = vcmp.lt.s32.totalorder %v5314_v32, 2 }
 0x25c   :  { %v5335_v14 = vpop.f32.mrf.mxu1  ;;  %v1406_v25 = vsel %vm6490_vm7, %v5370_v58, %v5374_v42  ;;  %vm6491_vm9 = vcmp.lt.s32.totalorder %v5325_v26, 2  ;;  %vm6492_vm0 = vweird.f32 %v4588_v33  ;;  %v1719_v10 = vsel %vm1708_vm4, nan, %v1718_v13 }
 0x25d   :  { %v1510_v18 = vsel %vm6491_vm9, %v5379_v8, %v1509_v9  ;;  %v1615_v36 = vsel %vm6492_vm0, nan, %v1614_v39  ;;  %v2307_v4 = vand.u32 31, %v2305_v52  ;;  %v1823_v26 = vsel %vm1812_vm12, nan, %v1822_v19 }
 0x25e   :  { %v5350_v29 = vpop.f32.mrf.mxu1  ;;  %v6397_v42 = vand.u32 2147483647, %v5327_v3  ;;  %v2407_v35 = vadd.s32 1, %v3345_v61  ;;  %v1511_v12 = vsel %vm1500_vm5, nan, %v1510_v18  ;;  %v6494_v13 = vmov 1326507024  }
 0x25f   :  { %v2319_v30 = vshll.u32 %v6446_v11, %v2307_v4  ;;  %v2310_v37 = vshll.u32 %v6449_v47, %v2307_v4  ;;  %v2313_v46 = vshll.u32 %v6450_v31, %v2307_v4  ;;  %v2322_v39 = vshll.u32 %v6447_v28, %v2307_v4 }
 0x260   :  { %v5356_v50 = vpop.f32.mrf.mxu1  ;;  %vm2408_vm14 = vcmp.gt.s32.totalorder %v2407_v35, 0  ;;  %v2300_v24 = vand.u32 8388607, %v6397_v42 }
 0x261   :  { %v990_v54 = vpop.permute.xlu0 %989  ;;  %v980_v53 = vpop.permute.xlu1 %979  ;;  %v2409_v21 = vsel %vm2408_vm14, %v2407_v35, 0 }
 0x262   :  { %v5387_v20 = vpop.f32.mrf.mxu1  ;;  %v1080_v43 = vadd.f32 %v5350_v29, %v980_v53  ;;  %v1078_v32 = vadd.f32 %v5335_v14, %v980_v53  ;;  %v6493_v53 = vmov 2131351028   ;;  %v2301_v18 = vor.u32 8388608, %v2300_v24 }
 0x263   :  { %v2316_v9 = vshll.u32 %v6493_v53, %v2307_v4 }
 0x264   :  { %v1089_v38 = vpop.f32.mrf.mxu1  ;;  %v2035_v5 = vmul.f32 %v1615_v36, %v1080_v43  ;;  %v2034_v48 = vmul.f32 %v1511_v12, %v1078_v32 }
 0x265   :  { %v1090_v59 = vadd.f32 %v1089_v38, %v990_v54  ;;  %v985_v0 = vpop.permute.xlu0 %984  ;;  %v975_v56 = vpop.permute.xlu1 %974 }
 0x266   :  { %v1091_v23 = vpop.f32.mrf.mxu1  ;;  %v1084_v58 = vadd.f32 %v5356_v50, %v985_v0  ;;  %v1074_v8 = vadd.f32 %v5312_v15, %v975_v56  ;;  %v1086_v29 = vadd.f32 %v5387_v20, %v985_v0  ;;  %v5442_v38 = vpop.f32.mrf.mxu0  ;;  %v1072_v22 = vadd.f32 %v5302_v16, %v975_v56  ;;  %v3322_v56 = vld [vmem:[%s6341_s2 + $0x28] sm:$0xff] }
 0x267   :  { %v1092_v60 = vadd.f32 %v1091_v23, %v990_v54  ;;  %v2038_v57 = vmul.f32 %v1927_v17, %v1090_v59  ;;  %v2504_v50 = vand.u32 2139095040, %v5442_v38  ;;  %v5449_v15 = vsub.s32 32, %v2307_v4 }
 0x268   :  { %v2036_v51 = vmul.f32 %v1719_v10, %v1084_v58  ;;  %v2037_v40 = vmul.f32 %v1823_v26, %v1086_v29  ;;  %v1407_v20 = vsel %vm1396_vm6, nan, %v1406_v25  ;;  %v1303_v16 = vsel %vm1292_vm3, nan, %v5364_v49 }
 0x269   :  { %v2039_v62 = vmul.f32 %v2031_v2, %v1092_v60  ;;  %v2054_v14 = vadd.f32 %v5361_v44, %v2038_v57  ;;  %v2033_v34 = vmul.f32 %v1407_v20, %v1074_v8  ;;  %v2032_v7 = vmul.f32 %v1303_v16, %v1072_v22  ;;  %v3323_v8 = vld [vmem:[%s6341_s2 + $0x30] sm:$0xff] }
 0x26a   :  { %v2053_v6 = vadd.f32 %v5319_v63, %v2037_v40  ;;  %v2052_v1 = vadd.f32 %v5361_v44, %v2036_v51  ;;  %v2505_v41 = vshrl.u32 %v2504_v50, 23  ;;  %v2051_v55 = vadd.f32 %v5319_v63, %v2035_v5 }
 0x26b   :  { %v2055_v33 = vadd.f32 %v5319_v63, %v2039_v62  ;;  %v5461_v23 = vshrl.u32 %v2305_v52, 5  ;;  %v2320_v27 = vshrl.u32 %v6447_v28, %v5449_v15  ;;  %v2050_v49 = vadd.f32 %v5361_v44, %v2034_v48  ;;  %v3321_v52 = vld [vmem:[%s6341_s2 + $0x20] sm:$0xff] }
 0x26c   :  { %v2049_v54 = vadd.f32 %v5319_v63, %v2033_v34  ;;  %v2323_v59 = vshrl.u32 %v6494_v13, %v5449_v15  ;;  %v2048_v60 = vadd.f32 %v5361_v44, %v2032_v7  ;;  %v2311_v19 = vshrl.u32 %v6450_v31, %v5449_v15  ;;  %v3324_v7 = vld [vmem:[%s6341_s2 + $0x38] sm:$0xff] }
 0x26d   :  { %2122 = vmatprep.subr.mxu1 %v2055_v33  ;;  %v2314_v17 = vshrl.u32 %v6493_v53, %v5449_v15  ;;  %v2317_v2 = vshrl.u32 %v6446_v11, %v5449_v15  ;;  %v2321_v61 = vor.u32 %v2320_v27, %v2319_v30  ;;  %v2411_v25 = vand.u32 31, %v2409_v21 }
 0x26e   :  { %2123 = vmatpush1.msra.mxu1 %v2054_v14  ;;  %vm2328_vm5 = vcmp.lt.s32.totalorder %v5461_v23, 4  ;;  %vm6495_vm6 = vcmask 261120   ;;  %v2324_v57 = vor.u32 %v2323_v59, %v2322_v39  ;;  %v6396_v62 = vand.u32 2147483647, %v5392_v45  ;;  %v5554_v59 = vpop.f32.mrf.mxu0 }
 0x26f   :  { %2124 = vmatprep.subr.mxu1 %v2053_v6  ;;  %v6496_v0 = vmov 0.0   ;;  %v2312_v43 = vor.u32 %v2311_v19, %v2310_v37  ;;  %v5491_v36 = vor.u32 %v2314_v17, %v2313_v46  ;;  %v2318_v10 = vor.u32 %v2317_v2, %v2316_v9  ;;  %vm6497_vm2 = vmmov %vm6495_vm6 }
 0x270   :  { %2125 = vmatpush1.msra.mxu1 %v2052_v1  ;;  %v3349_v4 = vadd.s32 4294967169, %v2505_v41  ;;  %vm2325_vm10 = vcmp.lt.s32.totalorder %v5461_v23, 1  ;;  %vm2327_vm13 = vcmp.lt.s32.totalorder %v5461_v23, 3  ;;  %v2334_v32 = vsel %vm2328_vm5, %v2321_v61, 920167782  ;;  %vm6498_vm3 = vmmov %vm6497_vm2 }
 0x271   :  { %2126 = vmatprep.subr.mxu1 %v2051_v55  ;;  %v5497_v58 = vsub.s32 32, %v2411_v25  ;;  %v2338_v26 = vsel %vm2328_vm5, %v2324_v57, 1326507024  ;;  %vm2326_vm8 = vcmp.lt.s32.totalorder %v5461_v23, 2  ;;  %v2333_v29 = vsel %vm2325_vm10, %v2312_v43, %v5491_v36  ;;  %vm6499_vm11 = vmmov %vm6497_vm2 }
 0x272   :  { %2127 = vmatpush1.msra.mxu1 %v2050_v49  ;;  %v2335_v33 = vsel %vm2327_vm13, %v2318_v10, %v2334_v32  ;;  %v2404_v35 = vand.u32 8388607, %v6396_v62  ;;  %v5514_v22 = vshll.u32 %v2301_v18, 8  ;;  %v2423_v51 = vshll.u32 %v6446_v11, %v2411_v25 }
 0x273   :  { %2128 = vmatprep.subr.mxu1 %v2049_v54  ;;  %v2424_v14 = vshrl.u32 %v6447_v28, %v5497_v58  ;;  %v2511_v50 = vadd.s32 1, %v3349_v4  ;;  %v2337_v12 = vsel %vm2325_vm10, %v5491_v36, %v2318_v10  ;;  %v2339_v5 = vsel %vm2327_vm13, %v2321_v61, %v2338_v26 }
 0x274   :  { %2129 = vmatpush1.msra.mxu1 %v2048_v60  ;;  %v5524_v40 = vshrl.u32 %v2409_v21, 5  ;;  %v2414_v20 = vshll.u32 %v6449_v47, %v2411_v25  ;;  %v2336_v48 = vsel %vm2326_vm8, %v2333_v29, %v2335_v33  ;;  %v2415_v16 = vshrl.u32 %v6450_v31, %v5497_v58 }
 0x275   :  { %3329 = vmatmul.mubr.msk.f32.vlgmr.msra.gmra.mxu1 %vm6495_vm6, %v3321_v52  ;;  %v2426_v34 = vshll.u32 %v6447_v28, %v2411_v25  ;;  %v2427_v6 = vshrl.u32 %v6494_v13, %v5497_v58  ;;  %v2417_v1 = vshll.u32 %v6450_v31, %v2411_v25  ;;  %v2418_v24 = vshrl.u32 %v6493_v53, %v5497_v58 }
 0x276   :  { %2168 = vmatprep.mubr.f32.mxu1 %v6496_v0  ;;  %v2420_v41 = vshll.u32 %v6493_v53, %v2411_v25  ;;  %v2421_v55 = vshrl.u32 %v6446_v11, %v5497_v58  ;;  %v2425_v30 = vor.u32 %v2424_v14, %v2423_v51  ;;  %v2405_v27 = vor.u32 8388608, %v2404_v35 }
 0x277   :  { %vm2432_vm15 = vcmp.lt.s32.totalorder %v5524_v40, 4  ;;  %v2340_v49 = vsel %vm2326_vm8, %v2337_v12, %v2339_v5  ;;  %v5550_v37 = vmul.u32.u64.low %v5514_v22, %v2336_v48  ;;  %v5551_v46 = vmul.u32.u64.high %v5514_v22, %v2336_v48, %v5550_v37 }
 0x278   :  { %v2428_v21 = vor.u32 %v2427_v6, %v2426_v34  ;;  %v2416_v54 = vor.u32 %v2415_v16, %v2414_v20  ;;  %v2419_v9 = vor.u32 %v2418_v24, %v2417_v1  ;;  %v2422_v39 = vor.u32 %v2421_v55, %v2420_v41 }
 0x279   :  { %3330 = vmatmul.mubr.msk.f32.gmra.mxu1 %vm6497_vm2, %v3322_v56  ;;  %vm2512_vm1 = vcmp.gt.s32.totalorder %v2511_v50, 0  ;;  %v2309_v60 = vshrl.u32 %v6449_v47, %v5449_v15  ;;  %vm2429_vm4 = vcmp.lt.s32.totalorder %v5524_v40, 1  ;;  %vm2431_vm12 = vcmp.lt.s32.totalorder %v5524_v40, 3 }
 0x27a   :  { %2174 = vmatprep.mubr.f32.mxu1 %v6496_v0  ;;  %v2438_v52 = vsel %vm2432_vm15, %v2425_v30, 920167782  ;;  %v5564_v19 = vmul.u32.u64.low %v5514_v22, %v2340_v49  ;;  %v5565_v17 = vmul.u32.u64.high %v5514_v22, %v2340_v49, %v5564_v19  ;;  %v2330_v2 = vsel %vm2328_vm5, %v2318_v10, 2102212464 }
 0x27b   :  { %v2442_v61 = vsel %vm2432_vm15, %v2428_v21, 1326507024  ;;  %v2513_v25 = vsel %vm2512_vm1, %v2511_v50, 0  ;;  %v2608_v15 = vand.u32 2139095040, %v5554_v59  ;;  %vm2430_vm7 = vcmp.lt.s32.totalorder %v5524_v40, 2 }
 0x27c   :  { %v2437_v18 = vsel %vm2429_vm4, %v2416_v54, %v2419_v9  ;;  %v2439_v57 = vsel %vm2431_vm12, %v2422_v39, %v2438_v52  ;;  %v5579_v56 = vshll.u32 %v2405_v27, 8  ;;  %v2331_v10 = vsel %vm2327_vm13, %v5491_v36, %v2330_v2  ;;  %v5643_v2 = vpop.f32.mrf.mxu0 }
 0x27d   :  { %3331 = vmatmul.mubr.msk.f32.gmra.mxu1 %vm6498_vm3, %v3323_v8  ;;  %v2441_v4 = vsel %vm2429_vm4, %v2419_v9, %v2422_v39  ;;  %v2443_v32 = vsel %vm2431_vm12, %v2425_v30, %v2442_v61  ;;  %v2515_v26 = vand.u32 31, %v2513_v25  ;;  %v2440_v8 = vsel %vm2430_vm7, %v2437_v18, %v2439_v57 }
 0x27e   :  { %2180 = vmatprep.mubr.f32.mxu1 %v6496_v0  ;;  %v2609_v29 = vshrl.u32 %v2608_v15, 23  ;;  %v2351_v33 = vadd.s32 1, %v5551_v46  ;;  %v2413_v35 = vshrl.u32 %v6449_v47, %v5497_v58  ;;  %v2444_v36 = vsel %vm2430_vm7, %v2441_v4, %v2443_v32 }
 0x27f   :  { %vm2350_vm9 = vc.u32 %v5565_v17, %v5550_v37  ;;  %v5600_v51 = vmul.u32.u64.low %v5579_v56, %v2440_v8  ;;  %v5601_v14 = vmul.u32.u64.high %v5579_v56, %v2440_v8, %v5600_v51  ;;  %v5604_v50 = vsub.s32 32, %v2515_v26 }
 0x280   :  { %v2434_v23 = vsel %vm2432_vm15, %v2422_v39, 2102212464  ;;  %v3353_v12 = vadd.s32 4294967169, %v2609_v29  ;;  %v5609_v5 = vmul.u32.u64.low %v5579_v56, %v2444_v36  ;;  %v5610_v58 = vmul.u32.u64.high %v5579_v56, %v2444_v36, %v5609_v5 }
 0x281   :  { %3332 = vmatmul.mubr.msk.f32.gmra.mxu1 %vm6499_vm11, %v3324_v7  ;;  %v6395_v20 = vand.u32 2147483647, %v5442_v38  ;;  %v2352_v16 = vsel %vm2350_vm9, %v2351_v33, %v5551_v46  ;;  %v2433_v34 = vsel %vm2429_vm4, %v2413_v35, %v2416_v54  ;;  %v2435_v6 = vsel %vm2431_vm12, %v2419_v9, %v2434_v23 }
 0x282   :  { %3215 = vmatprep.mubr.f32.mxu1 %v6496_v0  ;;  %v2329_v0 = vsel %vm2325_vm10, %v2309_v60, %v2312_v43  ;;  %v2527_v7 = vshll.u32 %v6446_v11, %v2515_v26  ;;  %v2528_v1 = vshrl.u32 %v6447_v28, %v5604_v50  ;;  %v5622_v24 = vshrl.u32 %v2513_v25, 5 }
 0x283   :  { %v2332_v43 = vsel %vm2326_vm8, %v2329_v0, %v2331_v10  ;;  %v2530_v41 = vshll.u32 %v6447_v28, %v2515_v26  ;;  %v2615_v55 = vadd.s32 1, %v3353_v12  ;;  %v2508_v30 = vand.u32 8388607, %v6395_v20 }
 0x284   :  { %v2348_v48 = vmul.u32 %v5514_v22, %v2332_v43  ;;  %v2531_v22 = vshrl.u32 %v6494_v13, %v5604_v50  ;;  %v2518_v27 = vshll.u32 %v6449_v47, %v2515_v26  ;;  %v2521_v49 = vshll.u32 %v6450_v31, %v2515_v26 }
 0x285   :  { %v2519_v46 = vshrl.u32 %v6450_v31, %v5604_v50  ;;  %v2522_v21 = vshrl.u32 %v6493_v53, %v5604_v50  ;;  %v2524_v54 = vshll.u32 %v6493_v53, %v2515_v26  ;;  %v2525_v9 = vshrl.u32 %v6446_v11, %v5604_v50 }
 0x286   :  { %v5638_v39 = vadd.s32 %v2352_v16, %v2348_v48  ;;  %v2436_v60 = vsel %vm2430_vm7, %v2433_v34, %v2435_v6  ;;  %v2455_v52 = vadd.s32 1, %v5601_v14  ;;  %v2529_v19 = vor.u32 %v2528_v1, %v2527_v7  ;;  %v5676_v7 = vpop.f32.mrf.mxu0 }
 0x287   :  { %v2532_v61 = vor.u32 %v2531_v22, %v2530_v41  ;;  %vm2536_vm0 = vcmp.lt.s32.totalorder %v5622_v24, 4  ;;  %vm2616_vm14 = vcmp.gt.s32.totalorder %v2615_v55, 0  ;;  %v2712_v25 = vand.u32 2139095040, %v5643_v2 }
 0x288   :  { %vm2454_vm5 = vc.u32 %v5610_v58, %v5600_v51  ;;  %v2509_v15 = vor.u32 8388608, %v2508_v30  ;;  %v2452_v18 = vmul.u32 %v5579_v56, %v2436_v60  ;;  %v2520_v57 = vor.u32 %v2519_v46, %v2518_v27 }
 0x289   :  { %v2523_v40 = vor.u32 %v2522_v21, %v2521_v49  ;;  %v2526_v0 = vor.u32 %v2525_v9, %v2524_v54  ;;  %vm2533_vm6 = vcmp.lt.s32.totalorder %v5622_v24, 1  ;;  %vm2535_vm10 = vcmp.lt.s32.totalorder %v5622_v24, 3 }
 0x28a   :  { %v2542_v10 = vsel %vm2536_vm0, %v2529_v19, 920167782  ;;  %v2617_v4 = vsel %vm2616_vm14, %v2615_v55, 0  ;;  %v2354_v32 = vadd.s32 536870912, %v5638_v39  ;;  %v2456_v26 = vsel %vm2454_vm5, %v2455_v52, %v5601_v14 }
 0x28b   :  { %v2546_v8 = vsel %vm2536_vm0, %v2532_v61, 1326507024  ;;  %v2713_v29 = vshrl.u32 %v2712_v25, 23  ;;  %vm2534_vm13 = vcmp.lt.s32.totalorder %v5622_v24, 2  ;;  %v2541_v56 = vsel %vm2533_vm6, %v2520_v57, %v2523_v40 }
 0x28c   :  { %v2543_v43 = vsel %vm2535_vm10, %v2526_v0, %v2542_v10  ;;  %v2619_v33 = vand.u32 31, %v2617_v4  ;;  %v2457_v35 = vadd.s32 %v2456_v26, %v2452_v18  ;;  %v2545_v36 = vsel %vm2533_vm6, %v2523_v40, %v2526_v0 }
 0x28d   :  { %v2547_v14 = vsel %vm2535_vm10, %v2529_v19, %v2546_v8  ;;  %v6394_v23 = vand.u32 2147483647, %v5554_v59  ;;  %v5668_v12 = vshrl.u32 %v2354_v32, 30  ;;  %v5670_v5 = vshll.u32 %v2509_v15, 8 }
 0x28e   :  { %v3357_v48 = vadd.s32 4294967169, %v2713_v29  ;;  %v2544_v16 = vsel %vm2534_vm13, %v2541_v56, %v2543_v43  ;;  %v2548_v34 = vsel %vm2534_vm13, %v2545_v36, %v2547_v14  ;;  %v2620_v6 = vsub.s32 32, %v2619_v33 }
 0x28f   :  { %v2458_v1 = vadd.s32 536870912, %v2457_v35  ;;  %v2517_v41 = vshrl.u32 %v6449_v47, %v5604_v50  ;;  %v2612_v22 = vand.u32 8388607, %v6394_v23  ;;  %v2356_v55 = vshll.u32 %v5668_v12, 30 }
 0x290   :  { %v5684_v30 = vmul.u32.u64.low %v5670_v5, %v2544_v16  ;;  %v5685_v27 = vmul.u32.u64.high %v5670_v5, %v2544_v16, %v5684_v30  ;;  %v2719_v49 = vadd.s32 1, %v3357_v48  ;;  %v2538_v46 = vsel %vm2536_vm0, %v2526_v0, 2102212464 }
 0x291   :  { %v5691_v21 = vmul.u32.u64.low %v5670_v5, %v2548_v34  ;;  %v5692_v54 = vmul.u32.u64.high %v5670_v5, %v2548_v34, %v5691_v21  ;;  %v2816_v50 = vand.u32 2139095040, %v5676_v7  ;;  %v2631_v9 = vshll.u32 %v6446_v11, %v2619_v33 }
 0x292   :  { %v2632_v60 = vshrl.u32 %v6447_v28, %v2620_v6  ;;  %v2634_v52 = vshll.u32 %v6447_v28, %v2619_v33  ;;  %v2635_v19 = vshrl.u32 %v6494_v13, %v2620_v6  ;;  %v5699_v61 = vshrl.u32 %v2458_v1, 30 }
 0x293   :  { %v2537_v25 = vsel %vm2533_vm6, %v2517_v41, %v2520_v57  ;;  %v5703_v15 = vshrl.u32 %v2617_v4, 5  ;;  %v2622_v18 = vshll.u32 %v6449_v47, %v2619_v33  ;;  %v2623_v0 = vshrl.u32 %v6450_v31, %v2620_v6 }
 0x294   :  { %v2625_v10 = vshll.u32 %v6450_v31, %v2619_v33  ;;  %v2626_v32 = vshrl.u32 %v6493_v53, %v2620_v6  ;;  %vm2720_vm2 = vcmp.gt.s32.totalorder %v2719_v49, 0  ;;  %v2539_v26 = vsel %vm2535_vm10, %v2523_v40, %v2538_v46 }
 0x295   :  { %v2628_v8 = vshll.u32 %v6493_v53, %v2619_v33  ;;  %v2629_v29 = vshrl.u32 %v6446_v11, %v2620_v6  ;;  %v2817_v56 = vshrl.u32 %v2816_v50, 23  ;;  %v5714_v57 = vsub.s32 %v5638_v39, %v2356_v55 }
 0x296   :  { %v2633_v4 = vor.u32 %v2632_v60, %v2631_v9  ;;  %v2636_v43 = vor.u32 %v2635_v19, %v2634_v52  ;;  %v2460_v36 = vshll.u32 %v5699_v61, 30  ;;  %v2613_v14 = vor.u32 8388608, %v2612_v22 }
 0x297   :  { %vm2640_vm8 = vcmp.lt.s32.totalorder %v5703_v15, 4  ;;  %v2721_v48 = vsel %vm2720_vm2, %v2719_v49, 0  ;;  %v2540_v16 = vsel %vm2534_vm13, %v2537_v25, %v2539_v26  ;;  %v2559_v40 = vadd.s32 1, %v5685_v27 }
 0x298   :  { %v2624_v33 = vor.u32 %v2623_v0, %v2622_v18  ;;  %v5721_v34 = vor.u32 %v2626_v32, %v2625_v10  ;;  %vm2558_vm3 = vc.u32 %v5692_v54, %v5684_v30  ;;  %v2630_v39 = vor.u32 %v2629_v29, %v2628_v8 }
 0x299   :  { %vm2637_vm15 = vcmp.lt.s32.totalorder %v5703_v15, 1  ;;  %v3361_v1 = vadd.s32 4294967169, %v2817_v56  ;;  %vm2639_vm11 = vcmp.lt.s32.totalorder %v5703_v15, 3  ;;  %v2646_v41 = vsel %vm2640_vm8, %v2633_v4, 920167782 }
 0x29a   :  { %v2650_v24 = vsel %vm2640_vm8, %v2636_v43, 1326507024  ;;  %v2723_v22 = vand.u32 31, %v2721_v48  ;;  %v2359_v55 = vsub.s32 0, %v5714_v57  ;;  %v5732_v49 = vsub.s32 %v2457_v35, %v2460_v36 }
 0x29b   :  { %v2556_v46 = vmul.u32 %v5670_v5, %v2540_v16  ;;  %v6393_v21 = vand.u32 2147483647, %v5643_v2  ;;  %v2560_v50 = vsel %vm2558_vm3, %v2559_v40, %v5685_v27  ;;  %v2621_v9 = vshrl.u32 %v6449_v47, %v2620_v6 }
 0x29c   :  { %vm2638_vm1 = vcmp.lt.s32.totalorder %v5703_v15, 2  ;;  %v2645_v60 = vsel %vm2637_vm15, %v2624_v33, %v5721_v34  ;;  %v2647_v52 = vsel %vm2639_vm11, %v2630_v39, %v2646_v41  ;;  %v2649_v35 = vsel %vm2637_vm15, %v5721_v34, %v2630_v39 }
 0x29d   :  { %v2651_v5 = vsel %vm2639_vm11, %v2633_v4, %v2650_v24  ;;  %v2823_v19 = vadd.s32 1, %v3361_v1  ;;  %v5749_v27 = vshll.u32 %v2613_v14, 8  ;;  %v5751_v6 = vsub.s32 32, %v2723_v22 }
 0x29e   :  { %v5754_v25 = vmin.u32 %v2359_v55, %v5714_v57  ;;  %v2716_v0 = vand.u32 8388607, %v6393_v21  ;;  %v6400_v10 = vand.u32 2147483647, %v5676_v7  ;;  %v5760_v32 = vadd.s32 %v2560_v50, %v2556_v46 }
 0x29f   :  { %v5764_v26 = vsel %vm2637_vm15, %v2621_v9, %v2624_v33  ;;  %v2648_v8 = vsel %vm2638_vm1, %v2645_v60, %v2647_v52  ;;  %v2652_v29 = vsel %vm2638_vm1, %v2649_v35, %v2651_v5  ;;  %v5770_v56 = vshrl.u32 %v2721_v48, 5  ;;  %v5800_v5 = vpop.f32.mrf.mxu0 }
 0x2a0   :  { %v2726_v4 = vshll.u32 %v6449_v47, %v2723_v22  ;;  %v2729_v43 = vshll.u32 %v6450_v31, %v2723_v22  ;;  %vm2824_vm4 = vcmp.gt.s32.totalorder %v2823_v19, 0  ;;  %v2727_v36 = vshrl.u32 %v6450_v31, %v5751_v6  ;;  %6500 = vst [vmem:[#allocation7_spill] sm:$0xff] %v5800_v5 }
 0x2a1   :  { %v2730_v14 = vshrl.u32 %v6493_v53, %v5751_v6  ;;  %v2732_v16 = vshll.u32 %v6493_v53, %v2723_v22  ;;  %v2825_v40 = vsel %vm2824_vm4, %v2823_v19, 0  ;;  %v2733_v33 = vshrl.u32 %v6446_v11, %v5751_v6 }
 0x2a2   :  { %v2735_v48 = vshll.u32 %v6446_v11, %v2723_v22  ;;  %v2736_v1 = vshrl.u32 %v6447_v28, %v5751_v6  ;;  %v2827_v41 = vand.u32 31, %v2825_v40  ;;  %v2738_v46 = vshll.u32 %v6447_v28, %v2723_v22 }
 0x2a3   :  { %v5785_v24 = vmul.u32.u64.low %v5749_v27, %v2648_v8  ;;  %v5786_v55 = vmul.u32.u64.high %v5749_v27, %v2648_v8, %v5785_v24  ;;  %v2739_v50 = vshrl.u32 %v6494_v13, %v5751_v6  ;;  %v2642_v9 = vsel %vm2640_vm8, %v2630_v39, 2102212464 }
 0x2a4   :  { %v5795_v60 = vmul.u32.u64.low %v5749_v27, %v2652_v29  ;;  %v5796_v52 = vmul.u32.u64.high %v5749_v27, %v2652_v29, %v5795_v60  ;;  %v5798_v35 = vsub.s32 32, %v2827_v41  ;;  %v2717_v19 = vor.u32 8388608, %v2716_v0 }
 0x2a5   :  { %v5802_v8 = vor.u32 %v2727_v36, %v2726_v4  ;;  %vm2741_vm12 = vcmp.lt.s32.totalorder %v5770_v56, 1  ;;  %v2920_v22 = vand.u32 2139095040, %v5800_v5  ;;  %v5806_v21 = vor.u32 %v2730_v14, %v2729_v43 }
 0x2a6   :  { %v2734_v23 = vor.u32 %v2733_v33, %v2732_v16  ;;  %v2737_v20 = vor.u32 %v2736_v1, %v2735_v48  ;;  %vm2744_vm7 = vcmp.lt.s32.totalorder %v5770_v56, 4  ;;  %v2740_v39 = vor.u32 %v2739_v50, %v2738_v46 }
 0x2a7   :  { %v5809_v29 = vshrl.u32 %v2825_v40, 5  ;;  %v2830_v60 = vshll.u32 %v6449_v47, %v2827_v41  ;;  %v2839_v62 = vshll.u32 %v6446_v11, %v2827_v41  ;;  %v2831_v0 = vshrl.u32 %v6450_v31, %v5798_v35 }
 0x2a8   :  { %v2833_v4 = vshll.u32 %v6450_v31, %v2827_v41  ;;  %v2836_v36 = vshll.u32 %v6493_v53, %v2827_v41  ;;  %v2840_v43 = vshrl.u32 %v6447_v28, %v5798_v35  ;;  %v2834_v14 = vshrl.u32 %v6493_v53, %v5798_v35 }
 0x2a9   :  { %v2837_v16 = vshrl.u32 %v6446_v11, %v5798_v35  ;;  %v2842_v40 = vshll.u32 %v6447_v28, %v2827_v41  ;;  %v2843_v33 = vshrl.u32 %v6494_v13, %v5798_v35  ;;  %vm2743_vm9 = vcmp.lt.s32.totalorder %v5770_v56, 3 }
 0x2aa   :  { %v2750_v48 = vsel %vm2744_vm7, %v2737_v20, 920167782  ;;  %v2841_v1 = vor.u32 %v2840_v43, %v2839_v62  ;;  %v2921_v46 = vshrl.u32 %v2920_v22, 23  ;;  %v2643_v50 = vsel %vm2639_vm11, %v5721_v34, %v2642_v9 }
 0x2ab   :  { %v5832_v42 = vshll.u32 %v2717_v19, 8  ;;  %v2820_v18 = vand.u32 8388607, %v6400_v10  ;;  %v2844_v41 = vor.u32 %v2843_v33, %v2842_v40  ;;  %vm2742_vm0 = vcmp.lt.s32.totalorder %v5770_v56, 2 }
 0x2ac   :  { %v2749_v44 = vsel %vm2741_vm12, %v5802_v8, %v5806_v21  ;;  %v2754_v62 = vsel %vm2744_vm7, %v2740_v39, 1326507024  ;;  %vm2848_vm14 = vcmp.lt.s32.totalorder %v5809_v29, 4  ;;  %v2751_v34 = vsel %vm2743_vm9, %v2734_v23, %v2750_v48 }
 0x2ad   :  { %v2832_v9 = vor.u32 %v2831_v0, %v2830_v60  ;;  %v2835_v19 = vor.u32 %v2834_v14, %v2833_v4  ;;  %v2838_v22 = vor.u32 %v2837_v16, %v2836_v36  ;;  %vm2845_vm5 = vcmp.lt.s32.totalorder %v5809_v29, 1 }
 0x2ae   :  { %vm2847_vm6 = vcmp.lt.s32.totalorder %v5809_v29, 3  ;;  %v2854_v43 = vsel %vm2848_vm14, %v2841_v1, 920167782  ;;  %v3365_v40 = vadd.s32 4294967169, %v2921_v46  ;;  %v2753_v39 = vsel %vm2741_vm12, %v5806_v21, %v2734_v23 }
 0x2af   :  { %v2755_v33 = vsel %vm2743_vm9, %v2737_v20, %v2754_v62  ;;  %v2821_v10 = vor.u32 8388608, %v2820_v18  ;;  %v2858_v60 = vsel %vm2848_vm14, %v2844_v41, 1326507024  ;;  %v2644_v0 = vsel %vm2638_vm1, %v5764_v26, %v2643_v50 }
 0x2b0   :  { %v2663_v4 = vadd.s32 1, %v5786_v55  ;;  %v2752_v36 = vsel %vm2742_vm0, %v2749_v44, %v2751_v34  ;;  %v6401_v14 = vand.u32 2147483647, %v5800_v5  ;;  %v2725_v16 = vshrl.u32 %v6449_v47, %v5751_v6 }
 0x2b1   :  { %vm2846_vm10 = vcmp.lt.s32.totalorder %v5809_v29, 2  ;;  %v2853_v20 = vsel %vm2845_vm5, %v2832_v9, %v2835_v19  ;;  %v2855_v18 = vsel %vm2847_vm6, %v2838_v22, %v2854_v43  ;;  %v2756_v15 = vsel %vm2742_vm0, %v2753_v39, %v2755_v33 }
 0x2b2   :  { %v2857_v26 = vsel %vm2845_vm5, %v2835_v19, %v2838_v22  ;;  %v2859_v44 = vsel %vm2847_vm6, %v2841_v1, %v2858_v60  ;;  %v2927_v48 = vadd.s32 1, %v3365_v40  ;;  %vm2662_vm13 = vc.u32 %v5796_v52, %v5785_v24 }
 0x2b3   :  { %v5880_v6 = vmul.u32.u64.low %v5832_v42, %v2752_v36  ;;  %v5881_v46 = vmul.u32.u64.high %v5832_v42, %v2752_v36, %v5880_v6  ;;  %v5884_v50 = vshll.u32 %v2821_v10, 8  ;;  %v2562_v41 = vadd.s32 536870912, %v5760_v32 }
 0x2b4   :  { %v2746_v62 = vsel %vm2744_vm7, %v2734_v23, 2102212464  ;;  %v2856_v34 = vsel %vm2846_vm10, %v2853_v20, %v2855_v18  ;;  %vm2928_vm2 = vcmp.gt.s32.totalorder %v2927_v48, 0  ;;  %v2860_v40 = vsel %vm2846_vm10, %v2857_v26, %v2859_v44 }
 0x2b5   :  { %v5892_v1 = vmul.u32.u64.low %v5832_v42, %v2756_v15  ;;  %v5893_v43 = vmul.u32.u64.high %v5832_v42, %v2756_v15, %v5892_v1  ;;  %v2929_v39 = vsel %vm2928_vm2, %v2927_v48, 0  ;;  %v2660_v10 = vmul.u32 %v5749_v27, %v2644_v0 }
 0x2b6   :  { %v2664_v33 = vsel %vm2662_vm13, %v2663_v4, %v5786_v55  ;;  %v2745_v23 = vsel %vm2741_vm12, %v2725_v16, %v5802_v8  ;;  %v2931_v60 = vand.u32 31, %v2929_v39  ;;  %v2747_v36 = vsel %vm2743_vm9, %v5806_v21, %v2746_v62 }
 0x2b7   :  { %v5906_v20 = vmul.u32.u64.low %v5884_v50, %v2856_v34  ;;  %v5907_v18 = vmul.u32.u64.high %v5884_v50, %v2856_v34, %v5906_v20  ;;  %v2924_v15 = vand.u32 8388607, %v6401_v14  ;;  %v2829_v27 = vshrl.u32 %v6449_v47, %v5798_v35 }
 0x2b8   :  { %v5915_v55 = vmul.u32.u64.low %v5884_v50, %v2860_v40  ;;  %v5916_v0 = vmul.u32.u64.high %v5884_v50, %v2860_v40, %v5915_v55  ;;  %v2932_v8 = vsub.s32 32, %v2931_v60  ;;  %v5918_v4 = vshrl.u32 %v2562_v41, 30  ;;  %v5933_v40 = vpop.f32.mrf.mxu0 }
 0x2b9   :  { %v2850_v21 = vsel %vm2848_vm14, %v2838_v22, 2102212464  ;;  %v2934_v16 = vshll.u32 %v6449_v47, %v2931_v60  ;;  %v2937_v26 = vshll.u32 %v6450_v31, %v2931_v60  ;;  %v5924_v44 = vadd.s32 %v2664_v33, %v2660_v10 }
 0x2ba   :  { %v2930_v48 = vshrl.u32 %v2929_v39, 5  ;;  %v2935_v62 = vshrl.u32 %v6450_v31, %v2932_v8  ;;  %v2938_v35 = vshrl.u32 %v6493_v53, %v2932_v8  ;;  %v2748_v34 = vsel %vm2742_vm0, %v2745_v23, %v2747_v36 }
 0x2bb   :  { %v2767_v41 = vadd.s32 1, %v5881_v46  ;;  %v2940_v1 = vshll.u32 %v6493_v53, %v2931_v60  ;;  %v2941_v22 = vshrl.u32 %v6446_v11, %v2932_v8  ;;  %v2849_v10 = vsel %vm2845_vm5, %v2829_v27, %v2832_v9 }
 0x2bc   :  { %v2851_v39 = vsel %vm2847_vm6, %v2835_v19, %v2850_v21  ;;  %v2925_v33 = vor.u32 8388608, %v2924_v15  ;;  %v2943_v55 = vshll.u32 %v6446_v11, %v2931_v60  ;;  %vm2766_vm8 = vc.u32 %v5893_v43, %v5880_v6 }
 0x2bd   :  { %v2936_v56 = vor.u32 %v2935_v62, %v2934_v16  ;;  %v2939_v23 = vor.u32 %v2938_v35, %v2937_v26  ;;  %v2944_v36 = vshrl.u32 %v6447_v28, %v2932_v8  ;;  %v2946_v14 = vshll.u32 %v6447_v28, %v2931_v60 }
 0x2be   :  { %v2947_v63 = vshrl.u32 %v6494_v13, %v2932_v8  ;;  %vm2949_vm3 = vcmp.lt.s32.totalorder %v2930_v48, 1  ;;  %v3024_v9 = vand.u32 2139095040, %v5933_v40  ;;  %v2852_v19 = vsel %vm2846_vm10, %v2849_v10, %v2851_v39 }
 0x2bf   :  { %v2871_v15 = vadd.s32 1, %v5907_v18  ;;  %v2942_v27 = vor.u32 %v2941_v22, %v2940_v1  ;;  %v2945_v21 = vor.u32 %v2944_v36, %v2943_v55  ;;  %vm2870_vm15 = vc.u32 %v5916_v0, %v5906_v20 }
 0x2c0   :  { %v2933_v16 = vshrl.u32 %v6449_v47, %v2932_v8  ;;  %vm2951_vm11 = vcmp.lt.s32.totalorder %v2930_v48, 3  ;;  %v2965_v26 = vshll.u32 %v2925_v33, 8  ;;  %v2948_v60 = vor.u32 %v2947_v63, %v2946_v14 }
 0x2c1   :  { %vm2950_vm1 = vcmp.lt.s32.totalorder %v2930_v48, 2  ;;  %vm2952_vm4 = vcmp.lt.s32.totalorder %v2930_v48, 4  ;;  %v2957_v62 = vsel %vm2949_vm3, %v2936_v56, %v2939_v23  ;;  %v2764_v35 = vmul.u32 %v5832_v42, %v2748_v34 }
 0x2c2   :  { %v2954_v29 = vsel %vm2952_vm4, %v2942_v27, 2102212464  ;;  %v2958_v10 = vsel %vm2952_vm4, %v2945_v21, 920167782  ;;  %v3025_v39 = vshrl.u32 %v3024_v9, 23  ;;  %v2768_v1 = vsel %vm2766_vm8, %v2767_v41, %v5881_v46 }
 0x2c3   :  { %v2868_v22 = vmul.u32 %v5884_v50, %v2852_v19  ;;  %v2872_v8 = vsel %vm2870_vm15, %v2871_v15, %v5907_v18  ;;  %v2959_v63 = vsel %vm2951_vm11, %v2942_v27, %v2958_v10  ;;  %v2953_v14 = vsel %vm2949_vm3, %v2933_v16, %v2936_v56 }
 0x2c4   :  { %v2955_v33 = vsel %vm2951_vm11, %v2939_v23, %v2954_v29  ;;  %v2960_v42 = vsel %vm2950_vm1, %v2957_v62, %v2959_v63  ;;  %v2961_v34 = vsel %vm2949_vm3, %v2939_v23, %v2942_v27  ;;  %v2564_v55 = vshll.u32 %v5918_v4, 30 }
 0x2c5   :  { %v2962_v36 = vsel %vm2952_vm4, %v2948_v60, 1326507024  ;;  %v5966_v9 = vmul.u32.u64.low %v2965_v26, %v2960_v42  ;;  %v5967_v5 = vmul.u32.u64.high %v2965_v26, %v2960_v42, %v5966_v9  ;;  %v2666_v46 = vadd.s32 536870912, %v5924_v44 }
 0x2c6   :  { %v2769_v50 = vadd.s32 %v2768_v1, %v2764_v35  ;;  %v2963_v18 = vsel %vm2951_vm11, %v2945_v21, %v2962_v36  ;;  %v3369_v41 = vadd.s32 4294967169, %v3025_v39  ;;  %v2873_v56 = vadd.s32 %v2872_v8, %v2868_v22 }
 0x2c7   :  { %v2956_v19 = vsel %vm2950_vm1, %v2953_v14, %v2955_v33  ;;  %v2964_v15 = vsel %vm2950_vm1, %v2961_v34, %v2963_v18  ;;  %v2361_v27 = vclz %v5754_v25  ;;  %v6501_v60 = vsub.s32 0, %v5732_v49 }
 0x2c8   :  { %v5974_v16 = vmul.u32.u64.low %v2965_v26, %v2964_v15  ;;  %v5975_v23 = vmul.u32.u64.high %v2965_v26, %v2964_v15, %v5974_v16  ;;  %v2975_v29 = vadd.s32 1, %v5967_v5  ;;  %v3031_v35 = vadd.s32 1, %v3369_v41 }
 0x2c9   :  { %v3346_v62 = vmin.u32 %v6501_v60, %v5732_v49  ;;  %v5983_v21 = vsub.s32 %v5760_v32, %v2564_v55  ;;  %v5985_v10 = vshrl.u32 %v2666_v46, 30  ;;  %v2770_v39 = vadd.s32 536870912, %v2769_v50 }
 0x2ca   :  { %v2972_v48 = vmul.u32 %v2965_v26, %v2956_v19  ;;  %v2874_v1 = vadd.s32 536870912, %v2873_v56  ;;  %v6406_v22 = vand.u32 2147483647, %v5933_v40  ;;  %vm3032_vm12 = vcmp.gt.s32.totalorder %v3031_v35, 0 }
 0x2cb   :  { %6502 = vst [vmem:[#allocation8_spill] sm:$0xff] %v5985_v10  ;;  %vm2974_vm7 = vc.u32 %v5975_v23, %v5966_v9  ;;  %v3033_v25 = vsel %vm3032_vm12, %v3031_v35, 0  ;;  %v3343_v8 = vadd.s32 4294967294, %v2361_v27  ;;  %v2465_v63 = vclz %v3346_v62 }
 0x2cc   :  { %v2976_v14 = vsel %vm2974_vm7, %v2975_v29, %v5967_v5  ;;  %v3035_v33 = vand.u32 31, %v3033_v25  ;;  %v2567_v32 = vsub.s32 0, %v5983_v21  ;;  %v2668_v42 = vshll.u32 %v5985_v10, 30 }
 0x2cd   :  { %v5993_v34 = vshrl.u32 %v2770_v39, 30  ;;  %v2977_v26 = vadd.s32 %v2976_v14, %v2972_v48  ;;  %v5995_v55 = vshrl.u32 %v2874_v1, 30  ;;  %v3028_v36 = vand.u32 8388607, %v6406_v22 }
 0x2ce   :  { %v3034_v46 = vshrl.u32 %v3033_v25, 5  ;;  %v3036_v18 = vsub.s32 32, %v3035_v33  ;;  %v3038_v19 = vshll.u32 %v6449_v47, %v3035_v33  ;;  %v3041_v5 = vshll.u32 %v6450_v31, %v3035_v33 }
 0x2cf   :  { %6503 = vst [vmem:[#allocation9_spill] sm:$0xff] %v5993_v34  ;;  %v2978_v41 = vadd.s32 536870912, %v2977_v26  ;;  %v3044_v15 = vshll.u32 %v6493_v53, %v3035_v33  ;;  %v3047_v62 = vshll.u32 %v6446_v11, %v3035_v33  ;;  %v6007_v29 = vsub.s32 %v5924_v44, %v2668_v42 }
 0x2d0   :  { %v3039_v16 = vshrl.u32 %v6450_v31, %v3036_v18  ;;  %v3042_v27 = vshrl.u32 %v6493_v53, %v3036_v18  ;;  %v3045_v60 = vshrl.u32 %v6446_v11, %v3036_v18  ;;  %v2772_v35 = vshll.u32 %v5993_v34, 30 }
 0x2d1   :  { %v6010_v39 = vshrl.u32 %v2978_v41, 30  ;;  %v3048_v48 = vshrl.u32 %v6447_v28, %v3036_v18  ;;  %vm3344_vm9 = vcmp.lt.s32.totalorder %v3343_v8, 0  ;;  %v3347_v1 = vadd.s32 4294967294, %v2465_v63 }
 0x2d2   :  { %v3050_v25 = vshll.u32 %v6447_v28, %v3035_v33  ;;  %v2876_v31 = vshll.u32 %v5995_v55, 30  ;;  %v3029_v53 = vor.u32 8388608, %v3028_v36  ;;  %v3040_v14 = vor.u32 %v3039_v16, %v3038_v19 }
 0x2d3   :  { %v3043_v22 = vor.u32 %v3042_v27, %v3041_v5  ;;  %v3046_v10 = vor.u32 %v3045_v60, %v3044_v15  ;;  %v3049_v11 = vor.u32 %v3048_v48, %v3047_v62  ;;  %v3051_v44 = vshrl.u32 %v6494_v13, %v3036_v18 }
 0x2d4   :  { %vm3053_vm0 = vcmp.lt.s32.totalorder %v3034_v46, 1  ;;  %v3350_v42 = vmin.u32 %v2567_v32, %v5983_v21  ;;  %v2671_v41 = vsub.s32 0, %v6007_v29  ;;  %v6018_v34 = vsub.s32 %v2769_v50, %v2772_v35 }
 0x2d5   :  { %v2980_v63 = vshll.u32 %v6010_v39, 30  ;;  %v3037_v28 = vshrl.u32 %v6449_v47, %v3036_v18  ;;  %v3052_v33 = vor.u32 %v3051_v44, %v3050_v25  ;;  %vm3055_vm14 = vcmp.lt.s32.totalorder %v3034_v46, 3 }
 0x2d6   :  { %vm3056_vm5 = vcmp.lt.s32.totalorder %v3034_v46, 4  ;;  %v6022_v36 = vsub.s32 %v2873_v56, %v2876_v31  ;;  %vm3054_vm6 = vcmp.lt.s32.totalorder %v3034_v46, 2  ;;  %v3061_v13 = vsel %vm3053_vm0, %v3040_v14, %v3043_v22 }
 0x2d7   :  { %v3058_v19 = vsel %vm3056_vm5, %v3046_v10, 2102212464  ;;  %v3062_v5 = vsel %vm3056_vm5, %v3049_v11, 920167782  ;;  %v3065_v32 = vsel %vm3053_vm0, %v3043_v22, %v3046_v10  ;;  %v3066_v15 = vsel %vm3056_vm5, %v3052_v33, 1326507024 }
 0x2d8   :  { %v3069_v16 = vshll.u32 %v3029_v53, 8  ;;  %v2775_v50 = vsub.s32 0, %v6018_v34  ;;  %v6027_v27 = vsub.s32 %v2977_v26, %v2980_v63  ;;  %v3063_v47 = vsel %vm3055_vm14, %v3046_v10, %v3062_v5 }
 0x2d9   :  { %v3057_v18 = vsel %vm3053_vm0, %v3037_v28, %v3040_v14  ;;  %v3059_v56 = vsel %vm3055_vm14, %v3043_v22, %v3058_v19  ;;  %v3064_v60 = vsel %vm3054_vm6, %v3061_v13, %v3063_v47  ;;  %v3067_v62 = vsel %vm3055_vm14, %v3049_v11, %v3066_v15 }
 0x2da   :  { %v2364_v35 = vsel %vm3344_vm9, 0, %v3343_v8  ;;  %v2569_v48 = vclz %v3350_v42  ;;  %v2879_v25 = vsub.s32 0, %v6022_v36  ;;  %v3068_v31 = vsel %vm3054_vm6, %v3065_v32, %v3067_v62 }
 0x2db   :  { %vm3348_vm10 = vcmp.lt.s32.totalorder %v3347_v1, 0  ;;  %v3354_v26 = vmin.u32 %v2671_v41, %v6007_v29  ;;  %v6038_v53 = vmul.u32.u64.low %v3069_v16, %v3068_v31  ;;  %v6039_v10 = vmul.u32.u64.high %v3069_v16, %v3068_v31, %v6038_v53 }
 0x2dc   :  { %v2983_v14 = vsub.s32 0, %v6027_v27  ;;  %v3060_v22 = vsel %vm3054_vm6, %v3057_v18, %v3059_v56  ;;  %v6043_v44 = vmul.u32.u64.low %v3069_v16, %v3064_v60  ;;  %v6044_v63 = vmul.u32.u64.high %v3069_v16, %v3064_v60, %v6043_v44 }
 0x2dd   :  { %v3358_v8 = vmin.u32 %v2775_v50, %v6018_v34  ;;  %v2369_v11 = vsub.s32 4294967266, %v2364_v35  ;;  %v3351_v42 = vadd.s32 4294967294, %v2569_v48  ;;  %v3362_v28 = vmin.u32 %v2879_v25, %v6022_v36 }
 0x2de   :  { %v2468_v33 = vsel %vm3348_vm10, 0, %v3347_v1  ;;  %v2673_v19 = vclz %v3354_v26  ;;  %v3076_v41 = vmul.u32 %v3069_v16, %v3060_v22  ;;  %vm3078_vm13 = vc.u32 %v6039_v10, %v6043_v44 }
 0x2df   :  { %v2349_v46 = vadd.s32 %v5550_v37, %v5565_v17  ;;  %v2365_v13 = vsub.s32 32, %v2364_v35  ;;  %v3366_v5 = vmin.u32 %v2983_v14, %v6027_v27  ;;  %v3079_v32 = vadd.s32 1, %v6044_v63 }
 0x2e0   :  { %v2777_v15 = vclz %v3358_v8  ;;  %v2473_v50 = vsub.s32 4294967266, %v2468_v33  ;;  %vm3352_vm2 = vcmp.lt.s32.totalorder %v3351_v42, 0  ;;  %v2881_v47 = vclz %v3362_v28 }
 0x2e1   :  { %v3080_v18 = vsel %vm3078_vm13, %v3079_v32, %v6044_v63  ;;  %v2370_v1 = vadd.s32 127, %v2369_v11  ;;  %v3355_v56 = vadd.s32 4294967294, %v2673_v19  ;;  %v2366_v60 = vshll.u32 %v5714_v57, %v2364_v35 }
 0x2e2   :  { %v3081_v16 = vadd.s32 %v3080_v18, %v3076_v41  ;;  %v2367_v62 = vshrl.u32 %v2349_v46, %v2365_v13  ;;  %v2453_v37 = vadd.s32 %v5600_v51, %v5610_v58  ;;  %v2985_v17 = vclz %v3366_v5 }
 0x2e3   :  { %v2469_v48 = vsub.s32 32, %v2468_v33  ;;  %v2572_v25 = vsel %vm3352_vm2, 0, %v3351_v42  ;;  %v3359_v31 = vadd.s32 4294967294, %v2777_v15  ;;  %v2474_v53 = vadd.s32 127, %v2473_v50 }
 0x2e4   :  { %v3082_v26 = vadd.s32 536870912, %v3081_v16  ;;  %v3363_v14 = vadd.s32 4294967294, %v2881_v47  ;;  %v2371_v22 = vshll.u32 %v2370_v1, 23  ;;  %vm3356_vm8 = vcmp.lt.s32.totalorder %v3355_v56, 0 }
 0x2e5   :  { %v2368_v63 = vor.u32 %v2367_v62, %v2366_v60  ;;  %v2557_v11 = vadd.s32 %v5684_v30, %v5692_v54  ;;  %v2577_v57 = vsub.s32 4294967266, %v2572_v25  ;;  %v3367_v35 = vadd.s32 4294967294, %v2985_v17 }
 0x2e6   :  { %v6059_v8 = vshrl.u32 %v3082_v26, 30  ;;  %v2470_v28 = vshll.u32 %v5732_v49, %v2468_v33  ;;  %v2471_v51 = vshrl.u32 %v2453_v37, %v2469_v48  ;;  %vm3360_vm3 = vcmp.lt.s32.totalorder %v3359_v31, 0 }
 0x2e7   :  { %v2475_v42 = vshll.u32 %v2474_v53, 23  ;;  %v2573_v19 = vsub.s32 32, %v2572_v25  ;;  %v2676_v41 = vsel %vm3356_vm8, 0, %v3355_v56  ;;  %vm3364_vm15 = vcmp.lt.s32.totalorder %v3363_v14, 0 }
 0x2e8   :  { %v3084_v58 = vshll.u32 %v6059_v8, 30  ;;  %v2372_v46 = vor.u32 4788187, %v2371_v22  ;;  %v2578_v5 = vadd.s32 127, %v2577_v57  ;;  %v2780_v32 = vsel %vm3360_vm3, 0, %v3359_v31 }
 0x2e9   :  { %vm3368_vm11 = vcmp.lt.s32.totalorder %v3367_v35, 0  ;;  %v2375_v15 = vcvt.s32.f32 %v2368_v63  ;;  %v2681_v30 = vsub.s32 4294967266, %v2676_v41  ;;  %v2884_v54 = vsel %vm3364_vm15, 0, %v3363_v14 }
 0x2ea   :  { %v6065_v13 = vsub.s32 %v3081_v16, %v3084_v58  ;;  %v2472_v49 = vor.u32 %v2471_v51, %v2470_v28  ;;  %v2476_v33 = vor.u32 4788187, %v2475_v42  ;;  %v2574_v47 = vshll.u32 %v5983_v21, %v2572_v25 }
 0x2eb   :  { %v2575_v18 = vshrl.u32 %v2557_v11, %v2573_v19  ;;  %v2373_v1 = vand.u32 2147483647, %v2372_v46  ;;  %v2785_v60 = vsub.s32 4294967266, %v2780_v32  ;;  %v2988_v56 = vsel %vm3368_vm11, 0, %v3367_v35 }
 0x2ec   :  { %v3087_v50 = vsub.s32 0, %v6065_v13  ;;  %v2579_v16 = vshll.u32 %v2578_v5, 23  ;;  %v2661_v37 = vadd.s32 %v5785_v24, %v5796_v52  ;;  %v2677_v17 = vsub.s32 32, %v2676_v41 }
 0x2ed   :  { %v2889_v48 = vsub.s32 4294967266, %v2884_v54  ;;  %v2682_v31 = vadd.s32 127, %v2681_v30  ;;  %v2765_v26 = vadd.s32 %v5880_v6, %v5893_v43  ;;  %v2781_v53 = vsub.s32 32, %v2780_v32 }
 0x2ee   :  { %v3370_v62 = vmin.u32 %v3087_v50, %v6065_v13  ;;  %v2477_v22 = vand.u32 2147483647, %v2476_v33  ;;  %v2479_v21 = vcvt.s32.f32 %v2472_v49  ;;  %v2576_v25 = vor.u32 %v2575_v18, %v2574_v47 }
 0x2ef   :  { %v2993_v63 = vsub.s32 4294967266, %v2988_v56  ;;  %v2786_v11 = vadd.s32 127, %v2785_v60  ;;  %v2869_v57 = vadd.s32 %v5906_v20, %v5916_v0  ;;  %v2885_v35 = vsub.s32 32, %v2884_v54 }
 0x2f0   :  { %v3089_v14 = vclz %v3370_v62  ;;  %v2580_v51 = vor.u32 4788187, %v2579_v16  ;;  %v2678_v24 = vshll.u32 %v6007_v29, %v2676_v41  ;;  %v2679_v52 = vshrl.u32 %v2661_v37, %v2677_v17 }
 0x2f1   :  { %v2890_v58 = vadd.s32 127, %v2889_v48  ;;  %v2683_v42 = vshll.u32 %v2682_v31, 23  ;;  %v2782_v6 = vshll.u32 %v6018_v34, %v2780_v32  ;;  %v2783_v43 = vshrl.u32 %v2765_v26, %v2781_v53 }
 0x2f2   :  { %v3371_v28 = vadd.s32 4294967294, %v3089_v14  ;;  %v2973_v19 = vadd.s32 %v5966_v9, %v5975_v23  ;;  %v2989_v46 = vsub.s32 32, %v2988_v56  ;;  %v2994_v5 = vadd.s32 127, %v2993_v63 }
 0x2f3   :  { %v2787_v50 = vshll.u32 %v2786_v11, 23  ;;  %v2886_v20 = vshll.u32 %v6022_v36, %v2884_v54  ;;  %v2887_v0 = vshrl.u32 %v2869_v57, %v2885_v35  ;;  %v2376_v33 = vmul.f32 %v2375_v15, %v2373_v1 }
 0x2f4   :  { %vm3372_vm1 = vcmp.lt.s32.totalorder %v3371_v28, 0  ;;  %v2891_v29 = vshll.u32 %v2890_v58, 23  ;;  %v3077_v41 = vadd.s32 %v6043_v44, %v6039_v10  ;;  %v2480_v34 = vmul.f32 %v2479_v21, %v2477_v22 }
 0x2f5   :  { %v3092_v30 = vsel %vm3372_vm1, 0, %v3371_v28  ;;  %v2680_v32 = vor.u32 %v2679_v52, %v2678_v24  ;;  %v2684_v18 = vor.u32 4788187, %v2683_v42  ;;  %v2583_v62 = vcvt.s32.f32 %v2576_v25 }
 0x2f6   :  { %v3097_v49 = vsub.s32 4294967266, %v3092_v30  ;;  %v3093_v47 = vsub.s32 32, %v3092_v30  ;;  %v2990_v9 = vshll.u32 %v6027_v27, %v2988_v56  ;;  %v2991_v23 = vshrl.u32 %v2973_v19, %v2989_v46 }
 0x2f7   :  { %v2995_v16 = vshll.u32 %v2994_v5, 23  ;;  %v2581_v37 = vand.u32 2147483647, %v2580_v51  ;;  %v2784_v17 = vor.u32 %v2783_v43, %v2782_v6  ;;  %v2788_v36 = vor.u32 4788187, %v2787_v50 }
 0x2f8   :  { %v3098_v60 = vadd.s32 127, %v3097_v49  ;;  %v2888_v54 = vor.u32 %v2887_v0, %v2886_v20  ;;  %v2892_v48 = vor.u32 4788187, %v2891_v29  ;;  %v3094_v15 = vshll.u32 %v6065_v13, %v3092_v30 }
 0x2f9   :  { %v3095_v1 = vshrl.u32 %v3077_v41, %v3093_v47  ;;  %v2685_v10 = vand.u32 2147483647, %v2684_v18  ;;  %v2687_v44 = vcvt.s32.f32 %v2680_v32  ;;  %vm2295_vm4 = vcmp.lt.s32.totalorder %v5327_v3, 0 }
 0x2fa   :  { %v3099_v31 = vshll.u32 %v3098_v60, 23  ;;  %v2377_v26 = vxor.u32 2147483648, %v2376_v33  ;;  %v2992_v53 = vor.u32 %v2991_v23, %v2990_v9  ;;  %v2996_v14 = vor.u32 4788187, %v2995_v16 }
 0x2fb   :  { %v2481_v22 = vxor.u32 2147483648, %v2480_v34  ;;  %v2584_v27 = vmul.f32 %v2583_v62, %v2581_v37  ;;  %v2789_v56 = vand.u32 2147483647, %v2788_v36  ;;  %v2791_v21 = vcvt.s32.f32 %v2784_v17 }
 0x2fc   :  { %v2893_v25 = vand.u32 2147483647, %v2892_v48  ;;  %v2895_v63 = vcvt.s32.f32 %v2888_v54  ;;  %v3096_v11 = vor.u32 %v3095_v1, %v3094_v15  ;;  %v3100_v57 = vor.u32 4788187, %v3099_v31  ;;  %v6519_v48 = vld [vmem:[#allocation7_spill] sm:$0xff] }
 0x2fd   :  { %vm2399_vm12 = vcmp.lt.s32.totalorder %v5392_v45, 0  ;;  %v2688_v13 = vmul.f32 %v2687_v44, %v2685_v10  ;;  %v6504_v35 = vand.u32 2147483647, %v5327_v3  ;;  %v2378_v51 = vsel %vm2295_vm4, %v2377_v26, %v2376_v33 }
 0x2fe   :  { %v2997_v24 = vand.u32 2147483647, %v2996_v14  ;;  %v2999_v52 = vcvt.s32.f32 %v2992_v53  ;;  %v6507_v58 = vand.u32 2147483647, %v5392_v45  ;;  %vm2503_vm0 = vcmp.lt.s32.totalorder %v5442_v38, 0 }
 0x2ff   :  { %vm6089_vm7 = vcmp.le.f32.partialorder %v6504_v35, 0.7853982  ;;  %v2585_v6 = vxor.u32 2147483648, %v2584_v27  ;;  %v2792_v43 = vmul.f32 %v2791_v21, %v2789_v56  ;;  %v2482_v19 = vsel %vm2399_vm12, %v2481_v22, %v2480_v34 }
 0x300   :  { %vm6097_vm9 = vcmp.le.f32.partialorder %v6507_v58, 0.7853982  ;;  %v2896_v46 = vmul.f32 %v2895_v63, %v2893_v25  ;;  %v3101_v5 = vand.u32 2147483647, %v3100_v57  ;;  %v3103_v30 = vcvt.s32.f32 %v3096_v11 }
 0x301   :  { %v2381_v50 = vsel %vm6089_vm7, %v5327_v3, %v2378_v51  ;;  %v2689_v20 = vxor.u32 2147483648, %v2688_v13  ;;  %v6510_v0 = vand.u32 2147483647, %v5442_v38  ;;  %vm2607_vm5 = vcmp.lt.s32.totalorder %v5554_v59, 0  ;;  %v6529_v51 = vld [vmem:[#allocation8_spill] sm:$0xff] }
 0x302   :  { %v3000_v33 = vmul.f32 %v2999_v52, %v2997_v24  ;;  %v2485_v29 = vsel %vm6097_vm9, %v5392_v45, %v2482_v19  ;;  %v2586_v41 = vsel %vm2503_vm0, %v2585_v6, %v2584_v27  ;;  %v6513_v47 = vand.u32 2147483647, %v5554_v59  ;;  %v6530_v52 = vld [vmem:[#allocation9_spill] sm:$0xff] }
 0x303   :  { %vm6109_vm14 = vcmp.le.f32.partialorder %v6510_v0, 0.7853982  ;;  %v2793_v32 = vxor.u32 2147483648, %v2792_v43  ;;  %3545 = vcosq.f32 %v2381_v50  ;;  %vm2711_vm10 = vcmp.lt.s32.totalorder %v5643_v2, 0 }
 0x304   :  { %vm6121_vm6 = vcmp.le.f32.partialorder %v6513_v47, 0.7853982  ;;  %v2897_v18 = vxor.u32 2147483648, %v2896_v46  ;;  %v3104_v60 = vmul.f32 %v3103_v30, %v3101_v5  ;;  %3547 = vsinq.f32 %v2381_v50 }
 0x305   :  { %v2483_v62 = vsub.s32 4, %v5699_v61  ;;  %v2690_v9 = vsel %vm2607_vm5, %v2689_v20, %v2688_v13  ;;  %vm2815_vm13 = vcmp.lt.s32.totalorder %v5676_v7, 0  ;;  %v2379_v23 = vsub.s32 4, %v5668_v12 }
 0x306   :  { %3549 = vcosq.f32 %v2485_v29  ;;  %v2589_v16 = vsel %vm6109_vm14, %v5442_v38, %v2586_v41  ;;  %v3001_v37 = vxor.u32 2147483648, %v3000_v33  ;;  %v6516_v17 = vand.u32 2147483647, %v5643_v2 }
 0x307   :  { %3551 = vsinq.f32 %v2485_v29  ;;  %v2794_v54 = vsel %vm2711_vm10, %v2793_v32, %v2792_v43  ;;  %vm2919_vm8 = vcmp.lt.s32.totalorder %v6519_v48, 0  ;;  %v2693_v15 = vsel %vm6121_vm6, %v5554_v59, %v2690_v9 }
 0x308   :  { %vm6136_vm2 = vcmp.le.f32.partialorder %v6516_v17, 0.7853982  ;;  %v6520_v1 = vand.u32 2147483647, %v5676_v7  ;;  %v2898_v10 = vsel %vm2815_vm13, %v2897_v18, %v2896_v46  ;;  %v3105_v44 = vxor.u32 2147483648, %v3104_v60 }
 0x309   :  { %v2484_v26 = vsel %vm2399_vm12, %v2483_v62, %v5699_v61  ;;  %v2587_v53 = vsub.s32 4, %v5918_v4  ;;  %3553 = vcosq.f32 %v2589_v16  ;;  %vm3023_vm15 = vcmp.lt.s32.totalorder %v5933_v40, 0 }
 0x30a   :  { %vm6148_vm3 = vcmp.le.f32.partialorder %v6520_v1, 0.7853982  ;;  %3555 = vsinq.f32 %v2589_v16  ;;  %v2797_v14 = vsel %vm6136_vm2, %v5643_v2, %v2794_v54  ;;  %v6523_v22 = vand.u32 2147483647, %v6519_v48 }
 0x30b   :  { %v3002_v56 = vsel %vm2919_vm8, %v3001_v37, %v3000_v33  ;;  %v2380_v61 = vsel %vm2295_vm4, %v2379_v23, %v5668_v12  ;;  %3557 = vcosq.f32 %v2693_v15  ;;  %v2901_v21 = vsel %vm6148_vm3, %v5676_v7, %v2898_v10 }
 0x30c   :  { %vm6164_vm11 = vcmp.le.f32.partialorder %v6523_v22, 0.7853982  ;;  %3559 = vsinq.f32 %v2693_v15  ;;  %v6526_v25 = vand.u32 2147483647, %v5933_v40  ;;  %v3106_v11 = vsel %vm3023_vm15, %v3105_v44, %v3104_v60 }
 0x30d   :  { %v2486_v57 = vsel %vm6097_vm9, 0, %v2484_v26  ;;  %3561 = vcosq.f32 %v2797_v14  ;;  %v3005_v12 = vsel %vm6164_vm11, %v6519_v48, %v3002_v56  ;;  %v2382_v13 = vsel %vm6089_vm7, 0, %v2380_v61 }
 0x30e   :  { %vm6178_vm1 = vcmp.le.f32.partialorder %v6526_v25, 0.7853982  ;;  %v2588_v35 = vsel %vm2503_vm0, %v2587_v53, %v5918_v4  ;;  %v2691_v24 = vsub.s32 4, %v6529_v51  ;;  %3563 = vcosq.f32 %v2901_v21 }
 0x30f   :  { %v2795_v58 = vsub.s32 4, %v6530_v52  ;;  %v2899_v42 = vsub.s32 4, %v5995_v55  ;;  %3565 = vsinq.f32 %v2901_v21  ;;  %v3109_v6 = vsel %vm6178_vm1, %v5933_v40, %v3106_v11 }
 0x310   :  { %v3003_v43 = vsub.s32 4, %v6010_v39  ;;  %3567 = vcosq.f32 %v3005_v12  ;;  %v2490_v28 = vadd.s32 3, %v2486_v57  ;;  %v3546_v19 = vpop.eup %3545  ;;  %v2590_v4 = vsel %vm6109_vm14, 0, %v2588_v35 }
 0x311   :  { %3569 = vsinq.f32 %v3005_v12  ;;  %v2386_v46 = vadd.s32 3, %v2382_v13  ;;  %v3548_v5 = vpop.eup %3547  ;;  %v2692_v30 = vsel %vm2607_vm5, %v2691_v24, %v6529_v51  ;;  %v3107_v50 = vsub.s32 4, %v6059_v8 }
 0x312   :  { %3571 = vcosq.f32 %v3109_v6  ;;  %v2796_v0 = vsel %vm2711_vm10, %v2795_v58, %v6530_v52  ;;  %v2900_v49 = vsel %vm2815_vm13, %v2899_v42, %v5995_v55  ;;  %v3004_v29 = vsel %vm2919_vm8, %v3003_v43, %v6010_v39 }
 0x313   :  { %v3550_v20 = vpop.eup %3549  ;;  %3573 = vsinq.f32 %v3109_v6  ;;  %v2491_v41 = vand.u32 3, %v2490_v28  ;;  %v2594_v47 = vadd.s32 3, %v2590_v4  ;;  %v2694_v32 = vsel %vm6121_vm6, 0, %v2692_v30 }
 0x314   :  { %v3552_v33 = vpop.eup %3551  ;;  %3575 = vsinq.f32 %v2797_v14  ;;  %v6218_v18 = vand.u32 3, %v2386_v46  ;;  %v3108_v62 = vsel %vm3023_vm15, %v3107_v50, %v6059_v8  ;;  %v2798_v9 = vsel %vm6136_vm2, 0, %v2796_v0 }
 0x315   :  { %v2902_v23 = vsel %vm6148_vm3, 0, %v2900_v49  ;;  %v3006_v39 = vsel %vm6164_vm11, 0, %v3004_v29  ;;  %v2494_v16 = vxor.u32 2147483648, %v3552_v33  ;;  %vm2493_vm4 = vcmp.eq.s32.totalorder %v2491_v41, 0 }
 0x316   :  { %v3554_v60 = vpop.eup %3553  ;;  %v2497_v37 = vxor.u32 2147483648, %v3550_v20  ;;  %v6231_v17 = vand.u32 3, %v2594_v47  ;;  %v2698_v54 = vadd.s32 3, %v2694_v32  ;;  %v3110_v8 = vsel %vm6178_vm1, 0, %v3108_v62 }
 0x317   :  { %v3556_v55 = vpop.eup %3555  ;;  %vm2389_vm12 = vcmp.eq.s32.totalorder %v6218_v18, 0  ;;  %v2390_v36 = vxor.u32 2147483648, %v3548_v5  ;;  %vm2496_vm7 = vcmp.eq.s32.totalorder %v2491_v41, 2  ;;  %vm2392_vm9 = vcmp.eq.s32.totalorder %v6218_v18, 2 }
 0x318   :  { %v6229_v34 = vpop.eup %3557  ;;  %v2393_v31 = vxor.u32 2147483648, %v3546_v19  ;;  %v2598_v10 = vxor.u32 2147483648, %v3556_v55  ;;  %v2906_v44 = vadd.s32 3, %v2902_v23  ;;  %vm2492_vm0 = vcmp.lt.s32.totalorder %v2491_v41, 2 }
 0x319   :  { %v6233_v15 = vpop.eup %3559  ;;  %v2495_v53 = vsel %vm2493_vm4, %v3550_v20, %v2494_v16  ;;  %v2601_v14 = vxor.u32 2147483648, %v3554_v60  ;;  %v3010_v22 = vadd.s32 3, %v3006_v39  ;;  %v3114_v56 = vadd.s32 3, %v3110_v8  ;;  %v2079_v16 = vpop.permute.xlu1 %2078 }
 0x31a   :  { %v6238_v1 = vpop.eup %3561  ;;  %v2498_v61 = vsel %vm2496_vm7, %v2497_v37, %v3552_v33  ;;  %vm2597_vm14 = vcmp.eq.s32.totalorder %v6231_v17, 0  ;;  %v6243_v21 = vand.u32 3, %v2698_v54  ;;  %vm2600_vm5 = vcmp.eq.s32.totalorder %v6231_v17, 2 }
 0x31b   :  { %v3564_v26 = vpop.eup %3563  ;;  %v2802_v11 = vadd.s32 3, %v2798_v9  ;;  %v6250_v12 = vsel %vm2389_vm12, %v3546_v19, %v2390_v36  ;;  %v6254_v13 = vsel %vm2392_vm9, %v2393_v31, %v3548_v5  ;;  %v2907_v35 = vand.u32 3, %v2906_v44 }
 0x31c   :  { %v3566_v27 = vpop.eup %3565  ;;  %v6259_v52 = vsel %vm2492_vm0, %v2495_v53, %v2498_v61  ;;  %v6261_v58 = vsel %vm2597_vm14, %v3554_v60, %v2598_v10  ;;  %v2702_v42 = vxor.u32 2147483648, %v6233_v15  ;;  %v3011_v6 = vand.u32 3, %v3010_v22  ;;  %v2084_v60 = vpop.permute.xlu0 %2083 }
 0x31d   :  { %v3568_v25 = vpop.eup %3567  ;;  %v3115_v28 = vand.u32 3, %v3114_v56  ;;  %vm2596_vm6 = vcmp.lt.s32.totalorder %v6231_v17, 2  ;;  %v2602_v19 = vsel %vm2600_vm5, %v2601_v14, %v3556_v55  ;;  %vm2701_vm10 = vcmp.eq.s32.totalorder %v6243_v21, 0 }
 0x31e   :  { %v3570_v57 = vpop.eup %3569  ;;  %v2705_v4 = vxor.u32 2147483648, %v6229_v34  ;;  %vm2704_vm2 = vcmp.eq.s32.totalorder %v6243_v21, 2  ;;  %v2803_v30 = vand.u32 3, %v2802_v11  ;;  %v2910_v50 = vxor.u32 2147483648, %v3566_v27 }
 0x31f   :  { %v3572_v51 = vpop.eup %3571  ;;  %v2913_v20 = vxor.u32 2147483648, %v3564_v26  ;;  %vm2909_vm8 = vcmp.eq.s32.totalorder %v2907_v35, 0  ;;  %vm2912_vm3 = vcmp.eq.s32.totalorder %v2907_v35, 2  ;;  %v3014_v0 = vxor.u32 2147483648, %v3570_v57 }
 0x320   :  { %v3574_v43 = vpop.eup %3573  ;;  %v3017_v49 = vxor.u32 2147483648, %v3568_v25  ;;  %vm3013_vm15 = vcmp.eq.s32.totalorder %v3011_v6, 0  ;;  %vm3016_vm11 = vcmp.eq.s32.totalorder %v3011_v6, 2  ;;  %v3121_v41 = vxor.u32 2147483648, %v3572_v51 }
 0x321   :  { %v3576_v46 = vpop.eup %3575  ;;  %v3118_v29 = vxor.u32 2147483648, %v3574_v43  ;;  %v2809_v32 = vxor.u32 2147483648, %v6238_v1  ;;  %vm3117_vm12 = vcmp.eq.s32.totalorder %v3115_v28, 0  ;;  %vm3120_vm7 = vcmp.eq.s32.totalorder %v3115_v28, 2 }
 0x322   :  { %v2806_v47 = vxor.u32 2147483648, %v3576_v46  ;;  %vm2805_vm0 = vcmp.eq.s32.totalorder %v2803_v30, 0  ;;  %vm2808_vm14 = vcmp.eq.s32.totalorder %v2803_v30, 2  ;;  %vm2908_vm5 = vcmp.lt.s32.totalorder %v2907_v35, 2 }
 0x323   :  { %v2911_v55 = vsel %vm2909_vm8, %v3564_v26, %v2910_v50  ;;  %vm2489_vm13 = vweird.f32 %v5392_v45  ;;  %v2914_v9 = vsel %vm2912_vm3, %v2913_v20, %v3566_v27  ;;  %vm3012_vm1 = vcmp.lt.s32.totalorder %v3011_v6, 2  ;;  %v2074_v27 = vpop.permute.xlu0 %2073  ;;  %v6536_v20 = vld [vmem:[#allocation5_spill] sm:$0xff] }
 0x324   :  { %v3015_v23 = vsel %vm3013_vm15, %v3568_v25, %v3014_v0  ;;  %v3018_v39 = vsel %vm3016_vm11, %v3017_v49, %v3570_v57  ;;  %vm2385_vm4 = vweird.f32 %v5327_v3  ;;  %v2703_v37 = vsel %vm2701_vm10, %v6229_v34, %v2702_v42 }
 0x325   :  { %vm3116_vm9 = vcmp.lt.s32.totalorder %v3115_v28, 2  ;;  %v3119_v8 = vsel %vm3117_vm12, %v3572_v51, %v3118_v29  ;;  %v3122_v36 = vsel %vm3120_vm7, %v3121_v41, %v3574_v43  ;;  %v2706_v31 = vsel %vm2704_vm2, %v2705_v4, %v6233_v15  ;;  %v2069_v51 = vpop.permute.xlu1 %2068 }
 0x326   :  { %vm2804_vm8 = vcmp.lt.s32.totalorder %v2803_v30, 2  ;;  %v2807_v10 = vsel %vm2805_vm0, %v6238_v1, %v2806_v47  ;;  %v2810_v44 = vsel %vm2808_vm14, %v2809_v32, %v3576_v46  ;;  %vm2905_vm3 = vweird.f32 %v5676_v7  ;;  %v6535_v30 = vld [vmem:[#allocation6_spill] sm:$0xff] }
 0x327   :  { %v2915_v34 = vsel %vm2908_vm5, %v2911_v55, %v2914_v9  ;;  %vm3009_vm10 = vweird.f32 %v6519_v48  ;;  %v3019_v53 = vsel %vm3012_vm1, %v3015_v23, %v3018_v39  ;;  %vm3113_vm15 = vweird.f32 %v5933_v40  ;;  %v3146_v41 = vpop.permute.xlu0 %3145 }
 0x328   :  { %v3123_v15 = vsel %vm3116_vm9, %v3119_v8, %v3122_v36  ;;  %v2603_v1 = vsel %vm2596_vm6, %v6261_v58, %v2602_v19  ;;  %vm2801_vm2 = vweird.f32 %v5643_v2  ;;  %v2811_v61 = vsel %vm2804_vm8, %v2807_v10, %v2810_v44 }
 0x329   :  { %vm6531_vm11 = vcmp.lt.s32.totalorder %v6243_v21, 2  ;;  %v3020_v57 = vsel %vm3009_vm10, nan, %v3019_v53  ;;  %v2916_v6 = vsel %vm2905_vm3, nan, %v2915_v34  ;;  %v3124_v58 = vsel %vm3113_vm15, nan, %v3123_v15 }
 0x32a   :  { %v2707_v48 = vsel %vm6531_vm11, %v2703_v37, %v2706_v31  ;;  %v2812_v43 = vsel %vm2801_vm2, nan, %v2811_v61  ;;  %vm6532_vm6 = vcmp.lt.s32.totalorder %v6218_v18, 2  ;;  %vm6533_vm1 = vweird.f32 %v5554_v59 }
 0x32b   :  { %v2395_v4 = vsel %vm6532_vm6, %v6250_v12, %v6254_v13  ;;  %v2708_v7 = vsel %vm6533_vm1, nan, %v2707_v48  ;;  %vm6534_vm12 = vweird.f32 %v5442_v38  ;;  %v2500_v50 = vsel %vm2489_vm13, nan, %v6259_v52 }
 0x32c   :  { %v2604_v40 = vsel %vm6534_vm12, nan, %v2603_v1  ;;  %v2396_v18 = vsel %vm2385_vm4, nan, %v2395_v4  ;;  %vm6537_vm13 = vcmask 261120  }
 0x335   :  { %v6245_v63 = vpop.f32.mrf.mxu1 }
 0x336   :  { %v2165_v21 = vadd.f32 %v6245_v63, %v2069_v51 }
 0x337   :  { %v6256_v24 = vpop.f32.mrf.mxu1 }
 0x338   :  { %v2167_v2 = vadd.f32 %v6256_v24, %v2069_v51  ;;  %v3125_v13 = vmul.f32 %v2396_v18, %v2165_v21 }
 0x339   :  { %v6267_v5 = vpop.f32.mrf.mxu1 }
 0x33a   :  { %v2171_v42 = vadd.f32 %v6267_v5, %v2074_v27  ;;  %v3126_v12 = vmul.f32 %v2500_v50, %v2167_v2  ;;  %v3133_v3 = vadd.f32 %v3125_v13, %v6536_v20 }
 0x33b   :  { %v2172_v33 = vpop.f32.mrf.mxu1 }
 0x33c   :  { %v2173_v11 = vadd.f32 %v2172_v33, %v2074_v27  ;;  %v3127_v63 = vmul.f32 %v2604_v40, %v2171_v42  ;;  %v3134_v52 = vadd.f32 %v3126_v12, %v6535_v30  ;;  %v3141_v33 = vld [vmem:[%s6343_s4] sm:$0xf] }
 0x33d   :  { %v2176_v62 = vpop.f32.mrf.mxu1 }
 0x33e   :  { %v2177_v56 = vadd.f32 %v2176_v62, %v2079_v16  ;;  %v3128_v5 = vmul.f32 %v2708_v7, %v2173_v11  ;;  %v3135_v45 = vadd.f32 %v3127_v63, %v6536_v20 }
 0x33f   :  { %v2178_v54 = vpop.f32.mrf.mxu1 }
 0x340   :  { %v2179_v14 = vadd.f32 %v2178_v54, %v2079_v16  ;;  %v3129_v46 = vmul.f32 %v2812_v43, %v2177_v56  ;;  %v3136_v49 = vadd.f32 %v3128_v5, %v6535_v30 }
 0x341   :  { %v2182_v26 = vpop.f32.mrf.mxu1 }
 0x342   :  { %v2183_v22 = vadd.f32 %v2182_v26, %v2084_v60  ;;  %v3130_v28 = vmul.f32 %v2916_v6, %v2179_v14  ;;  %v3137_v38 = vadd.f32 %v3129_v46, %v6536_v20 }
 0x343   :  { %v2184_v25 = vpop.f32.mrf.mxu1 }
 0x344   :  { %v2185_v35 = vadd.f32 %v2184_v25, %v2084_v60  ;;  %v3131_v17 = vmul.f32 %v3020_v57, %v2183_v22  ;;  %v3138_v59 = vadd.f32 %v3130_v28, %v6535_v30 }
 0x346   :  { %v3132_v19 = vmul.f32 %v3124_v58, %v2185_v35  ;;  %v3139_v0 = vadd.f32 %v3131_v17, %v6536_v20 }
 0x348   :  { %v3140_v24 = vadd.f32 %v3132_v19, %v6535_v30 }
 0x34a   :  { %3175 = vmatprep.subr.mxu1 %v3140_v24 }
 0x34b   :  { %3176 = vmatpush1.msra.mxu1 %v3139_v0 }
 0x34c   :  { %3177 = vmatprep.subr.mxu1 %v3138_v59 }
 0x34d   :  { %3178 = vmatpush1.msra.mxu1 %v3137_v38 }
 0x34e   :  { %3179 = vmatprep.subr.mxu1 %v3136_v49 }
 0x34f   :  { %3180 = vmatpush1.msra.mxu1 %v3135_v45 }
 0x350   :  { %3181 = vmatprep.subr.mxu1 %v3134_v52 }
 0x351   :  { %3182 = vmatpush1.msra.mxu1 %v3133_v3 }
 0x352   :  { %3373 = vmatmul.mubr.msk.f32.vlgmr.msra.gmra.mxu1 %vm6537_vm13, %v3141_v33 }
 0x412   :  { %v3217_v29 = vpop.f32.mrf.mxu1 }
 0x413   :  { %v3218_v32 = vadd.f32 %v3217_v29, %v3146_v41 }
 0x414   :  { %v3219_v47 = vpop.f32.mrf.mxu1 }
 0x415   :  { %v3220_v60 = vadd.f32 %v3219_v47, %v3146_v41 }
 0x417   :  { %v3224_v62 = vcombine.low %v3218_v32, %v3220_v60 }
 0x419   :  { %3226 = vst [vmem:[#allocation2] sm:$0xff] %v3224_v62 }
 0x41a   :  { %3590 = shalt.err (!%p3587_p4)
}
 0x41b   :  { %3236 = dma.vmem_to_hbm [thread:$0]  %s3234_s12, 128, %s6345_s6, [#allocation3]  }
 0x41c   :  { %3599 = dma.done.wait [#allocation3], 128  }
 0x41d   :  { %3600 = vsyncadd [#allocation3], 4294967168 }
 0x41e   :  { %3240 = vsyncpa [#allocation3], 1 }

</bundles_post_ra>
